<compile_context>
chip_gen: v5e
topology: v5e:2x2
jax: 0.10.0
libtpu: 0.0.40
codegen_flags: <defaults>
</compile_context>

<pallas_src>
import jax
import jax.numpy as jnp
from jax import lax
from jax.experimental import pallas as pl
from jax.experimental.pallas import tpu as pltpu


def conv_transpose2d_sigmoid(x, w, b, *, stride, padding):
    """x: (N, Cin, H, W), w: (Cin, Cout, KH, KW) [PyTorch layout], b: (Cout,)."""
    n, cin, h, wdt = x.shape
    cin_w, cout, kh, kw = w.shape
    assert cin == cin_w
    sh, sw = stride
    ph, pw = padding
    assert (sh, sw) == (kh, kw), "kernel assumes stride == kernel_size (non-overlapping)"

    p = cout * kh          # fused (cout, kh) batch dim of the in-kernel matmul
    c1 = cin + 1           # +1 channel carries the bias (ones column in x)
    out_h = h * kh         # un-cropped output height
    out_w = wdt * kw       # un-cropped output width

    # ---- host-side layout prep: all operands are KB-sized (no big HBM pass) ----
    x_nhwc = jnp.transpose(x, (0, 2, 3, 1))                               # (N,H,W,Cin)
    x_aug = jnp.concatenate(
        [x_nhwc, jnp.ones((n, h, wdt, 1), x.dtype)], axis=-1)             # (N,H,W,Cin+1)

    w_t = jnp.transpose(w, (1, 2, 0, 3)).reshape(p, cin, kw)              # (P,Cin,KW)
    b_t = jnp.broadcast_to(b[:, None, None, None],
                           (cout, kh, 1, kw)).reshape(p, 1, kw)           # (P,1,KW)
    w_aug = jnp.concatenate([w_t, b_t], axis=1)                           # (P,Cin+1,KW)

    def kernel(x_ref, w_ref, o_ref):
        # x_ref: (W, Cin+1)   w_ref: (P, Cin+1, KW)   o_ref: (Cout, KH, W, KW)
        x_t = x_ref[...]
        xb = jnp.broadcast_to(x_t[None], (p, wdt, c1))          # (P, W, Cin+1)
        acc = lax.dot_general(
            xb, w_ref[...],
            dimension_numbers=(((2,), (1,)), ((0,), (0,))),     # batched matmul
            preferred_element_type=jnp.float32)                 # (P, W, KW)
        # leading-dim split P -> (Cout, KH) is layout-free (last two dims untouched)
        o_ref[...] = jax.nn.sigmoid(acc).reshape(cout, kh, wdt, kw)

    out_elems = n * cout * out_h * wdt * kw
    cost = pl.CostEstimate(
        flops=2 * n * h * wdt * c1 * p * kw,
        transcendentals=n * h * wdt * p * kw,
        bytes_accessed=out_elems * 4 + x_aug.size * 4 + w_aug.size * 4,
    )

    y5 = pl.pallas_call(
        kernel,
        out_shape=jax.ShapeDtypeStruct((n, cout, out_h, wdt, kw), jnp.float32),
        grid=(n, h),
        in_specs=[
            # one input row of pixels per step; (W, Cin+1) equals full trailing dims
            pl.BlockSpec((None, None, wdt, c1), lambda ni, hi: (ni, hi, 0, 0)),
            # weights (+bias) stay resident in VMEM across the whole grid
            pl.BlockSpec((p, c1, kw), lambda ni, hi: (0, 0, 0)),
        ],
        # each step writes KH consecutive output rows of the final layout
        out_specs=pl.BlockSpec((None, cout, kh, wdt, kw),
                               lambda ni, hi: (ni, 0, hi, 0, 0)),
        compiler_params=pltpu.CompilerParams(
            dimension_semantics=("parallel", "parallel"),
            vmem_limit_bytes=32 * 1024 * 1024,
        ),
        cost_estimate=cost,
    )(x_aug, w_aug)

    # free reshape (merges the adjacent W and KW dims), then the only remaining
    # real pass over the data: the `padding` crop.
    y = y5.reshape(n, cout, out_h, out_w)
    y = y[:, :, ph:out_h - ph, pw:out_w - pw]
    return y


def reference(x, w, b, stride, padding):
    # pure-JAX reference for ConvTranspose2d + sigmoid
    cin, cout, kh, kw = w.shape
    ph, pw = padding
    w_rot = jnp.flip(jnp.transpose(w, (1, 0, 2, 3)), axis=(2, 3))  # (Cout,Cin,KH,KW)
    y = lax.conv_general_dilated(
        x, w_rot,
        window_strides=(1, 1),
        padding=[(kh - 1 - ph, kh - 1 - ph), (kw - 1 - pw, kw - 1 - pw)],
        lhs_dilation=stride,
        rhs_dilation=(1, 1),
        dimension_numbers=("NCHW", "OIHW", "NCHW"),
    )
    return jax.nn.sigmoid(y + b[None, :, None, None])


if __name__ == "__main__":
    key = jax.random.PRNGKey(0)
    kx, kwt, kb = jax.random.split(key, 3)

    # small shapes consistent with the module (original x1 was (1, 6, 55, 81))
    N, Cin, H, W = 1, 6, 8, 5
    Cout, KH, KW = 24, 4, 66
    stride, padding = (4, 66), (3, 65)

    x = jax.random.normal(kx, (N, Cin, H, W), jnp.float32)
    bound = 1.0 / (Cin * KH * KW) ** 0.5
    w = jax.random.uniform(kwt, (Cin, Cout, KH, KW), jnp.float32, -bound, bound)
    b = jax.random.uniform(kb, (Cout,), jnp.float32, -bound, bound)

    y = conv_transpose2d_sigmoid(x, w, b, stride=stride, padding=padding)
    y = jax.block_until_ready(y)

    h_out = (H - 1) * stride[0] - 2 * padding[0] + KH
    w_out = (W - 1) * stride[1] - 2 * padding[1] + KW
    assert y.shape == (N, Cout, h_out, w_out), y.shape

    y_ref = reference(x, w, b, stride, padding)
    assert jnp.allclose(y, y_ref, atol=1e-5, rtol=1e-5), "mismatch vs reference"

    print("KERNEL_OK")
</pallas_src>

<mosaic_0001>
module attributes {stable_mosaic.version = 11 : i64} {
  func.func @kernel(%arg0: i32, %arg1: i32, %arg2: memref<1x1x5x7xf32, #tpu.memory_space<vmem>>, %arg3: memref<96x7x66xf32, #tpu.memory_space<vmem>>, %arg4: memref<1x24x4x5x66xf32, #tpu.memory_space<vmem>>) attributes {dimension_semantics = [#tpu.dimension_semantics<parallel>, #tpu.dimension_semantics<parallel>], iteration_bounds = array<i64: 1, 8>, scalar_prefetch = 0 : i64, scratch_operands = 0 : i64, tpu.core_type = #tpu.core_type<tc>, window_params = [{transform_indices = @transform_0, window_bounds = array<i64: 1, 1, 5, 7>}, {pipeline_mode = #tpu.pipeline_mode<synchronous>, transform_indices = @transform_1, window_bounds = array<i64: 96, 7, 66>}, {transform_indices = @transform_2, window_bounds = array<i64: 1, 24, 4, 5, 66>}]} {
    %c0 = arith.constant 0 : index
    %c0_0 = arith.constant 0 : index
    %c0_1 = arith.constant 0 : index
    %c0_2 = arith.constant 0 : index
    %0 = vector.load %arg2[%c0, %c0_0, %c0_1, %c0_2] : memref<1x1x5x7xf32, #tpu.memory_space<vmem>>, vector<1x1x5x7xf32>
    %1 = vector.shape_cast %0 : vector<1x1x5x7xf32> to vector<5x7xf32>
    %2 = vector.shape_cast %1 : vector<5x7xf32> to vector<1x5x7xf32>
    %3 = vector.shape_cast %2 : vector<1x5x7xf32> to vector<1x5x7xf32>
    %4 = vector.broadcast %3 : vector<1x5x7xf32> to vector<96x5x7xf32>
    %c0_3 = arith.constant 0 : index
    %c0_4 = arith.constant 0 : index
    %c0_5 = arith.constant 0 : index
    %5 = vector.load %arg3[%c0_3, %c0_4, %c0_5] : memref<96x7x66xf32, #tpu.memory_space<vmem>>, vector<96x7x66xf32>
    %cst = arith.constant dense<0.000000e+00> : vector<96x5x66xf32>
    %6 = tpu.matmul %4, %5, %cst {dimension_numbers = #tpu.dot_dimension_numbers<[2], [1], [1], [2], [0, 0, 0, 1, 1, 2], [0], [0]>} : vector<96x5x7xf32>, vector<96x7x66xf32>, vector<96x5x66xf32> -> vector<96x5x66xf32>
    %7 = arith.negf %6 : vector<96x5x66xf32>
    %8 = math.exp %7 : vector<96x5x66xf32>
    %cst_6 = arith.constant 1.000000e+00 : f32
    %9 = vector.broadcast %cst_6 : f32 to vector<96x5x66xf32>
    %10 = arith.addf %9, %8 : vector<96x5x66xf32>
    %11 = arith.divf %9, %10 : vector<96x5x66xf32>
    %12 = vector.shape_cast %11 : vector<96x5x66xf32> to vector<24x4x5x66xf32>
    %c0_7 = arith.constant 0 : index
    %c0_8 = arith.constant 0 : index
    %c0_9 = arith.constant 0 : index
    %c0_10 = arith.constant 0 : index
    %c0_11 = arith.constant 0 : index
    %13 = vector.load %arg4[%c0_7, %c0_8, %c0_9, %c0_10, %c0_11] : memref<1x24x4x5x66xf32, #tpu.memory_space<vmem>>, vector<1x24x4x5x66xf32>
    %14 = vector.shape_cast %13 : vector<1x24x4x5x66xf32> to vector<24x4x5x66xf32>
    %15 = vector.shape_cast %12 : vector<24x4x5x66xf32> to vector<1x24x4x5x66xf32>
    tpu.vector_store %arg4[%c0_7, %c0_8, %c0_9, %c0_10, %c0_11], %15 {strides = array<i32>} : memref<1x24x4x5x66xf32, #tpu.memory_space<vmem>>, vector<1x24x4x5x66xf32>,
    return
  }
  func.func @transform_0(%arg0: i32, %arg1: i32) -> (i32, i32, i32, i32) {
    %c0_i32 = arith.constant 0 : i32
    %c0_i32_0 = arith.constant 0 : i32
    %c0_i32_1 = arith.constant 0 : i32
    return %arg0, %arg1, %c0_i32, %c0_i32_0 : i32, i32, i32, i32
  }
  func.func @transform_1(%arg0: i32, %arg1: i32) -> (i32, i32, i32) {
    %c0_i32 = arith.constant 0 : i32
    %c0_i32_0 = arith.constant 0 : i32
    %c0_i32_1 = arith.constant 0 : i32
    %c0_i32_2 = arith.constant 0 : i32
    return %c0_i32, %c0_i32_0, %c0_i32_1 : i32, i32, i32
  }
  func.func @transform_2(%arg0: i32, %arg1: i32) -> (i32, i32, i32, i32, i32) {
    %c0_i32 = arith.constant 0 : i32
    %c0_i32_0 = arith.constant 0 : i32
    %c0_i32_1 = arith.constant 0 : i32
    %c0_i32_2 = arith.constant 0 : i32
    return %arg0, %c0_i32, %arg1, %c0_i32_0, %c0_i32_1 : i32, i32, i32, i32, i32
  }
}

</mosaic_0001>

<bundles_post_ra>
// kernel: tpu_custom_call.1
= control target key start
LH: loop header
LB: loop body
LE: loop exit
PB: predicated region body
PF: predicated region fallthrough
CT: control target
= control target key end

     0   :  { %s5668_s9 = smov 0   ;;  %s5670_s10 = smov 0   ;;  %s8247_s0 = inlined_call_operand.vmem [shape: f32[1,8,5,7], index: 0, kind: input, shape index: {}]   ;;  %s8248_s1 = inlined_call_operand.vmem [shape: f32[96,7,66], index: 1, kind: input, shape index: {}]   ;;  %s8249_s2 = inlined_call_operand.vmem [shape: f32[1,24,32,5,66], index: 2, kind: output, shape index: {}]  }
   0x1   :  { %s5672_s11 = smov 0   ;;  %s5674_s12 = smov 0  }
   0x2   :  { %s5676_s13 = smov 0  }
   0x3 LB: > { %s4888_s14 = sadd.s32 4294967295, %s5651_s13   ;;  %s21_s15 = sadd.s32 1, %s5647_s12  ;;  %s5651_s13 = sphi %s5676_s13, %s12_s13   ;;  %s5647_s12 = sphi %s5674_s12, %s8432_s12   ;;  %s5643_s11 = sphi %s5672_s11, %s8431_s11   ;;  %s5639_s10 = sphi %s5670_s10, %s8430_s10   ;;  %s5635_s9 = sphi %s5668_s9, %s8429_s9  }
   0x4   : > { %p22_p0 = scmp.ge.s32.totalorder %s21_s15, 8  ;;  %s82_s16 = sadd.s32 1, %s5639_s10 }
   0x5   : > { %p92_p1 = scmp.ne.s32.totalorder %s5639_s10, %s5635_s9  ;;  %p93_p2 = scmp.eq.s32.totalorder %s4888_s14, 7 }
   0x6   : > { %s8434_s15 = smov (%p22_p0, %s21_s15), 0  ;;  %p4892_p4 = scmp.ge.s32.totalorder %s5651_s13, 1 }
   0x7   : > { %p5700_p3 = por %p93_p2, %p92_p1  ;;  %s78_s18 = ssub.s32 %s5647_s12, %s8434_s15 }
   0x8   : > { %p131_p5 = scmp.lt.s32.totalorder %s5651_s13, 9  ;;  %p80_p6 = scmp.eq.s32.totalorder %s78_s18, 0 }
   0xa   : > { %p132_p7 = pnand %p4892_p4, %p131_p5 }
   0xb   : > { %s5709_s19 = scalar_select %p80_p6, %s5639_s10, %s82_s16  }
   0xc   : > { %135 = sbr.rel (%p132_p7) target bundleno = 628 (0x274), region = 28  ;;  %p157_p8 = scmp.lt.s32.totalorder (!%p132_p7), %s5643_s11, 7 }
   0xd   : > { %s152_s4 = sand.u32 (!%p132_p7), 1, %s5635_s9  }
   0xe   : > { %s6228_s9 = smul.u32 (!%p132_p7), 768, %s152_s4 }
  0x11   : > { %v165_v0 = vld [vmem:[%s8248_s1] sm:$0x7f]  ;;  %vm265_vm0 = vcmask 1046528   ;;  %v166_v1 = vld [vmem:[%s8248_s1 + $0x8] sm:$0x7f]  ;;  %s158_s28 = scalar_select %p157_p8, %s5643_s11, 7 }
  0x12   : > { %4894 = vmatpush.msk.msra.mxu0 %vm265_vm0, %v165_v0  ;;  %4896 = vmatpush.msk.msra.mxu1 %vm265_vm0, %v166_v1  ;;  %v167_v2 = vld [vmem:[%s8248_s1 + $0x10] sm:$0x7f]  ;;  %v168_v3 = vld [vmem:[%s8248_s1 + $0x18] sm:$0x7f]  ;;  %v169_v6 = vld [vmem:[%s8248_s1 + $0x20] sm:$0x7f] }
  0x13   : > { %4898 = vmatpush.msk.msra.mxu2 %vm265_vm0, %v167_v2  ;;  %4900 = vmatpush.msk.msra.mxu3 %vm265_vm0, %v168_v3  ;;  %v171_v4 = vld [vmem:[%s8248_s1 + $0x30] sm:$0x7f]  ;;  %v172_v5 = vld [vmem:[%s8248_s1 + $0x38] sm:$0x7f]  ;;  %v170_v7 = vld [vmem:[%s8248_s1 + $0x28] sm:$0x7f] }
  0x14   : > { %s4893_s14 = sshll.u32 %s158_s28, 3  ;;  %vm261_vm1 = vcmask 56320   ;;  %4902 = vmatpush.msk.msrb.mxu0 %vm265_vm0, %v169_v6  ;;  %4904 = vmatpush.msk.msrb.mxu1 %vm265_vm0, %v170_v7  ;;  %v175_v9 = vld [vmem:[%s8248_s1 + $0x50] sm:$0x7f]  ;;  %v176_v10 = vld [vmem:[%s8248_s1 + $0x58] sm:$0x7f] }
  0x15   : > { %4906 = vmatpush.msk.msrb.mxu2 %vm265_vm0, %v171_v4  ;;  %4908 = vmatpush.msk.msrb.mxu3 %vm265_vm0, %v172_v5  ;;  %s5748_s20 = scalar_lea.vmem %s8247_s0, %s4893_s14  ;;  %v173_v11 = vld [vmem:[%s8248_s1 + $0x40] sm:$0x7f]  ;;  %v174_v12 = vld [vmem:[%s8248_s1 + $0x48] sm:$0x7f]  ;;  %v179_v13 = vld [vmem:[%s8248_s1 + $0x70] sm:$0x7f] }
  0x16   : > { %v5751_v8 = vld [vmem:[%s5748_s20] sm:$0x1f]  ;;  %v180_v14 = vld [vmem:[%s8248_s1 + $0x78] sm:$0x7f]  ;;  %v178_v16 = vld [vmem:[%s8248_s1 + $0x68] sm:$0x7f] }
  0x17   : > { %4895 = vmatmul.msk.f32.vlgmr.msra.gmra.mxu0 %vm261_vm1, %v5751_v8  ;;  %4897 = vmatmul.msk.f32.vlgmr.msra.gmra.mxu1 %vm261_vm1, %v5751_v8  ;;  %v177_v15 = vld [vmem:[%s8248_s1 + $0x60] sm:$0x7f]  ;;  %v183_v17 = vld [vmem:[%s8248_s1 + $0x90] sm:$0x7f]  ;;  %v184_v18 = vld [vmem:[%s8248_s1 + $0x98] sm:$0x7f] }
  0x18   : > { %4899 = vmatmul.msk.f32.vlgmr.msra.gmra.mxu2 %vm261_vm1, %v5751_v8  ;;  %4901 = vmatmul.msk.f32.vlgmr.msra.gmra.mxu3 %vm261_vm1, %v5751_v8  ;;  %v181_v19 = vld [vmem:[%s8248_s1 + $0x80] sm:$0x7f]  ;;  %v182_v20 = vld [vmem:[%s8248_s1 + $0x88] sm:$0x7f]  ;;  %v187_v21 = vld [vmem:[%s8248_s1 + $0xb0] sm:$0x7f] }
  0x19   : > { %4914 = vmatpush.msk.msra.mxu2 %vm265_vm0, %v175_v9  ;;  %4916 = vmatpush.msk.msra.mxu3 %vm265_vm0, %v176_v10  ;;  %v188_v22 = vld [vmem:[%s8248_s1 + $0xb8] sm:$0x7f]  ;;  %v185_v23 = vld [vmem:[%s8248_s1 + $0xa0] sm:$0x7f]  ;;  %v186_v24 = vld [vmem:[%s8248_s1 + $0xa8] sm:$0x7f] }
  0x1a   : > { %4910 = vmatpush.msk.msra.mxu0 %vm265_vm0, %v173_v11  ;;  %4912 = vmatpush.msk.msra.mxu1 %vm265_vm0, %v174_v12  ;;  %v191_v25 = vld [vmem:[%s8248_s1 + $0xd0] sm:$0x7f]  ;;  %v192_v26 = vld [vmem:[%s8248_s1 + $0xd8] sm:$0x7f]  ;;  %v189_v27 = vld [vmem:[%s8248_s1 + $0xc0] sm:$0x7f] }
  0x1b   : > { %v190_v28 = vld [vmem:[%s8248_s1 + $0xc8] sm:$0x7f]  ;;  %v195_v29 = vld [vmem:[%s8248_s1 + $0xf0] sm:$0x7f]  ;;  %v196_v30 = vld [vmem:[%s8248_s1 + $0xf8] sm:$0x7f] }
  0x1c   : > { %v193_v31 = vld [vmem:[%s8248_s1 + $0xe0] sm:$0x7f]  ;;  %v194_v32 = vld [vmem:[%s8248_s1 + $0xe8] sm:$0x7f]  ;;  %v199_v33 = vld [vmem:[%s8248_s1 + $0x110] sm:$0x7f] }
  0x1d   : > { %v200_v34 = vld [vmem:[%s8248_s1 + $0x118] sm:$0x7f]  ;;  %v197_v35 = vld [vmem:[%s8248_s1 + $0x100] sm:$0x7f]  ;;  %v198_v36 = vld [vmem:[%s8248_s1 + $0x108] sm:$0x7f] }
  0x1e   : > { %v203_v37 = vld [vmem:[%s8248_s1 + $0x130] sm:$0x7f]  ;;  %v204_v38 = vld [vmem:[%s8248_s1 + $0x138] sm:$0x7f]  ;;  %v201_v39 = vld [vmem:[%s8248_s1 + $0x120] sm:$0x7f] }
  0x1f   : > { %4903 = vmatmul.msk.f32.vlgmr.msrb.gmra.mxu0 %vm261_vm1, %v5751_v8  ;;  %4905 = vmatmul.msk.f32.vlgmr.msrb.gmra.mxu1 %vm261_vm1, %v5751_v8  ;;  %v202_v40 = vld [vmem:[%s8248_s1 + $0x128] sm:$0x7f]  ;;  %v207_v41 = vld [vmem:[%s8248_s1 + $0x150] sm:$0x7f]  ;;  %v208_v42 = vld [vmem:[%s8248_s1 + $0x158] sm:$0x7f] }
  0x20   : > { %4907 = vmatmul.msk.f32.vlgmr.msrb.gmra.mxu2 %vm261_vm1, %v5751_v8  ;;  %4909 = vmatmul.msk.f32.vlgmr.msrb.gmra.mxu3 %vm261_vm1, %v5751_v8  ;;  %v205_v43 = vld [vmem:[%s8248_s1 + $0x140] sm:$0x7f]  ;;  %v206_v44 = vld [vmem:[%s8248_s1 + $0x148] sm:$0x7f]  ;;  %v211_v45 = vld [vmem:[%s8248_s1 + $0x170] sm:$0x7f] }
  0x21   : > { %4922 = vmatpush.msk.msrb.mxu2 %vm265_vm0, %v179_v13  ;;  %4924 = vmatpush.msk.msrb.mxu3 %vm265_vm0, %v180_v14  ;;  %v212_v46 = vld [vmem:[%s8248_s1 + $0x178] sm:$0x7f]  ;;  %v209_v47 = vld [vmem:[%s8248_s1 + $0x160] sm:$0x7f]  ;;  %v210_v48 = vld [vmem:[%s8248_s1 + $0x168] sm:$0x7f] }
  0x22   : > { %4918 = vmatpush.msk.msrb.mxu0 %vm265_vm0, %v177_v15  ;;  %4920 = vmatpush.msk.msrb.mxu1 %vm265_vm0, %v178_v16  ;;  %v215_v49 = vld [vmem:[%s8248_s1 + $0x190] sm:$0x7f]  ;;  %v216_v50 = vld [vmem:[%s8248_s1 + $0x198] sm:$0x7f]  ;;  %v213_v51 = vld [vmem:[%s8248_s1 + $0x180] sm:$0x7f] }
  0x23   : > { %v214_v52 = vld [vmem:[%s8248_s1 + $0x188] sm:$0x7f]  ;;  %v219_v53 = vld [vmem:[%s8248_s1 + $0x1b0] sm:$0x7f]  ;;  %v220_v54 = vld [vmem:[%s8248_s1 + $0x1b8] sm:$0x7f] }
  0x24   : > { %v217_v55 = vld [vmem:[%s8248_s1 + $0x1a0] sm:$0x7f]  ;;  %v218_v56 = vld [vmem:[%s8248_s1 + $0x1a8] sm:$0x7f]  ;;  %v223_v57 = vld [vmem:[%s8248_s1 + $0x1d0] sm:$0x7f] }
  0x25   : > { %v224_v58 = vld [vmem:[%s8248_s1 + $0x1d8] sm:$0x7f]  ;;  %v221_v59 = vld [vmem:[%s8248_s1 + $0x1c0] sm:$0x7f]  ;;  %v222_v60 = vld [vmem:[%s8248_s1 + $0x1c8] sm:$0x7f] }
  0x26   : > { %v227_v61 = vld [vmem:[%s8248_s1 + $0x1f0] sm:$0x7f]  ;;  %v228_v62 = vld [vmem:[%s8248_s1 + $0x1f8] sm:$0x7f]  ;;  %v225_v63 = vld [vmem:[%s8248_s1 + $0x1e0] sm:$0x7f] }
  0x27   : > { %4911 = vmatmul.msk.f32.vlgmr.msra.gmra.mxu0 %vm261_vm1, %v5751_v8  ;;  %4913 = vmatmul.msk.f32.vlgmr.msra.gmra.mxu1 %vm261_vm1, %v5751_v8  ;;  %v226_v0 = vld [vmem:[%s8248_s1 + $0x1e8] sm:$0x7f]  ;;  %v231_v1 = vld [vmem:[%s8248_s1 + $0x210] sm:$0x7f]  ;;  %v232_v2 = vld [vmem:[%s8248_s1 + $0x218] sm:$0x7f] }
  0x28   : > { %4915 = vmatmul.msk.f32.vlgmr.msra.gmra.mxu2 %vm261_vm1, %v5751_v8  ;;  %4917 = vmatmul.msk.f32.vlgmr.msra.gmra.mxu3 %vm261_vm1, %v5751_v8  ;;  %v229_v3 = vld [vmem:[%s8248_s1 + $0x200] sm:$0x7f]  ;;  %v230_v4 = vld [vmem:[%s8248_s1 + $0x208] sm:$0x7f]  ;;  %v235_v5 = vld [vmem:[%s8248_s1 + $0x230] sm:$0x7f] }
  0x29   : > { %4930 = vmatpush.msk.msra.mxu2 %vm265_vm0, %v183_v17  ;;  %4932 = vmatpush.msk.msra.mxu3 %vm265_vm0, %v184_v18  ;;  %v236_v6 = vld [vmem:[%s8248_s1 + $0x238] sm:$0x7f]  ;;  %v233_v7 = vld [vmem:[%s8248_s1 + $0x220] sm:$0x7f]  ;;  %v234_v9 = vld [vmem:[%s8248_s1 + $0x228] sm:$0x7f] }
  0x2a   : > { %4926 = vmatpush.msk.msra.mxu0 %vm265_vm0, %v181_v19  ;;  %4928 = vmatpush.msk.msra.mxu1 %vm265_vm0, %v182_v20  ;;  %v239_v14 = vld [vmem:[%s8248_s1 + $0x250] sm:$0x7f]  ;;  %v240_v15 = vld [vmem:[%s8248_s1 + $0x258] sm:$0x7f]  ;;  %v237_v16 = vld [vmem:[%s8248_s1 + $0x240] sm:$0x7f] }
  0x2b   : > { %v238_v17 = vld [vmem:[%s8248_s1 + $0x248] sm:$0x7f]  ;;  %vm4298_vm3 = vcmask 536576   ;;  %s6306_s14 = scalar_lea.vmem [#allocation2], %s6228_s9  ;;  %s5186_s27 = sshll.u32 (%p5700_p3), %s5643_s11, 5 }
  0x2c   : > { %s8040_s30 = scalar_lea.vmem (%p5700_p3), %s8249_s2, %s5186_s27 }
  0x2f   : > { %4919 = vmatmul.msk.f32.vlgmr.msrb.gmra.mxu0 %vm261_vm1, %v5751_v8  ;;  %4921 = vmatmul.msk.f32.vlgmr.msrb.gmra.mxu1 %vm261_vm1, %v5751_v8 }
  0x30   : > { %4923 = vmatmul.msk.f32.vlgmr.msrb.gmra.mxu2 %vm261_vm1, %v5751_v8  ;;  %4925 = vmatmul.msk.f32.vlgmr.msrb.gmra.mxu3 %vm261_vm1, %v5751_v8 }
  0x31   : > { %4938 = vmatpush.msk.msrb.mxu2 %vm265_vm0, %v187_v21  ;;  %4940 = vmatpush.msk.msrb.mxu3 %vm265_vm0, %v188_v22 }
  0x32   : > { %4934 = vmatpush.msk.msrb.mxu0 %vm265_vm0, %v185_v23  ;;  %4936 = vmatpush.msk.msrb.mxu1 %vm265_vm0, %v186_v24 }
  0x37   : > { %4927 = vmatmul.msk.f32.vlgmr.msra.gmra.mxu0 %vm261_vm1, %v5751_v8  ;;  %4929 = vmatmul.msk.f32.vlgmr.msra.gmra.mxu1 %vm261_vm1, %v5751_v8 }
  0x38   : > { %4931 = vmatmul.msk.f32.vlgmr.msra.gmra.mxu2 %vm261_vm1, %v5751_v8  ;;  %4933 = vmatmul.msk.f32.vlgmr.msra.gmra.mxu3 %vm261_vm1, %v5751_v8 }
  0x39   : > { %4946 = vmatpush.msk.msra.mxu2 %vm265_vm0, %v191_v25  ;;  %4948 = vmatpush.msk.msra.mxu3 %vm265_vm0, %v192_v26 }
  0x3a   : > { %4942 = vmatpush.msk.msra.mxu0 %vm265_vm0, %v189_v27  ;;  %4944 = vmatpush.msk.msra.mxu1 %vm265_vm0, %v190_v28 }
  0x3f   : > { %4935 = vmatmul.msk.f32.vlgmr.msrb.gmra.mxu0 %vm261_vm1, %v5751_v8  ;;  %4937 = vmatmul.msk.f32.vlgmr.msrb.gmra.mxu1 %vm261_vm1, %v5751_v8 }
  0x40   : > { %4939 = vmatmul.msk.f32.vlgmr.msrb.gmra.mxu2 %vm261_vm1, %v5751_v8  ;;  %4941 = vmatmul.msk.f32.vlgmr.msrb.gmra.mxu3 %vm261_vm1, %v5751_v8 }
  0x41   : > { %4954 = vmatpush.msk.msrb.mxu2 %vm265_vm0, %v195_v29  ;;  %4956 = vmatpush.msk.msrb.mxu3 %vm265_vm0, %v196_v30  ;;  %v243_v30 = vld [vmem:[%s8248_s1 + $0x270] sm:$0x7f] }
  0x42   : > { %4950 = vmatpush.msk.msrb.mxu0 %vm265_vm0, %v193_v31  ;;  %4952 = vmatpush.msk.msrb.mxu1 %vm265_vm0, %v194_v32  ;;  %v244_v31 = vld [vmem:[%s8248_s1 + $0x278] sm:$0x7f] }
  0x47   : > { %4943 = vmatmul.msk.f32.vlgmr.msra.gmra.mxu0 %vm261_vm1, %v5751_v8  ;;  %4945 = vmatmul.msk.f32.vlgmr.msra.gmra.mxu1 %vm261_vm1, %v5751_v8 }
  0x48   : > { %4947 = vmatmul.msk.f32.vlgmr.msra.gmra.mxu2 %vm261_vm1, %v5751_v8  ;;  %4949 = vmatmul.msk.f32.vlgmr.msra.gmra.mxu3 %vm261_vm1, %v5751_v8 }
  0x49   : > { %4962 = vmatpush.msk.msra.mxu2 %vm265_vm0, %v199_v33  ;;  %4964 = vmatpush.msk.msra.mxu3 %vm265_vm0, %v200_v34 }
  0x4a   : > { %4958 = vmatpush.msk.msra.mxu0 %vm265_vm0, %v197_v35  ;;  %4960 = vmatpush.msk.msra.mxu1 %vm265_vm0, %v198_v36 }
  0x4f   : > { %4951 = vmatmul.msk.f32.vlgmr.msrb.gmra.mxu0 %vm261_vm1, %v5751_v8  ;;  %4953 = vmatmul.msk.f32.vlgmr.msrb.gmra.mxu1 %vm261_vm1, %v5751_v8 }
  0x50   : > { %4955 = vmatmul.msk.f32.vlgmr.msrb.gmra.mxu2 %vm261_vm1, %v5751_v8  ;;  %4957 = vmatmul.msk.f32.vlgmr.msrb.gmra.mxu3 %vm261_vm1, %v5751_v8 }
  0x51   : > { %4970 = vmatpush.msk.msrb.mxu2 %vm265_vm0, %v203_v37  ;;  %4972 = vmatpush.msk.msrb.mxu3 %vm265_vm0, %v204_v38  ;;  %v241_v37 = vld [vmem:[%s8248_s1 + $0x260] sm:$0x7f] }
  0x52   : > { %4966 = vmatpush.msk.msrb.mxu0 %vm265_vm0, %v201_v39  ;;  %4968 = vmatpush.msk.msrb.mxu1 %vm265_vm0, %v202_v40 }
  0x57   : > { %4959 = vmatmul.msk.f32.vlgmr.msra.gmra.mxu0 %vm261_vm1, %v5751_v8  ;;  %4961 = vmatmul.msk.f32.vlgmr.msra.gmra.mxu1 %vm261_vm1, %v5751_v8 }
  0x58   : > { %4963 = vmatmul.msk.f32.vlgmr.msra.gmra.mxu2 %vm261_vm1, %v5751_v8  ;;  %4965 = vmatmul.msk.f32.vlgmr.msra.gmra.mxu3 %vm261_vm1, %v5751_v8 }
  0x59   : > { %4978 = vmatpush.msk.msra.mxu2 %vm265_vm0, %v207_v41  ;;  %4980 = vmatpush.msk.msra.mxu3 %vm265_vm0, %v208_v42 }
  0x5a   : > { %4974 = vmatpush.msk.msra.mxu0 %vm265_vm0, %v205_v43  ;;  %4976 = vmatpush.msk.msra.mxu1 %vm265_vm0, %v206_v44 }
  0x5f   : > { %4967 = vmatmul.msk.f32.vlgmr.msrb.gmra.mxu0 %vm261_vm1, %v5751_v8  ;;  %4969 = vmatmul.msk.f32.vlgmr.msrb.gmra.mxu1 %vm261_vm1, %v5751_v8 }
  0x60   : > { %4971 = vmatmul.msk.f32.vlgmr.msrb.gmra.mxu2 %vm261_vm1, %v5751_v8  ;;  %4973 = vmatmul.msk.f32.vlgmr.msrb.gmra.mxu3 %vm261_vm1, %v5751_v8 }
  0x61   : > { %4986 = vmatpush.msk.msrb.mxu2 %vm265_vm0, %v211_v45  ;;  %4988 = vmatpush.msk.msrb.mxu3 %vm265_vm0, %v212_v46  ;;  %v242_v45 = vld [vmem:[%s8248_s1 + $0x268] sm:$0x7f] }
  0x62   : > { %4982 = vmatpush.msk.msrb.mxu0 %vm265_vm0, %v209_v47  ;;  %4984 = vmatpush.msk.msrb.mxu1 %vm265_vm0, %v210_v48  ;;  %v245_v48 = vld [vmem:[%s8248_s1 + $0x280] sm:$0x7f] }
  0x67   : > { %4975 = vmatmul.msk.f32.vlgmr.msra.gmra.mxu0 %vm261_vm1, %v5751_v8  ;;  %4977 = vmatmul.msk.f32.vlgmr.msra.gmra.mxu1 %vm261_vm1, %v5751_v8 }
  0x68   : > { %4979 = vmatmul.msk.f32.vlgmr.msra.gmra.mxu2 %vm261_vm1, %v5751_v8  ;;  %4981 = vmatmul.msk.f32.vlgmr.msra.gmra.mxu3 %vm261_vm1, %v5751_v8 }
  0x69   : > { %4994 = vmatpush.msk.msra.mxu2 %vm265_vm0, %v215_v49  ;;  %4996 = vmatpush.msk.msra.mxu3 %vm265_vm0, %v216_v50 }
  0x6a   : > { %4990 = vmatpush.msk.msra.mxu0 %vm265_vm0, %v213_v51  ;;  %4992 = vmatpush.msk.msra.mxu1 %vm265_vm0, %v214_v52 }
  0x6f   : > { %4983 = vmatmul.msk.f32.vlgmr.msrb.gmra.mxu0 %vm261_vm1, %v5751_v8  ;;  %4985 = vmatmul.msk.f32.vlgmr.msrb.gmra.mxu1 %vm261_vm1, %v5751_v8 }
  0x70   : > { %4987 = vmatmul.msk.f32.vlgmr.msrb.gmra.mxu2 %vm261_vm1, %v5751_v8  ;;  %4989 = vmatmul.msk.f32.vlgmr.msrb.gmra.mxu3 %vm261_vm1, %v5751_v8 }
  0x71   : > { %5002 = vmatpush.msk.msrb.mxu2 %vm265_vm0, %v219_v53  ;;  %5004 = vmatpush.msk.msrb.mxu3 %vm265_vm0, %v220_v54 }
  0x72   : > { %4998 = vmatpush.msk.msrb.mxu0 %vm265_vm0, %v217_v55  ;;  %5000 = vmatpush.msk.msrb.mxu1 %vm265_vm0, %v218_v56 }
  0x77   : > { %4991 = vmatmul.msk.f32.vlgmr.msra.gmra.mxu0 %vm261_vm1, %v5751_v8  ;;  %4993 = vmatmul.msk.f32.vlgmr.msra.gmra.mxu1 %vm261_vm1, %v5751_v8 }
  0x78   : > { %4995 = vmatmul.msk.f32.vlgmr.msra.gmra.mxu2 %vm261_vm1, %v5751_v8  ;;  %4997 = vmatmul.msk.f32.vlgmr.msra.gmra.mxu3 %vm261_vm1, %v5751_v8 }
  0x79   : > { %5010 = vmatpush.msk.msra.mxu2 %vm265_vm0, %v223_v57  ;;  %5012 = vmatpush.msk.msra.mxu3 %vm265_vm0, %v224_v58 }
  0x7a   : > { %5006 = vmatpush.msk.msra.mxu0 %vm265_vm0, %v221_v59  ;;  %5008 = vmatpush.msk.msra.mxu1 %vm265_vm0, %v222_v60 }
  0x7f   : > { %4999 = vmatmul.msk.f32.vlgmr.msrb.gmra.mxu0 %vm261_vm1, %v5751_v8  ;;  %5001 = vmatmul.msk.f32.vlgmr.msrb.gmra.mxu1 %vm261_vm1, %v5751_v8 }
  0x80   : > { %5003 = vmatmul.msk.f32.vlgmr.msrb.gmra.mxu2 %vm261_vm1, %v5751_v8  ;;  %5005 = vmatmul.msk.f32.vlgmr.msrb.gmra.mxu3 %vm261_vm1, %v5751_v8 }
  0x81   : > { %5018 = vmatpush.msk.msrb.mxu2 %vm265_vm0, %v227_v61  ;;  %5020 = vmatpush.msk.msrb.mxu3 %vm265_vm0, %v228_v62 }
  0x82   : > { %5014 = vmatpush.msk.msrb.mxu0 %vm265_vm0, %v225_v63  ;;  %5016 = vmatpush.msk.msrb.mxu1 %vm265_vm0, %v226_v0 }
  0x87   : > { %5007 = vmatmul.msk.f32.vlgmr.msra.gmra.mxu0 %vm261_vm1, %v5751_v8  ;;  %5009 = vmatmul.msk.f32.vlgmr.msra.gmra.mxu1 %vm261_vm1, %v5751_v8 }
  0x88   : > { %5011 = vmatmul.msk.f32.vlgmr.msra.gmra.mxu2 %vm261_vm1, %v5751_v8  ;;  %5013 = vmatmul.msk.f32.vlgmr.msra.gmra.mxu3 %vm261_vm1, %v5751_v8 }
  0x89   : > { %5026 = vmatpush.msk.msra.mxu2 %vm265_vm0, %v231_v1  ;;  %5028 = vmatpush.msk.msra.mxu3 %vm265_vm0, %v232_v2 }
  0x8a   : > { %5022 = vmatpush.msk.msra.mxu0 %vm265_vm0, %v229_v3  ;;  %5024 = vmatpush.msk.msra.mxu1 %vm265_vm0, %v230_v4  ;;  %v247_v4 = vld [vmem:[%s8248_s1 + $0x290] sm:$0x7f] }
  0x8f   : > { %5015 = vmatmul.msk.f32.vlgmr.msrb.gmra.mxu0 %vm261_vm1, %v5751_v8  ;;  %5017 = vmatmul.msk.f32.vlgmr.msrb.gmra.mxu1 %vm261_vm1, %v5751_v8 }
  0x90   : > { %5019 = vmatmul.msk.f32.vlgmr.msrb.gmra.mxu2 %vm261_vm1, %v5751_v8  ;;  %5021 = vmatmul.msk.f32.vlgmr.msrb.gmra.mxu3 %vm261_vm1, %v5751_v8 }
  0x91   : > { %5034 = vmatpush.msk.msrb.mxu2 %vm265_vm0, %v235_v5  ;;  %5036 = vmatpush.msk.msrb.mxu3 %vm265_vm0, %v236_v6 }
  0x92   : > { %5030 = vmatpush.msk.msrb.mxu0 %vm265_vm0, %v233_v7  ;;  %5032 = vmatpush.msk.msrb.mxu1 %vm265_vm0, %v234_v9 }
  0x94   : > { %v286_v10 = vpop.f32.mrf.mxu0  ;;  %v309_v11 = vpop.f32.mrf.mxu1 }
  0x95   : > { %v5086_v12 = vmul.f32 -1.442695, %v286_v10  ;;  %v5087_v13 = vmul.f32 -1.442695, %v309_v11  ;;  %v248_v10 = vld [vmem:[%s8248_s1 + $0x298] sm:$0x7f] }
  0x97   : > { %5228 = vpow2.f32 %v5086_v12  ;;  %5023 = vmatmul.msk.f32.vlgmr.msra.gmra.mxu0 %vm261_vm1, %v5751_v8  ;;  %5025 = vmatmul.msk.f32.vlgmr.msra.gmra.mxu1 %vm261_vm1, %v5751_v8 }
  0x98   : > { %5230 = vpow2.f32 %v5087_v13  ;;  %5027 = vmatmul.msk.f32.vlgmr.msra.gmra.mxu2 %vm261_vm1, %v5751_v8  ;;  %5029 = vmatmul.msk.f32.vlgmr.msra.gmra.mxu3 %vm261_vm1, %v5751_v8 }
  0x99   : > { %5042 = vmatpush.msk.msra.mxu2 %vm265_vm0, %v239_v14  ;;  %5044 = vmatpush.msk.msra.mxu3 %vm265_vm0, %v240_v15 }
  0x9a   : > { %5038 = vmatpush.msk.msra.mxu0 %vm265_vm0, %v237_v16  ;;  %5040 = vmatpush.msk.msra.mxu1 %vm265_vm0, %v238_v17 }
  0x9b   : > { %v332_v18 = vpop.f32.mrf.mxu2  ;;  %v355_v19 = vpop.f32.mrf.mxu3 }
  0x9c   : > { %v5088_v20 = vmul.f32 -1.442695, %v332_v18  ;;  %v5089_v21 = vmul.f32 -1.442695, %v355_v19  ;;  %v378_v22 = vpop.f32.mrf.mxu0  ;;  %v401_v23 = vpop.f32.mrf.mxu1 }
  0x9d   : > { %v5229_v24 = vpop.eup %5228  ;;  %v5090_v27 = vmul.f32 -1.442695, %v378_v22  ;;  %v5091_v29 = vmul.f32 -1.442695, %v401_v23 }
  0x9e   : > { %v5231_v25 = vpop.eup %5230  ;;  %v6161_v26 = vadd.f32 1.0, %v5229_v24  ;;  %5232 = vpow2.f32 %v5088_v20 }
  0x9f   : > { %v6163_v28 = vadd.f32 1.0, %v5231_v25  ;;  %5234 = vpow2.f32 %v5089_v21  ;;  %5031 = vmatmul.msk.f32.vlgmr.msrb.gmra.mxu0 %vm261_vm1, %v5751_v8  ;;  %5033 = vmatmul.msk.f32.vlgmr.msrb.gmra.mxu1 %vm261_vm1, %v5751_v8 }
  0xa0   : > { %5236 = vrcp.f32 %v6161_v26  ;;  %5035 = vmatmul.msk.f32.vlgmr.msrb.gmra.mxu2 %vm261_vm1, %v5751_v8  ;;  %5037 = vmatmul.msk.f32.vlgmr.msrb.gmra.mxu3 %vm261_vm1, %v5751_v8  ;;  %v2867_v32 = vand.u32 2147483647, %v6161_v26  ;;  %v2869_v35 = vand.u32 2147483648, %v6161_v26  ;;  %vm2863_vm2 = vweird.f32 %v6161_v26 }
  0xa1   : > { %5238 = vrcp.f32 %v6163_v28  ;;  %5050 = vmatpush.msk.msrb.mxu2 %vm265_vm0, %v243_v30  ;;  %5052 = vmatpush.msk.msrb.mxu3 %vm265_vm0, %v244_v31  ;;  %v2882_v39 = vand.u32 2147483647, %v6163_v28  ;;  %v2884_v40 = vand.u32 2147483648, %v6163_v28  ;;  %vm2878_vm5 = vweird.f32 %v6163_v28 }
  0xa2   : > { %5240 = vpow2.f32 %v5090_v27  ;;  %5046 = vmatpush.msk.msrb.mxu0 %vm265_vm0, %v241_v37  ;;  %vm6206_vm4 = vcmp.eq.f32.partialorder %v2867_v32, 8.507059e+37  ;;  %v2870_v50 = vor.u32 1.1754944e-38, %v2869_v35  ;;  %5048 = vmatpush.msk.msrb.mxu1 %vm265_vm0, %v242_v45 }
  0xa3   : > { %5242 = vpow2.f32 %v5091_v29  ;;  %v424_v33 = vpop.f32.mrf.mxu2  ;;  %v447_v42 = vpop.f32.mrf.mxu3  ;;  %vm6222_vm6 = vcmp.eq.f32.partialorder %v2882_v39, 8.507059e+37  ;;  %v2885_v56 = vor.u32 1.1754944e-38, %v2884_v40 }
  0xa4   : > { %v5233_v34 = vpop.eup %5232  ;;  %v5092_v36 = vmul.f32 -1.442695, %v424_v33  ;;  %v5093_v52 = vmul.f32 -1.442695, %v447_v42  ;;  %v470_v60 = vpop.f32.mrf.mxu0 }
  0xa5   : > { %v5235_v38 = vpop.eup %5234  ;;  %v6190_v41 = vadd.f32 1.0, %v5233_v34  ;;  %v493_v61 = vpop.f32.mrf.mxu1  ;;  %v5094_v7 = vmul.f32 -1.442695, %v470_v60 }
  0xa6   : > { %v6193_v43 = vpop.eup %5236  ;;  %v6196_v44 = vadd.f32 1.0, %v5235_v38  ;;  %v6249_v9 = vmul.f32 -1.442695, %v493_v61 }
  0xa7   : > { %v6201_v46 = vpop.eup %5238  ;;  %v2859_v47 = vmul.f32 %v6193_v43, %v6161_v26  ;;  %5244 = vrcp.f32 %v6190_v41  ;;  %5039 = vmatmul.msk.f32.vlgmr.msra.gmra.mxu0 %vm261_vm1, %v5751_v8  ;;  %5041 = vmatmul.msk.f32.vlgmr.msra.gmra.mxu1 %vm261_vm1, %v5751_v8  ;;  %vm2864_vm7 = vweird.f32 %v6193_v43  ;;  %v2897_v58 = vand.u32 2147483647, %v6190_v41 }
  0xa8   : > { %v5241_v49 = vpop.eup %5240  ;;  %v2874_v51 = vmul.f32 %v6201_v46, %v6163_v28  ;;  %5246 = vpow2.f32 %v5092_v36  ;;  %5043 = vmatmul.msk.f32.vlgmr.msra.gmra.mxu2 %vm261_vm1, %v5751_v8  ;;  %5045 = vmatmul.msk.f32.vlgmr.msra.gmra.mxu3 %vm261_vm1, %v5751_v8  ;;  %v2899_v59 = vand.u32 2147483648, %v6190_v41  ;;  %v2914_v63 = vand.u32 2147483648, %v6196_v44  ;;  %vm6259_vm9 = vmor %vm2863_vm2, %vm2864_vm7 }
  0xa9   : > { %v5243_v53 = vpop.eup %5242  ;;  %v2860_v54 = vsub.f32 1.0, %v2859_v47  ;;  %5248 = vrcp.f32 %v6196_v44  ;;  %v6235_v0 = vadd.f32 1.0, %v5241_v49  ;;  %vm2879_vm8 = vweird.f32 %v6201_v46  ;;  %5058 = vmatpush.msk.msra.mxu2 %vm265_vm0, %v247_v4  ;;  %5060 = vmatpush.msk.msra.mxu3 %vm265_vm0, %v248_v10  ;;  %v246_v49 = vld [vmem:[%s8248_s1 + $0x288] sm:$0x7f] }
  0xaa   : > { %v2875_v57 = vsub.f32 1.0, %v2874_v51  ;;  %v6237_v1 = vadd.f32 1.0, %v5243_v53  ;;  %v2912_v3 = vand.u32 2147483647, %v6196_v44  ;;  %5250 = vpow2.f32 %v5093_v52  ;;  %vm6281_vm12 = vmor %vm2878_vm5, %vm2879_vm8  ;;  %5054 = vmatpush.msk.msra.mxu0 %vm265_vm0, %v245_v48  ;;  %5056 = vmatpush.msk.msra.mxu1 %vm265_vm0, %v246_v49 }
  0xab   : > { %v2861_v62 = vmul.f32 %v6193_v43, %v2860_v54  ;;  %5252 = vrcp.f32 %v6235_v0  ;;  %vm2893_vm10 = vweird.f32 %v6190_v41  ;;  %vm6267_vm11 = vcmp.eq.f32.partialorder %v2897_v58, 8.507059e+37  ;;  %v516_v16 = vpop.f32.mrf.mxu2  ;;  %v539_v54 = vpop.f32.mrf.mxu3 }
  0xac   : > { %v2876_v2 = vmul.f32 %v6201_v46, %v2875_v57  ;;  %v2900_v20 = vor.u32 1.1754944e-38, %v2899_v59  ;;  %v2915_v21 = vor.u32 1.1754944e-38, %v2914_v63  ;;  %5254 = vrcp.f32 %v6237_v1  ;;  %v562_v57 = vpop.f32.mrf.mxu0 }
  0xad   : > { %v6245_v5 = vpop.eup %5244  ;;  %v2862_v6 = vadd.f32 %v6193_v43, %v2861_v62  ;;  %vm6297_vm13 = vcmp.eq.f32.partialorder %v2912_v3, 8.507059e+37  ;;  %vm2908_vm14 = vweird.f32 %v6196_v44  ;;  %v2927_v28 = vand.u32 2147483647, %v6235_v0 }
  0xae   : > { %v5247_v11 = vpop.eup %5246  ;;  %v2877_v13 = vadd.f32 %v6201_v46, %v2876_v2  ;;  %v2889_v14 = vmul.f32 %v6245_v5, %v6190_v41  ;;  %v6314_v29 = vmul.f32 -1.442695, %v516_v16  ;;  %vm2894_vm15 = vweird.f32 %v6245_v5 }
  0xaf   : > { %v6272_v17 = vpop.eup %5248  ;;  %v2866_v18 = vsel %vm6259_vm9, %v6193_v43, %v2862_v6  ;;  %5047 = vmatmul.msk.f32.vlgmr.msrb.gmra.mxu0 %vm261_vm1, %v5751_v8  ;;  %5049 = vmatmul.msk.f32.vlgmr.msrb.gmra.mxu1 %vm261_vm1, %v5751_v8  ;;  %v6320_v33 = vadd.f32 1.0, %v5247_v11  ;;  %v2929_v35 = vand.u32 2147483648, %v6235_v0  ;;  %5256 = vpow2.f32 %v5094_v7  ;;  %vm2895_vm5 = vmor %vm2893_vm10, %vm2894_vm15 }
  0xb0   : > { %v2871_v22 = vsel %vm6206_vm4, %v2870_v50, %v2866_v18  ;;  %v2881_v23 = vsel %vm6281_vm12, %v6201_v46, %v2877_v13  ;;  %v2890_v24 = vsub.f32 1.0, %v2889_v14  ;;  %v2904_v25 = vmul.f32 %v6272_v17, %v6196_v44  ;;  %5051 = vmatmul.msk.f32.vlgmr.msrb.gmra.mxu2 %vm261_vm1, %v5751_v8  ;;  %5053 = vmatmul.msk.f32.vlgmr.msrb.gmra.mxu3 %vm261_vm1, %v5751_v8  ;;  %v5251_v30 = vpop.eup %5250  ;;  %v585_v13 = vpop.f32.mrf.mxu1 }
  0xb1   : > { %4299 = vst.msk [vmem:[%s6306_s14] sm:$0x1f] %vm4298_vm3, %v2871_v22  ;;  %v2886_v27 = vsel %vm6222_vm6, %v2885_v56, %v2881_v23  ;;  %v5253_v34 = vpop.eup %5252  ;;  %vm2909_vm2 = vweird.f32 %v6272_v17  ;;  %vm2923_vm4 = vweird.f32 %v6235_v0  ;;  %v6328_v39 = vadd.f32 1.0, %v5251_v30  ;;  %v251_v23 = vld [vmem:[%s8248_s1 + $0x2b0] sm:$0x7f] }
  0xb2   : > { %4300 = vst.msk [vmem:[%s6306_s14 + $0x8] sm:$0x1f] %vm4298_vm3, %v2886_v27  ;;  %v2891_v31 = vmul.f32 %v6245_v5, %v2890_v24  ;;  %v2905_v32 = vsub.f32 1.0, %v2904_v25  ;;  %v2919_v38 = vmul.f32 %v5253_v34, %v6235_v0  ;;  %v6330_v40 = vpop.eup %5254  ;;  %vm6334_vm6 = vcmp.eq.f32.partialorder %v2927_v28, 8.507059e+37  ;;  %vm6357_vm8 = vmor %vm2908_vm14, %vm2909_vm2  ;;  %v252_v24 = vld [vmem:[%s8248_s1 + $0x2b8] sm:$0x7f]  ;;  %5066 = vmatpush.msk.msrb.mxu2 %vm265_vm0, %v251_v23 }
  0xb3   : > { %vm2938_vm7 = vweird.f32 %v6237_v1  ;;  %v2942_v43 = vand.u32 2147483647, %v6237_v1  ;;  %5258 = vrcp.f32 %v6320_v33  ;;  %v2934_v41 = vmul.f32 %v6330_v40, %v6237_v1  ;;  %v608_v15 = vpop.f32.mrf.mxu2  ;;  %5068 = vmatpush.msk.msrb.mxu3 %vm265_vm0, %v252_v24 }
  0xb4   : > { %v2892_v36 = vadd.f32 %v6245_v5, %v2891_v31  ;;  %v2906_v37 = vmul.f32 %v6272_v17, %v2905_v32  ;;  %v2920_v47 = vsub.f32 1.0, %v2919_v38  ;;  %vm2924_vm9 = vweird.f32 %v5253_v34  ;;  %v631_v31 = vpop.f32.mrf.mxu3 }
  0xb5   : > { %v2944_v52 = vand.u32 2147483648, %v6237_v1  ;;  %v2957_v53 = vand.u32 2147483647, %v6320_v33  ;;  %v2935_v56 = vsub.f32 1.0, %v2934_v41  ;;  %5260 = vrcp.f32 %v6328_v39  ;;  %v5257_v58 = vpop.eup %5256  ;;  %vm2925_vm12 = vmor %vm2923_vm4, %vm2924_vm9 }
  0xb6   : > { %v2896_v45 = vsel %vm2895_vm5, %v6245_v5, %v2892_v36  ;;  %v2907_v46 = vadd.f32 %v6272_v17, %v2906_v37  ;;  %v2921_v55 = vmul.f32 %v5253_v34, %v2920_v47  ;;  %v2930_v60 = vor.u32 1.1754944e-38, %v2929_v35  ;;  %v654_v36 = vpop.f32.mrf.mxu0 }
  0xb7   : > { %v2901_v50 = vsel %vm6267_vm11, %v2900_v20, %v2896_v45  ;;  %5055 = vmatmul.msk.f32.vlgmr.msra.gmra.mxu0 %vm261_vm1, %v5751_v8  ;;  %5057 = vmatmul.msk.f32.vlgmr.msra.gmra.mxu1 %vm261_vm1, %v5751_v8  ;;  %vm2939_vm10 = vweird.f32 %v6330_v40  ;;  %vm6378_vm11 = vcmp.eq.f32.partialorder %v2942_v43, 8.507059e+37  ;;  %v2936_v63 = vmul.f32 %v6330_v40, %v2935_v56 }
  0xb8   : > { %4301 = vst.msk [vmem:[%s6306_s14 + $0x10] sm:$0x1f] %vm4298_vm3, %v2901_v50  ;;  %v2911_v44 = vsel %vm6357_vm8, %v6272_v17, %v2907_v46  ;;  %5059 = vmatmul.msk.f32.vlgmr.msra.gmra.mxu2 %vm261_vm1, %v5751_v8  ;;  %5061 = vmatmul.msk.f32.vlgmr.msra.gmra.mxu3 %vm261_vm1, %v5751_v8  ;;  %v2922_v62 = vadd.f32 %v5253_v34, %v2921_v55  ;;  %v2959_v2 = vand.u32 2147483648, %v6320_v33  ;;  %v6390_v3 = vadd.f32 1.0, %v5257_v58  ;;  %vm2940_vm15 = vmor %vm2938_vm7, %vm2939_vm10  ;;  %v250_v55 = vld [vmem:[%s8248_s1 + $0x2a8] sm:$0x7f] }
  0xb9   : > { %v2916_v59 = vsel %vm6297_vm13, %v2915_v21, %v2911_v44  ;;  %v5259_v4 = vpop.eup %5258  ;;  %v2945_v5 = vor.u32 1.1754944e-38, %v2944_v52  ;;  %vm2953_vm13 = vweird.f32 %v6320_v33  ;;  %5262 = vpow2.f32 %v6249_v9  ;;  %5064 = vmatpush.msk.msrb.mxu1 %vm265_vm0, %v250_v55 }
  0xba   : > { %4302 = vst.msk [vmem:[%s6306_s14 + $0x18] sm:$0x1f] %vm4298_vm3, %v2916_v59  ;;  %v5097_v6 = vmul.f32 -1.442695, %v539_v54  ;;  %v2926_v7 = vsel %vm2925_vm12, %v5253_v34, %v2922_v62  ;;  %v2937_v10 = vadd.f32 %v6330_v40, %v2936_v63  ;;  %v2949_v11 = vmul.f32 %v5259_v4, %v6320_v33  ;;  %v677_v54 = vpop.f32.mrf.mxu1 }
  0xbb   : > { %vm6399_vm14 = vcmp.eq.f32.partialorder %v2957_v53, 8.507059e+37  ;;  %v2931_v0 = vsel %vm6334_vm6, %v2930_v60, %v2926_v7  ;;  %v2972_v9 = vand.u32 2147483647, %v6328_v39  ;;  %v2974_v14 = vand.u32 2147483648, %v6328_v39  ;;  %v6412_v16 = vpop.eup %5260  ;;  %v700_v44 = vpop.f32.mrf.mxu2 }
  0xbc   : > { %5264 = vrcp.f32 %v6390_v3  ;;  %4303 = vst.msk [vmem:[%s6306_s14 + $0x20] sm:$0x1f] %vm4298_vm3, %v2931_v0  ;;  %v2941_v17 = vsel %vm2940_vm15, %v6330_v40, %v2937_v10  ;;  %v2950_v18 = vsub.f32 1.0, %v2949_v11  ;;  %v2960_v19 = vor.u32 1.1754944e-38, %v2959_v2  ;;  %v723_v10 = vpop.f32.mrf.mxu3 }
  0xbd   : > { %v5098_v20 = vmul.f32 -1.442695, %v562_v57  ;;  %v2946_v1 = vsel %vm6378_vm11, %v2945_v5, %v2941_v17  ;;  %v2964_v21 = vmul.f32 %v6412_v16, %v6328_v39  ;;  %5266 = vpow2.f32 %v6314_v29 }
  0xbe   : > { %v5099_v22 = vmul.f32 -1.442695, %v585_v13  ;;  %4304 = vst.msk [vmem:[%s6306_s14 + $0x28] sm:$0x1f] %vm4298_vm3, %v2946_v1  ;;  %v2951_v25 = vmul.f32 %v5259_v4, %v2950_v18  ;;  %vm2954_vm2 = vweird.f32 %v5259_v4  ;;  %vm2968_vm4 = vweird.f32 %v6328_v39  ;;  %v249_v39 = vld [vmem:[%s8248_s1 + $0x2a0] sm:$0x7f] }
  0xbf   : > { %5268 = vpow2.f32 %v5097_v6  ;;  %v5263_v26 = vpop.eup %5262  ;;  %v2965_v27 = vsub.f32 1.0, %v2964_v21  ;;  %vm6433_vm5 = vcmp.eq.f32.partialorder %v2972_v9, 8.507059e+37  ;;  %v2975_v29 = vor.u32 1.1754944e-38, %v2974_v14  ;;  %vm2955_vm6 = vmor %vm2953_vm13, %vm2954_vm2  ;;  %5062 = vmatpush.msk.msrb.mxu0 %vm265_vm0, %v249_v39  ;;  %5065 = vmatmul.msk.f32.vlgmr.msrb.gmra.mxu1 %vm261_vm1, %v5751_v8  ;;  %v255_v21 = vld [vmem:[%s8248_s1 + $0x2d0] sm:$0x7f] }
  0xc0   : > { %v5100_v30 = vmul.f32 -1.442695, %v608_v15  ;;  %5067 = vmatmul.msk.f32.vlgmr.msrb.gmra.mxu2 %vm261_vm1, %v5751_v8  ;;  %5069 = vmatmul.msk.f32.vlgmr.msrb.gmra.mxu3 %vm261_vm1, %v5751_v8  ;;  %v2952_v32 = vadd.f32 %v5259_v4, %v2951_v25  ;;  %v2987_v34 = vand.u32 2147483647, %v6390_v3  ;;  %v6442_v35 = vadd.f32 1.0, %v5263_v26 }
  0xc1   : > { %5270 = vpow2.f32 %v5098_v20  ;;  %v2966_v38 = vmul.f32 %v6412_v16, %v2965_v27  ;;  %vm2969_vm7 = vweird.f32 %v6412_v16  ;;  %v2989_v40 = vand.u32 2147483648, %v6390_v3  ;;  %5063 = vmatmul.msk.f32.vlgmr.msrb.gmra.mxu0 %vm261_vm1, %v5751_v8  ;;  %5074 = vmatpush.msk.msra.mxu2 %vm265_vm0, %v255_v21 }
  0xc2   : > { %v5265_v37 = vpop.eup %5264  ;;  %5272 = vpow2.f32 %v5099_v22  ;;  %v2956_v42 = vsel %vm2955_vm6, %v5259_v4, %v2952_v32  ;;  %v5101_v45 = vmul.f32 -1.442695, %v631_v31  ;;  %v5102_v41 = vmul.f32 -1.442695, %v654_v36  ;;  %vm2970_vm8 = vmor %vm2968_vm4, %vm2969_vm7  ;;  %v256_v22 = vld [vmem:[%s8248_s1 + $0x2d8] sm:$0x7f] }
  0xc3   : > { %v2979_v43 = vmul.f32 %v5265_v37, %v6390_v3  ;;  %5274 = vrcp.f32 %v6442_v35  ;;  %v5267_v46 = vpop.eup %5266  ;;  %v2961_v47 = vsel %vm6399_vm14, %v2960_v19, %v2956_v42  ;;  %v2967_v33 = vadd.f32 %v6412_v16, %v2966_v38  ;;  %5076 = vmatpush.msk.msra.mxu3 %vm265_vm0, %v256_v22  ;;  %v6543_v31 = vld [vmem:[%s5748_s20] sm:$0x1f] }
  0xc4   : > { %5276 = vpow2.f32 %v5100_v30  ;;  %4305 = vst.msk [vmem:[%s6306_s14 + $0x30] sm:$0x1f] %vm4298_vm3, %v2961_v47  ;;  %v3002_v50 = vand.u32 2147483647, %v6442_v35  ;;  %v6460_v51 = vadd.f32 1.0, %v5267_v46  ;;  %vm2983_vm9 = vweird.f32 %v6390_v3 }
  0xc5   : > { %v5269_v48 = vpop.eup %5268  ;;  %v2980_v49 = vsub.f32 1.0, %v2979_v43  ;;  %v2971_v52 = vsel %vm2970_vm8, %v6412_v16, %v2967_v33  ;;  %vm2984_vm10 = vweird.f32 %v5265_v37  ;;  %v3004_v59 = vand.u32 2147483648, %v6442_v35  ;;  %v254_v46 = vld [vmem:[%s8248_s1 + $0x2c8] sm:$0x7f] }
  0xc6   : > { %v6464_v53 = vadd.f32 1.0, %v5269_v48  ;;  %v2976_v57 = vsel %vm6433_vm5, %v2975_v29, %v2971_v52  ;;  %5278 = vrcp.f32 %v6460_v51  ;;  %vm6480_vm11 = vcmp.eq.f32.partialorder %v2987_v34, 8.507059e+37  ;;  %vm2985_vm12 = vmor %vm2983_vm9, %vm2984_vm10  ;;  %5072 = vmatpush.msk.msra.mxu1 %vm265_vm0, %v254_v46  ;;  %v815_v48 = vpop.f32.mrf.mxu3 }
  0xc7   : > { %v5271_v56 = vpop.eup %5270  ;;  %v2981_v58 = vmul.f32 %v5265_v37, %v2980_v49  ;;  %4306 = vst.msk [vmem:[%s6306_s14 + $0x38] sm:$0x1f] %vm4298_vm3, %v2976_v57  ;;  %v2990_v62 = vor.u32 1.1754944e-38, %v2989_v40  ;;  %v6489_v4 = vmul.f32 -1.442695, %v677_v54  ;;  %vm2998_vm13 = vweird.f32 %v6442_v35  ;;  %5073 = vmatmul.msk.f32.vlgmr.msra.gmra.mxu1 %vm261_vm1, %v6543_v31 }
  0xc8   : > { %v5273_v60 = vpop.eup %5272  ;;  %5280 = vrcp.f32 %v6464_v53  ;;  %v6491_v5 = vmul.f32 -1.442695, %v700_v44  ;;  %vm6498_vm14 = vcmp.eq.f32.partialorder %v3002_v50, 8.507059e+37  ;;  %v3005_v11 = vor.u32 1.1754944e-38, %v3004_v59  ;;  %5075 = vmatmul.msk.f32.vlgmr.msra.gmra.mxu2 %vm261_vm1, %v6543_v31  ;;  %5077 = vmatmul.msk.f32.vlgmr.msra.gmra.mxu3 %vm261_vm1, %v6543_v31 }
  0xc9   : > { %v5275_v63 = vpop.eup %5274  ;;  %v2982_v2 = vadd.f32 %v5265_v37, %v2981_v58  ;;  %5282 = vpow2.f32 %v5101_v45  ;;  %v3017_v12 = vand.u32 2147483647, %v6460_v51  ;;  %v6503_v13 = vadd.f32 1.0, %v5271_v56  ;;  %v253_v45 = vld [vmem:[%s8248_s1 + $0x2c0] sm:$0x7f] }
  0xca   : > { %v5277_v6 = vpop.eup %5276  ;;  %v2994_v7 = vmul.f32 %v5275_v63, %v6442_v35  ;;  %5284 = vpow2.f32 %v5102_v41  ;;  %v3019_v9 = vand.u32 2147483648, %v6460_v51  ;;  %v6508_v14 = vadd.f32 1.0, %v5273_v60  ;;  %5070 = vmatpush.msk.msra.mxu0 %vm265_vm0, %v253_v45 }
  0xcb   : > { %v2986_v8 = vsel %vm2985_vm12, %v5265_v37, %v2982_v2  ;;  %v3032_v16 = vand.u32 2147483647, %v6464_v53  ;;  %v3034_v17 = vand.u32 2147483648, %v6464_v53  ;;  %5286 = vrcp.f32 %v6503_v13  ;;  %5071 = vmatmul.msk.f32.vlgmr.msra.gmra.mxu0 %vm261_vm1, %v6543_v31 }
  0xcc   : > { %v2991_v0 = vsel %vm6480_vm11, %v2990_v62, %v2986_v8  ;;  %v2995_v3 = vsub.f32 1.0, %v2994_v7  ;;  %v6510_v15 = vpop.eup %5278  ;;  %v6517_v18 = vadd.f32 1.0, %v5277_v6  ;;  %vm2999_vm15 = vweird.f32 %v5275_v63 }
  0xcd   : > { %4307 = vst.msk [vmem:[%s6306_s14 + $0x40] sm:$0x1f] %vm4298_vm3, %v2991_v0  ;;  %v3009_v1 = vmul.f32 %v6510_v15, %v6460_v51  ;;  %5288 = vrcp.f32 %v6508_v14  ;;  %vm3013_vm2 = vweird.f32 %v6460_v51  ;;  %vm6531_vm4 = vcmp.eq.f32.partialorder %v3017_v12, 8.507059e+37  ;;  %vm3000_vm6 = vmor %vm2998_vm13, %vm2999_vm15 }
  0xce   : > { %v6519_v19 = vpop.eup %5280  ;;  %v2996_v20 = vmul.f32 %v5275_v63, %v2995_v3  ;;  %vm3028_vm5 = vweird.f32 %v6464_v53  ;;  %v3047_v29 = vand.u32 2147483647, %v6503_v13  ;;  %v3049_v30 = vand.u32 2147483648, %v6503_v13  ;;  %v259_v3 = vld [vmem:[%s8248_s1 + $0x2f0] sm:$0x7f] }
  0xcf   : > { %v5283_v23 = vpop.eup %5282  ;;  %v3024_v25 = vmul.f32 %v6519_v19, %v6464_v53  ;;  %v3010_v28 = vsub.f32 1.0, %v3009_v1  ;;  %v3020_v32 = vor.u32 1.1754944e-38, %v3019_v9  ;;  %vm6552_vm7 = vcmp.eq.f32.partialorder %v3032_v16, 8.507059e+37  ;;  %5082 = vmatpush.msk.msrb.mxu2 %vm265_vm0, %v259_v3 }
  0xd0   : > { %v5285_v26 = vpop.eup %5284  ;;  %v2997_v27 = vadd.f32 %v5275_v63, %v2996_v20  ;;  %5290 = vrcp.f32 %v6517_v18  ;;  %vm3014_vm8 = vweird.f32 %v6510_v15  ;;  %v3035_v40 = vor.u32 1.1754944e-38, %v3034_v17  ;;  %v746_v17 = vpop.f32.mrf.mxu0  ;;  %5083 = vmatmul.msk.f32.vlgmr.msrb.gmra.mxu2 %vm261_vm1, %v6543_v31 }
  0xd1   : > { %v3025_v34 = vsub.f32 1.0, %v3024_v25  ;;  %v3011_v38 = vmul.f32 %v6510_v15, %v3010_v28  ;;  %v6559_v42 = vpop.eup %5286  ;;  %vm3029_vm9 = vweird.f32 %v6519_v19  ;;  %vm3043_vm10 = vweird.f32 %v6503_v13  ;;  %vm3015_vm12 = vmor %vm3013_vm2, %vm3014_vm8  ;;  %v769_v28 = vpop.f32.mrf.mxu1 }
  0xd2   : > { %v3001_v37 = vsel %vm3000_vm6, %v5275_v63, %v2997_v27  ;;  %v3039_v41 = vmul.f32 %v6559_v42, %v6503_v13  ;;  %vm6579_vm11 = vcmp.eq.f32.partialorder %v3047_v29, 8.507059e+37  ;;  %v3050_v49 = vor.u32 1.1754944e-38, %v3049_v30  ;;  %vm3030_vm13 = vmor %vm3028_vm5, %vm3029_vm9 }
  0xd3   : > { %v3006_v35 = vsel %vm6498_vm14, %v3005_v11, %v3001_v37  ;;  %v3026_v43 = vmul.f32 %v6519_v19, %v3025_v34  ;;  %v6572_v47 = vpop.eup %5288  ;;  %v3012_v33 = vadd.f32 %v6510_v15, %v3011_v38  ;;  %v3062_v50 = vand.u32 2147483647, %v6508_v14  ;;  %v792_v38 = vpop.f32.mrf.mxu2 }
  0xd4   : > { %4308 = vst.msk [vmem:[%s6306_s14 + $0x48] sm:$0x1f] %vm4298_vm3, %v3006_v35  ;;  %v3054_v54 = vmul.f32 %v6572_v47, %v6508_v14  ;;  %v3064_v44 = vand.u32 2147483648, %v6508_v14  ;;  %v3077_v39 = vand.u32 2147483647, %v6517_v18  ;;  %v3040_v55 = vsub.f32 1.0, %v3039_v41 }
  0xd5   : > { %v3027_v52 = vadd.f32 %v6519_v19, %v3026_v43  ;;  %v3016_v51 = vsel %vm3015_vm12, %v6510_v15, %v3012_v33  ;;  %v6604_v56 = vadd.f32 1.0, %v5283_v23  ;;  %v6606_v57 = vadd.f32 1.0, %v5285_v26 }
  0xd6   : > { %v5291_v58 = vpop.eup %5290  ;;  %v3021_v59 = vsel %vm6531_vm4, %v3020_v32, %v3016_v51  ;;  %v3055_v61 = vsub.f32 1.0, %v3054_v54  ;;  %5292 = vpow2.f32 %v6489_v4  ;;  %v3041_v62 = vmul.f32 %v6559_v42, %v3040_v55  ;;  %v257_v55 = vld [vmem:[%s8248_s1 + $0x2e0] sm:$0x7f] }
  0xd7   : > { %v3031_v60 = vsel %vm3030_vm13, %v6519_v19, %v3027_v52  ;;  %4309 = vst.msk [vmem:[%s6306_s14 + $0x50] sm:$0x1f] %vm4298_vm3, %v3021_v59  ;;  %vm3044_vm14 = vweird.f32 %v6559_v42  ;;  %v3069_v63 = vmul.f32 %v5291_v58, %v6517_v18  ;;  %vm3058_vm15 = vweird.f32 %v6508_v14  ;;  %v260_v19 = vld [vmem:[%s8248_s1 + $0x2f8] sm:$0x7f]  ;;  %5078 = vmatpush.msk.msrb.mxu0 %vm265_vm0, %v257_v55 }
  0xd8   : > { %v3036_v53 = vsel %vm6552_vm7, %v3035_v40, %v3031_v60  ;;  %v3056_v2 = vmul.f32 %v6572_v47, %v3055_v61  ;;  %vm3059_vm2 = vweird.f32 %v6572_v47  ;;  %5294 = vrcp.f32 %v6604_v56  ;;  %vm6630_vm4 = vmor %vm3043_vm10, %vm3044_vm14  ;;  %5084 = vmatpush.msk.msrb.mxu3 %vm265_vm0, %v260_v19  ;;  %v838_v51 = vpop.f32.mrf.mxu0  ;;  %5079 = vmatmul.msk.f32.vlgmr.msrb.gmra.mxu0 %vm261_vm1, %v6543_v31 }
  0xd9   : > { %4310 = vst.msk [vmem:[%s6306_s14 + $0x58] sm:$0x1f] %vm4298_vm3, %v3036_v53  ;;  %v3042_v4 = vadd.f32 %v6559_v42, %v3041_v62  ;;  %v3070_v6 = vsub.f32 1.0, %v3069_v63  ;;  %v3079_v7 = vand.u32 2147483648, %v6517_v18  ;;  %5296 = vrcp.f32 %v6606_v57  ;;  %vm6648_vm7 = vmor %vm3058_vm15, %vm3059_vm2  ;;  %5085 = vmatmul.msk.f32.vlgmr.msrb.gmra.mxu3 %vm261_vm1, %v6543_v31  ;;  %v861_v8 = vpop.f32.mrf.mxu1 }
  0xda   : > { %v3057_v11 = vadd.f32 %v6572_v47, %v3056_v2  ;;  %vm6635_vm5 = vcmp.eq.f32.partialorder %v3062_v50, 8.507059e+37  ;;  %v3065_v0 = vor.u32 1.1754944e-38, %v3064_v44  ;;  %vm3073_vm6 = vweird.f32 %v6517_v18 }
  0xdb   : > { %v3046_v13 = vsel %vm6630_vm4, %v6559_v42, %v3042_v4  ;;  %v3071_v15 = vmul.f32 %v5291_v58, %v3070_v6  ;;  %vm3074_vm8 = vweird.f32 %v5291_v58  ;;  %vm6652_vm9 = vcmp.eq.f32.partialorder %v3077_v39, 8.507059e+37 }
  0xdc   : > { %v5293_v20 = vpop.eup %5292  ;;  %v3051_v14 = vsel %vm6579_vm11, %v3050_v49, %v3046_v13  ;;  %v3061_v1 = vsel %vm6648_vm7, %v6572_v47, %v3057_v11  ;;  %v3092_v21 = vand.u32 2147483647, %v6604_v56  ;;  %5298 = vpow2.f32 %v6491_v5  ;;  %vm3075_vm10 = vmor %vm3073_vm6, %vm3074_vm8 }
  0xdd   : > { %4311 = vst.msk [vmem:[%s6306_s14 + $0x60] sm:$0x1f] %vm4298_vm3, %v3051_v14  ;;  %v3066_v22 = vsel %vm6635_vm5, %v3065_v0, %v3061_v1  ;;  %v3072_v23 = vadd.f32 %v5291_v58, %v3071_v15  ;;  %v3080_v24 = vor.u32 1.1754944e-38, %v3079_v7  ;;  %v6674_v25 = vadd.f32 1.0, %v5293_v20 }
  0xde   : > { %v5295_v26 = vpop.eup %5294  ;;  %4312 = vst.msk [vmem:[%s6306_s14 + $0x68] sm:$0x1f] %vm4298_vm3, %v3066_v22  ;;  %v5105_v5 = vmul.f32 -1.442695, %v723_v10  ;;  %v5106_v27 = vmul.f32 -1.442695, %v746_v17  ;;  %vm3088_vm11 = vweird.f32 %v6604_v56  ;;  %vm3103_vm13 = vweird.f32 %v6606_v57 }
  0xdf   : > { %v5297_v29 = vpop.eup %5296  ;;  %v3076_v30 = vsel %vm3075_vm10, %v5291_v58, %v3072_v23  ;;  %v3084_v32 = vmul.f32 %v5295_v26, %v6604_v56  ;;  %5300 = vrcp.f32 %v6674_v25  ;;  %vm6688_vm12 = vcmp.eq.f32.partialorder %v3092_v21, 8.507059e+37  ;;  %v258_v58 = vld [vmem:[%s8248_s1 + $0x2e8] sm:$0x7f] }
  0xe0   : > { %v3081_v34 = vsel %vm6652_vm9, %v3080_v24, %v3076_v30  ;;  %v3094_v18 = vand.u32 2147483648, %v6604_v56  ;;  %v3099_v37 = vmul.f32 %v5297_v29, %v6606_v57  ;;  %v3107_v42 = vand.u32 2147483647, %v6606_v57  ;;  %5080 = vmatpush.msk.msrb.mxu1 %vm265_vm0, %v258_v58 }
  0xe1   : > { %4313 = vst.msk [vmem:[%s6306_s14 + $0x70] sm:$0x1f] %vm4298_vm3, %v3081_v34  ;;  %v3085_v40 = vsub.f32 1.0, %v3084_v32  ;;  %v3109_v35 = vand.u32 2147483648, %v6606_v57  ;;  %5302 = vpow2.f32 %v5105_v5  ;;  %v5107_v46 = vmul.f32 -1.442695, %v769_v28  ;;  %5081 = vmatmul.msk.f32.vlgmr.msrb.gmra.mxu1 %vm261_vm1, %v6543_v31  ;;  %v884_v28 = vpop.f32.mrf.mxu2 }
  0xe2   : > { %v5299_v43 = vpop.eup %5298  ;;  %v3100_v45 = vsub.f32 1.0, %v3099_v37  ;;  %5304 = vpow2.f32 %v5106_v27  ;;  %vm3089_vm14 = vweird.f32 %v5295_v26  ;;  %v5108_v41 = vmul.f32 -1.442695, %v792_v38 }
  0xe3   : > { %v3086_v47 = vmul.f32 %v5295_v26, %v3085_v40  ;;  %v6699_v33 = vadd.f32 1.0, %v5299_v43  ;;  %v3095_v49 = vor.u32 1.1754944e-38, %v3094_v18  ;;  %vm3104_vm15 = vweird.f32 %v5297_v29  ;;  %vm6717_vm4 = vmor %vm3088_vm11, %vm3089_vm14 }
  0xe4   : > { %v3101_v50 = vmul.f32 %v5297_v29, %v3100_v45  ;;  %5306 = vpow2.f32 %v5107_v46  ;;  %vm6703_vm2 = vcmp.eq.f32.partialorder %v3107_v42, 8.507059e+37  ;;  %v3110_v39 = vor.u32 1.1754944e-38, %v3109_v35  ;;  %vm3105_vm5 = vmor %vm3103_vm13, %vm3104_vm15 }
  0xe5   : > { %v6701_v52 = vpop.eup %5300  ;;  %v3087_v54 = vadd.f32 %v5295_v26, %v3086_v47  ;;  %5308 = vrcp.f32 %v6699_v33  ;;  %v3122_v53 = vand.u32 2147483647, %v6674_v25  ;;  %v5109_v62 = vmul.f32 -1.442695, %v815_v48 }
  0xe6   : > { %v3102_v60 = vadd.f32 %v5297_v29, %v3101_v50  ;;  %v3114_v61 = vmul.f32 %v6701_v52, %v6674_v25  ;;  %vm3118_vm6 = vweird.f32 %v6674_v25  ;;  %v3124_v2 = vand.u32 2147483648, %v6674_v25  ;;  %v907_v25 = vpop.f32.mrf.mxu3 }
  0xe7   : > { %v5303_v63 = vpop.eup %5302  ;;  %v3091_v56 = vsel %vm6717_vm4, %v5295_v26, %v3087_v54  ;;  %5310 = vpow2.f32 %v5108_v41  ;;  %v5110_v57 = vmul.f32 -1.442695, %v838_v51  ;;  %v3137_v12 = vand.u32 2147483647, %v6699_v33 }
  0xe8   : > { %v5305_v4 = vpop.eup %5304  ;;  %v3096_v6 = vsel %vm6688_vm12, %v3095_v49, %v3091_v56  ;;  %v3106_v7 = vsel %vm3105_vm5, %v5297_v29, %v3102_v60  ;;  %v3115_v10 = vsub.f32 1.0, %v3114_v61  ;;  %v6744_v0 = vadd.f32 1.0, %v5303_v63 }
  0xe9   : > { %4314 = vst.msk [vmem:[%s6306_s14 + $0x78] sm:$0x1f] %vm4298_vm3, %v3096_v6  ;;  %v3111_v11 = vsel %vm6703_vm2, %v3110_v39, %v3106_v7  ;;  %v6746_v3 = vadd.f32 1.0, %v5305_v4  ;;  %vm3119_vm0 = vweird.f32 %v6701_v52  ;;  %vm6752_vm1 = vcmp.eq.f32.partialorder %v3122_v53, 8.507059e+37 }
  0xea   : > { %v5307_v31 = vpop.eup %5306  ;;  %4315 = vst.msk [vmem:[%s6306_s14 + $0x80] sm:$0x1f] %vm4298_vm3, %v3111_v11  ;;  %v3116_v13 = vmul.f32 %v6701_v52, %v3115_v10  ;;  %5312 = vpow2.f32 %v5109_v62  ;;  %v3125_v16 = vor.u32 1.1754944e-38, %v3124_v2  ;;  %vm3133_vm7 = vweird.f32 %v6699_v33  ;;  %vm3120_vm8 = vmor %vm3118_vm6, %vm3119_vm0 }
  0xeb   : > { %v5309_v15 = vpop.eup %5308  ;;  %5314 = vrcp.f32 %v6744_v0  ;;  %v5111_v17 = vmul.f32 -1.442695, %v861_v8  ;;  %v3139_v14 = vand.u32 2147483648, %v6699_v33  ;;  %vm6764_vm9 = vcmp.eq.f32.partialorder %v3137_v12, 8.507059e+37 }
  0xec   : > { %v3117_v19 = vadd.f32 %v6701_v52, %v3116_v13  ;;  %v3129_v20 = vmul.f32 %v5309_v15, %v6699_v33  ;;  %5316 = vrcp.f32 %v6746_v3  ;;  %v3152_v22 = vand.u32 2147483647, %v6744_v0 }
  0xed   : > { %v5311_v1 = vpop.eup %5310  ;;  %v3154_v23 = vand.u32 2147483648, %v6744_v0  ;;  %5318 = vpow2.f32 %v5110_v57  ;;  %v3167_v5 = vand.u32 2147483647, %v6746_v3  ;;  %v6772_v27 = vadd.f32 1.0, %v5307_v31 }
  0xee   : > { %v3121_v24 = vsel %vm3120_vm8, %v6701_v52, %v3117_v19  ;;  %v3130_v26 = vsub.f32 1.0, %v3129_v20  ;;  %v3169_v30 = vand.u32 2147483648, %v6746_v3  ;;  %v6777_v32 = vadd.f32 1.0, %v5311_v1  ;;  %v999_v48 = vpop.f32.mrf.mxu3 }
  0xef   : > { %v3126_v29 = vsel %vm6752_vm1, %v3125_v16, %v3121_v24  ;;  %5320 = vpow2.f32 %v5111_v17  ;;  %vm3134_vm10 = vweird.f32 %v5309_v15  ;;  %v3140_v18 = vor.u32 1.1754944e-38, %v3139_v14  ;;  %v930_v14 = vpop.f32.mrf.mxu0 }
  0xf0   : > { %v5313_v34 = vpop.eup %5312  ;;  %4316 = vst.msk [vmem:[%s6306_s14 + $0x88] sm:$0x1f] %vm4298_vm3, %v3126_v29  ;;  %v3131_v36 = vmul.f32 %v5309_v15, %v3130_v26  ;;  %5322 = vrcp.f32 %v6772_v27  ;;  %vm3148_vm11 = vweird.f32 %v6744_v0  ;;  %v5112_v38 = vmul.f32 -1.442695, %v884_v28  ;;  %vm3135_vm13 = vmor %vm3133_vm7, %vm3134_vm10  ;;  %v953_v26 = vpop.f32.mrf.mxu1 }
  0xf1   : > { %v5315_v37 = vpop.eup %5314  ;;  %5324 = vrcp.f32 %v6777_v32  ;;  %v6784_v40 = vmul.f32 -1.442695, %v907_v25  ;;  %vm6787_vm12 = vcmp.eq.f32.partialorder %v3152_v22, 8.507059e+37  ;;  %v3155_v46 = vor.u32 1.1754944e-38, %v3154_v23 }
  0xf2   : > { %v5317_v42 = vpop.eup %5316  ;;  %v3132_v35 = vadd.f32 %v5309_v15, %v3131_v36  ;;  %v3144_v43 = vmul.f32 %v5315_v37, %v6744_v0  ;;  %vm3163_vm14 = vweird.f32 %v6746_v3  ;;  %vm6795_vm15 = vcmp.eq.f32.partialorder %v3167_v5, 8.507059e+37 }
  0xf3   : > { %v5319_v47 = vpop.eup %5318  ;;  %v3159_v41 = vmul.f32 %v5317_v42, %v6746_v3  ;;  %v3170_v49 = vor.u32 1.1754944e-38, %v3169_v30  ;;  %vm3178_vm2 = vweird.f32 %v6772_v27  ;;  %v3182_v54 = vand.u32 2147483647, %v6772_v27 }
  0xf4   : > { %v3136_v50 = vsel %vm3135_vm13, %v5309_v15, %v3132_v35  ;;  %v3145_v52 = vsub.f32 1.0, %v3144_v43  ;;  %v3184_v51 = vand.u32 2147483648, %v6772_v27  ;;  %v6804_v55 = vadd.f32 1.0, %v5313_v34 }
  0xf5   : > { %v5321_v44 = vpop.eup %5320  ;;  %v3141_v33 = vsel %vm6764_vm9, %v3140_v18, %v3136_v50  ;;  %v3160_v39 = vsub.f32 1.0, %v3159_v41  ;;  %vm3149_vm4 = vweird.f32 %v5315_v37  ;;  %v6808_v60 = vadd.f32 1.0, %v5319_v47 }
  0xf6   : > { %v5323_v58 = vpop.eup %5322  ;;  %4317 = vst.msk [vmem:[%s6306_s14 + $0x90] sm:$0x1f] %vm4298_vm3, %v3141_v33  ;;  %v3146_v59 = vmul.f32 %v5315_v37, %v3145_v52  ;;  %5326 = vpow2.f32 %v5112_v38  ;;  %vm3164_vm5 = vweird.f32 %v5317_v42  ;;  %vm3193_vm6 = vweird.f32 %v6777_v32  ;;  %vm3150_vm0 = vmor %vm3148_vm11, %vm3149_vm4  ;;  %v976_v38 = vpop.f32.mrf.mxu2 }
  0xf7   : > { %v5325_v61 = vpop.eup %5324  ;;  %v3161_v53 = vmul.f32 %v5317_v42, %v3160_v39  ;;  %v3174_v62 = vmul.f32 %v5323_v58, %v6772_v27  ;;  %5328 = vrcp.f32 %v6804_v55  ;;  %v3197_v2 = vand.u32 2147483647, %v6777_v32  ;;  %vm3165_vm7 = vmor %vm3163_vm14, %vm3164_vm5 }
  0xf8   : > { %v3147_v63 = vadd.f32 %v5315_v37, %v3146_v59  ;;  %v3189_v56 = vmul.f32 %v5325_v61, %v6777_v32  ;;  %vm6817_vm1 = vcmp.eq.f32.partialorder %v3182_v54, 8.507059e+37  ;;  %v6821_v10 = vadd.f32 1.0, %v5321_v44 }
  0xf9   : > { %v3162_v4 = vadd.f32 %v5317_v42, %v3161_v53  ;;  %v3175_v6 = vsub.f32 1.0, %v3174_v62  ;;  %v3199_v11 = vand.u32 2147483648, %v6777_v32  ;;  %5330 = vrcp.f32 %v6808_v60 }
  0xfa   : > { %v3151_v57 = vsel %vm3150_vm0, %v5315_v37, %v3147_v63  ;;  %v3190_v8 = vsub.f32 1.0, %v3189_v56  ;;  %vm3179_vm8 = vweird.f32 %v5323_v58  ;;  %v3185_v3 = vor.u32 1.1754944e-38, %v3184_v51 }
  0xfb   : > { %v3156_v12 = vsel %vm6787_vm12, %v3155_v46, %v3151_v57  ;;  %v3166_v0 = vsel %vm3165_vm7, %v5317_v42, %v3162_v4  ;;  %v3176_v31 = vmul.f32 %v5323_v58, %v3175_v6  ;;  %vm3194_vm9 = vweird.f32 %v5325_v61  ;;  %vm3180_vm10 = vmor %vm3178_vm2, %vm3179_vm8 }
  0xfc   : > { %v5327_v13 = vpop.eup %5326  ;;  %4318 = vst.msk [vmem:[%s6306_s14 + $0x98] sm:$0x1f] %vm4298_vm3, %v3156_v12  ;;  %v3171_v9 = vsel %vm6795_vm15, %v3170_v49, %v3166_v0  ;;  %v3191_v15 = vmul.f32 %v5325_v61, %v3190_v8  ;;  %v3212_v19 = vand.u32 2147483647, %v6804_v55  ;;  %v3214_v20 = vand.u32 2147483648, %v6804_v55  ;;  %vm3195_vm12 = vmor %vm3193_vm6, %vm3194_vm9 }
  0xfd   : > { %v5329_v16 = vpop.eup %5328  ;;  %4319 = vst.msk [vmem:[%s6306_s14 + $0xa0] sm:$0x1f] %vm4298_vm3, %v3171_v9  ;;  %v3177_v17 = vadd.f32 %v5323_v58, %v3176_v31  ;;  %5332 = vrcp.f32 %v6821_v10  ;;  %vm3198_vm11 = vcmp.eq.f32.partialorder %v3197_v2, 8.507059e+37  ;;  %v3200_v21 = vor.u32 1.1754944e-38, %v3199_v11  ;;  %v1045_v2 = vpop.f32.mrf.mxu1 }
  0xfe   : > { %v3192_v1 = vadd.f32 %v5325_v61, %v3191_v15  ;;  %v3204_v22 = vmul.f32 %v5329_v16, %v6804_v55  ;;  %vm3208_vm13 = vweird.f32 %v6804_v55  ;;  %vm3223_vm14 = vweird.f32 %v6808_v60  ;;  %v1068_v9 = vpop.f32.mrf.mxu2 }
  0xff   : > { %v3181_v23 = vsel %vm3180_vm10, %v5323_v58, %v3177_v17  ;;  %v3227_v24 = vand.u32 2147483647, %v6808_v60  ;;  %v5331_v5 = vpop.eup %5330  ;;  %v6848_v29 = vadd.f32 1.0, %v5327_v13  ;;  %vm6852_vm15 = vcmp.eq.f32.partialorder %v3212_v19, 8.507059e+37  ;;  %v1022_v58 = vpop.f32.mrf.mxu0 }
 0x100   : > { %v3186_v27 = vsel %vm6817_vm1, %v3185_v3, %v3181_v23  ;;  %v3196_v28 = vsel %vm3195_vm12, %v5325_v61, %v3192_v1  ;;  %v3205_v25 = vsub.f32 1.0, %v3204_v22  ;;  %v3215_v34 = vor.u32 1.1754944e-38, %v3214_v20 }
 0x101   : > { %4320 = vst.msk [vmem:[%s6306_s14 + $0xa8] sm:$0x1f] %vm4298_vm3, %v3186_v27  ;;  %v3201_v30 = vsel %vm3198_vm11, %v3200_v21, %v3196_v28  ;;  %v3219_v36 = vmul.f32 %v5331_v5, %v6808_v60  ;;  %vm3209_vm2 = vweird.f32 %v5329_v16  ;;  %v3229_v37 = vand.u32 2147483648, %v6808_v60 }
 0x102   : > { %4321 = vst.msk [vmem:[%s6306_s14 + $0xb0] sm:$0x1f] %vm4298_vm3, %v3201_v30  ;;  %v3206_v18 = vmul.f32 %v5329_v16, %v3205_v25  ;;  %5334 = vrcp.f32 %v6848_v29  ;;  %vm6861_vm4 = vcmp.eq.f32.partialorder %v3227_v24, 8.507059e+37  ;;  %vm3238_vm5 = vweird.f32 %v6821_v10  ;;  %vm3210_vm6 = vmor %vm3208_vm13, %vm3209_vm2 }
 0x103   : > { %v5333_v42 = vpop.eup %5332  ;;  %v3220_v35 = vsub.f32 1.0, %v3219_v36  ;;  %5336 = vpow2.f32 %v6784_v40  ;;  %v3242_v47 = vand.u32 2147483647, %v6821_v10  ;;  %v5114_v41 = vmul.f32 -1.442695, %v930_v14 }
 0x104   : > { %v3207_v45 = vadd.f32 %v5329_v16, %v3206_v18  ;;  %v3234_v46 = vmul.f32 %v5333_v42, %v6821_v10  ;;  %vm3224_vm0 = vweird.f32 %v5331_v5  ;;  %v3244_v50 = vand.u32 2147483648, %v6821_v10 }
 0x105   : > { %v3221_v49 = vmul.f32 %v5331_v5, %v3220_v35  ;;  %v5115_v52 = vmul.f32 -1.442695, %v953_v26  ;;  %5338 = vpow2.f32 %v5114_v41  ;;  %v5116_v40 = vmul.f32 -1.442695, %v976_v38  ;;  %vm3225_vm1 = vmor %vm3223_vm14, %vm3224_vm0 }
 0x106   : > { %v3211_v54 = vsel %vm3210_vm6, %v5329_v16, %v3207_v45  ;;  %v3235_v44 = vsub.f32 1.0, %v3234_v46  ;;  %v5117_v51 = vmul.f32 -1.442695, %v999_v48  ;;  %v3230_v55 = vor.u32 1.1754944e-38, %v3229_v37 }
 0x107   : > { %v3216_v33 = vsel %vm6852_vm15, %v3215_v34, %v3211_v54  ;;  %v3222_v39 = vadd.f32 %v5331_v5, %v3221_v49  ;;  %5340 = vpow2.f32 %v5115_v52  ;;  %vm3239_vm7 = vweird.f32 %v5333_v42 }
 0x108   : > { %v5335_v59 = vpop.eup %5334  ;;  %4322 = vst.msk [vmem:[%s6306_s14 + $0xb8] sm:$0x1f] %vm4298_vm3, %v3216_v33  ;;  %v3236_v61 = vmul.f32 %v5333_v42, %v3235_v44  ;;  %5342 = vpow2.f32 %v5116_v40  ;;  %vm6878_vm8 = vcmp.eq.f32.partialorder %v3242_v47, 8.507059e+37  ;;  %v5118_v7 = vmul.f32 -1.442695, %v1022_v58  ;;  %vm3240_vm9 = vmor %vm3238_vm5, %vm3239_vm7 }
 0x109   : > { %v5337_v53 = vpop.eup %5336  ;;  %v3226_v62 = vsel %vm3225_vm1, %v5331_v5, %v3222_v39  ;;  %v3249_v56 = vmul.f32 %v5335_v59, %v6848_v29  ;;  %5344 = vpow2.f32 %v5117_v51  ;;  %v3245_v57 = vor.u32 1.1754944e-38, %v3244_v50  ;;  %v1091_v5 = vpop.f32.mrf.mxu3 }
 0x10a   : > { %v3231_v4 = vsel %vm6861_vm4, %v3230_v55, %v3226_v62  ;;  %v3237_v60 = vadd.f32 %v5333_v42, %v3236_v61  ;;  %v6885_v6 = vadd.f32 1.0, %v5337_v53  ;;  %v3257_v11 = vand.u32 2147483647, %v6848_v29 }
 0x10b   : > { %4323 = vst.msk [vmem:[%s6306_s14 + $0xc0] sm:$0x1f] %vm4298_vm3, %v3231_v4  ;;  %v3250_v8 = vsub.f32 1.0, %v3249_v56  ;;  %v5339_v12 = vpop.eup %5338  ;;  %v3259_v31 = vand.u32 2147483648, %v6848_v29  ;;  %v5119_v13 = vmul.f32 -1.442695, %v1045_v2  ;;  %vm3254_vm10 = vweird.f32 %v5335_v59 }
 0x10c   : > { %v3241_v0 = vsel %vm3240_vm9, %v5333_v42, %v3237_v60  ;;  %5346 = vrcp.f32 %v6885_v6  ;;  %v6896_v10 = vadd.f32 1.0, %v5339_v12  ;;  %vm3253_vm11 = vweird.f32 %v6848_v29 }
 0x10d   : > { %v5341_v3 = vpop.eup %5340  ;;  %v3246_v15 = vsel %vm6878_vm8, %v3245_v57, %v3241_v0  ;;  %v3251_v16 = vmul.f32 %v5335_v59, %v3250_v8  ;;  %5348 = vpow2.f32 %v5118_v7  ;;  %v5120_v1 = vmul.f32 -1.442695, %v1068_v9  ;;  %vm3255_vm12 = vmor %vm3253_vm11, %vm3254_vm10 }
 0x10e   : > { %v5343_v17 = vpop.eup %5342  ;;  %4324 = vst.msk [vmem:[%s6306_s14 + $0xc8] sm:$0x1f] %vm4298_vm3, %v3246_v15  ;;  %v6900_v19 = vadd.f32 1.0, %v5341_v3  ;;  %5350 = vrcp.f32 %v6896_v10  ;;  %vm3258_vm13 = vcmp.eq.f32.partialorder %v3257_v11, 8.507059e+37  ;;  %v3260_v21 = vor.u32 1.1754944e-38, %v3259_v31 }
 0x10f   : > { %v5345_v20 = vpop.eup %5344  ;;  %v3252_v14 = vadd.f32 %v5335_v59, %v3251_v16  ;;  %v3272_v22 = vand.u32 2147483647, %v6885_v6  ;;  %v3274_v24 = vand.u32 2147483648, %v6885_v6  ;;  %v6907_v26 = vadd.f32 1.0, %v5343_v17  ;;  %v1137_v16 = vpop.f32.mrf.mxu1 }
 0x110   : > { %5352 = vrcp.f32 %v6900_v19  ;;  %v3287_v25 = vand.u32 2147483647, %v6896_v10  ;;  %v3289_v29 = vand.u32 2147483648, %v6896_v10  ;;  %v6911_v30 = vadd.f32 1.0, %v5345_v20 }
 0x111   : > { %v3256_v23 = vsel %vm3255_vm12, %v5335_v59, %v3252_v14  ;;  %5354 = vpow2.f32 %v5119_v13  ;;  %vm3268_vm14 = vweird.f32 %v6885_v6  ;;  %v3302_v34 = vand.u32 2147483647, %v6900_v19  ;;  %v1114_v13 = vpop.f32.mrf.mxu0  ;;  %v1160_v14 = vpop.f32.mrf.mxu2 }
 0x112   : > { %v5347_v27 = vpop.eup %5346  ;;  %v3261_v28 = vsel %vm3258_vm13, %v3260_v21, %v3256_v23  ;;  %5356 = vpow2.f32 %v5120_v1  ;;  %vm6918_vm15 = vcmp.eq.f32.partialorder %v3272_v22, 8.507059e+37  ;;  %v3304_v37 = vand.u32 2147483648, %v6900_v19 }
 0x113   : > { %4325 = vst.msk [vmem:[%s6306_s14 + $0xd0] sm:$0x1f] %vm4298_vm3, %v3261_v28  ;;  %v3264_v32 = vmul.f32 %v5347_v27, %v6885_v6  ;;  %v5349_v36 = vpop.eup %5348  ;;  %5358 = vrcp.f32 %v6907_v26  ;;  %v5121_v38 = vmul.f32 -1.442695, %v1091_v5  ;;  %v3275_v43 = vor.u32 1.1754944e-38, %v3274_v24  ;;  %v1183_v5 = vpop.f32.mrf.mxu3 }
 0x114   : > { %v5351_v42 = vpop.eup %5350  ;;  %vm3283_vm2 = vweird.f32 %v6896_v10  ;;  %5360 = vrcp.f32 %v6911_v30  ;;  %vm6927_vm4 = vcmp.eq.f32.partialorder %v3287_v25, 8.507059e+37  ;;  %v3290_v41 = vor.u32 1.1754944e-38, %v3289_v29 }
 0x115   : > { %v3265_v35 = vsub.f32 1.0, %v3264_v32  ;;  %v3279_v46 = vmul.f32 %v5351_v42, %v6896_v10  ;;  %vm3298_vm5 = vweird.f32 %v6900_v19  ;;  %vm3269_vm6 = vweird.f32 %v5347_v27 }
 0x116   : > { %v5353_v45 = vpop.eup %5352  ;;  %vm6933_vm0 = vcmp.eq.f32.partialorder %v3302_v34, 8.507059e+37  ;;  %v3305_v44 = vor.u32 1.1754944e-38, %v3304_v37  ;;  %v3317_v40 = vand.u32 2147483647, %v6907_v26  ;;  %v6938_v33 = vadd.f32 1.0, %v5349_v36  ;;  %vm3270_vm8 = vmor %vm3268_vm14, %vm3269_vm6 }
 0x117   : > { %v5355_v48 = vpop.eup %5354  ;;  %v3266_v49 = vmul.f32 %v5347_v27, %v3265_v35  ;;  %v3294_v50 = vmul.f32 %v5353_v45, %v6900_v19  ;;  %v3280_v54 = vsub.f32 1.0, %v3279_v46  ;;  %vm3284_vm1 = vweird.f32 %v5351_v42 }
 0x118   : > { %v5357_v39 = vpop.eup %5356  ;;  %vm3313_vm7 = vweird.f32 %v6907_v26  ;;  %v3319_v59 = vand.u32 2147483648, %v6907_v26  ;;  %vm3299_vm9 = vweird.f32 %v5353_v45  ;;  %5362 = vrcp.f32 %v6938_v33  ;;  %vm3285_vm11 = vmor %vm3283_vm2, %vm3284_vm1 }
 0x119   : > { %v3267_v51 = vadd.f32 %v5347_v27, %v3266_v49  ;;  %v3295_v58 = vsub.f32 1.0, %v3294_v50  ;;  %v5359_v55 = vpop.eup %5358  ;;  %v3281_v61 = vmul.f32 %v5351_v42, %v3280_v54  ;;  %v6945_v53 = vadd.f32 1.0, %v5355_v48  ;;  %vm3300_vm12 = vmor %vm3298_vm5, %vm3299_vm9 }
 0x11a   : > { %v5361_v62 = vpop.eup %5360  ;;  %v3309_v2 = vmul.f32 %v5359_v55, %v6907_v26  ;;  %5364 = vpow2.f32 %v5121_v38  ;;  %vm3328_vm10 = vweird.f32 %v6911_v30  ;;  %v3332_v8 = vand.u32 2147483647, %v6911_v30 }
 0x11b   : > { %v3271_v63 = vsel %vm3270_vm8, %v5347_v27, %v3267_v51  ;;  %v3296_v56 = vmul.f32 %v5353_v45, %v3295_v58  ;;  %v3282_v60 = vadd.f32 %v5351_v42, %v3281_v61  ;;  %v3324_v7 = vmul.f32 %v5361_v62, %v6911_v30  ;;  %v1229_v58 = vpop.f32.mrf.mxu1  ;;  %v1252_v61 = vpop.f32.mrf.mxu2 }
 0x11c   : > { %v3276_v4 = vsel %vm6918_vm15, %v3275_v43, %v3271_v63  ;;  %v3310_v57 = vsub.f32 1.0, %v3309_v2  ;;  %v3334_v11 = vand.u32 2147483648, %v6911_v30  ;;  %5366 = vrcp.f32 %v6945_v53  ;;  %v1275_v2 = vpop.f32.mrf.mxu3 }
 0x11d   : > { %4326 = vst.msk [vmem:[%s6306_s14 + $0xd8] sm:$0x1f] %vm4298_vm3, %v3276_v4  ;;  %v3297_v6 = vadd.f32 %v5353_v45, %v3296_v56  ;;  %v3286_v12 = vsel %vm3285_vm11, %v5351_v42, %v3282_v60  ;;  %v3325_v0 = vsub.f32 1.0, %v3324_v7  ;;  %v6963_v31 = vadd.f32 1.0, %v5357_v39 }
 0x11e   : > { %v3291_v9 = vsel %vm6927_vm4, %v3290_v41, %v3286_v12  ;;  %v3311_v15 = vmul.f32 %v5359_v55, %v3310_v57  ;;  %vm3314_vm13 = vweird.f32 %v5359_v55  ;;  %v5363_v10 = vpop.eup %5362  ;;  %vm6971_vm14 = vcmp.eq.f32.partialorder %v3317_v40, 8.507059e+37 }
 0x11f   : > { %v3301_v3 = vsel %vm3300_vm12, %v5353_v45, %v3297_v6  ;;  %4327 = vst.msk [vmem:[%s6306_s14 + $0xe0] sm:$0x1f] %vm4298_vm3, %v3291_v9  ;;  %v3326_v20 = vmul.f32 %v5361_v62, %v3325_v0  ;;  %vm3329_vm15 = vweird.f32 %v5361_v62  ;;  %v3320_v22 = vor.u32 1.1754944e-38, %v3319_v59  ;;  %vm3315_vm4 = vmor %vm3313_vm7, %vm3314_vm13 }
 0x120   : > { %v3306_v17 = vsel %vm6933_vm0, %v3305_v44, %v3301_v3  ;;  %v5365_v1 = vpop.eup %5364  ;;  %v3312_v21 = vadd.f32 %v5359_v55, %v3311_v15  ;;  %vm6977_vm2 = vcmp.eq.f32.partialorder %v3332_v8, 8.507059e+37  ;;  %v3339_v24 = vmul.f32 %v5363_v10, %v6938_v33  ;;  %vm3330_vm5 = vmor %vm3328_vm10, %vm3329_vm15  ;;  %v1206_v44 = vpop.f32.mrf.mxu0 }
 0x121   : > { %4328 = vst.msk [vmem:[%s6306_s14 + $0xe8] sm:$0x1f] %vm4298_vm3, %v3306_v17  ;;  %v3327_v27 = vadd.f32 %v5361_v62, %v3326_v20  ;;  %v3347_v28 = vand.u32 2147483647, %v6938_v33  ;;  %v3349_v25 = vand.u32 2147483648, %v6938_v33  ;;  %5368 = vrcp.f32 %v6963_v31 }
 0x122   : > { %v3316_v29 = vsel %vm3315_vm4, %v5359_v55, %v3312_v21  ;;  %v3335_v32 = vor.u32 1.1754944e-38, %v3334_v11  ;;  %v3340_v34 = vsub.f32 1.0, %v3339_v24  ;;  %v3362_v36 = vand.u32 2147483647, %v6945_v53  ;;  %v5367_v26 = vpop.eup %5366 }
 0x123   : > { %v3321_v18 = vsel %vm6971_vm14, %v3320_v22, %v3316_v29  ;;  %v3331_v37 = vsel %vm3330_vm5, %v5361_v62, %v3327_v27  ;;  %vm3343_vm6 = vweird.f32 %v6938_v33  ;;  %v6995_v38 = vadd.f32 1.0, %v5365_v1 }
 0x124   : > { %4329 = vst.msk [vmem:[%s6306_s14 + $0xf0] sm:$0x1f] %vm4298_vm3, %v3321_v18  ;;  %v3336_v42 = vsel %vm6977_vm2, %v3335_v32, %v3331_v37  ;;  %v3341_v30 = vmul.f32 %v5363_v10, %v3340_v34  ;;  %vm3344_vm0 = vweird.f32 %v5363_v10  ;;  %v3354_v35 = vmul.f32 %v5367_v26, %v6945_v53 }
 0x125   : > { %4330 = vst.msk [vmem:[%s6306_s14 + $0xf8] sm:$0x1f] %vm4298_vm3, %v3336_v42  ;;  %vm7004_vm1 = vcmp.eq.f32.partialorder %v3347_v28, 8.507059e+37  ;;  %v3350_v45 = vor.u32 1.1754944e-38, %v3349_v25  ;;  %vm3358_vm7 = vweird.f32 %v6945_v53  ;;  %5370 = vrcp.f32 %v6995_v38  ;;  %vm3345_vm9 = vmor %vm3343_vm6, %vm3344_vm0  ;;  %v1321_v28 = vpop.f32.mrf.mxu1  ;;  %v1344_v25 = vpop.f32.mrf.mxu2 }
 0x126   : > { %v3342_v46 = vadd.f32 %v5363_v10, %v3341_v30  ;;  %v3355_v47 = vsub.f32 1.0, %v3354_v35  ;;  %vm7010_vm8 = vcmp.eq.f32.partialorder %v3362_v36, 8.507059e+37  ;;  %v3364_v48 = vand.u32 2147483648, %v6945_v53 }
 0x127   : > { %v5369_v49 = vpop.eup %5368  ;;  %vm3373_vm10 = vweird.f32 %v6963_v31  ;;  %v5122_v50 = vmul.f32 -1.442695, %v1114_v13  ;;  %v5123_v52 = vmul.f32 -1.442695, %v1137_v16  ;;  %v5124_v54 = vmul.f32 -1.442695, %v1160_v14 }
 0x128   : > { %v3346_v40 = vsel %vm3345_vm9, %v5363_v10, %v3342_v46  ;;  %v3356_v39 = vmul.f32 %v5367_v26, %v3355_v47  ;;  %vm3359_vm11 = vweird.f32 %v5367_v26  ;;  %v3369_v51 = vmul.f32 %v5369_v49, %v6963_v31 }
 0x129   : > { %v3351_v59 = vsel %vm7004_vm1, %v3350_v45, %v3346_v40  ;;  %v3377_v55 = vand.u32 2147483647, %v6963_v31  ;;  %v3379_v33 = vand.u32 2147483648, %v6963_v31  ;;  %5372 = vpow2.f32 %v5122_v50  ;;  %vm3360_vm12 = vmor %vm3358_vm7, %vm3359_vm11  ;;  %v1298_v31 = vpop.f32.mrf.mxu0 }
 0x12a   : > { %4331 = vst.msk [vmem:[%s6306_s14 + $0x100] sm:$0x1f] %vm4298_vm3, %v3351_v59  ;;  %v3357_v62 = vadd.f32 %v5367_v26, %v3356_v39  ;;  %v3370_v63 = vsub.f32 1.0, %v3369_v51  ;;  %5374 = vpow2.f32 %v5123_v52  ;;  %v5125_v56 = vmul.f32 -1.442695, %v1183_v5 }
 0x12b   : > { %v5371_v4 = vpop.eup %5370  ;;  %v3365_v60 = vor.u32 1.1754944e-38, %v3364_v48  ;;  %5376 = vpow2.f32 %v5124_v54  ;;  %v5126_v7 = vmul.f32 -1.442695, %v1206_v44  ;;  %v5127_v6 = vmul.f32 -1.442695, %v1229_v58 }
 0x12c   : > { %v3361_v57 = vsel %vm3360_vm12, %v5367_v26, %v3357_v62  ;;  %v3371_v8 = vmul.f32 %v5369_v49, %v3370_v63  ;;  %vm3374_vm13 = vweird.f32 %v5369_v49  ;;  %v3384_v11 = vmul.f32 %v5371_v4, %v6995_v38  ;;  %v1367_v26 = vpop.f32.mrf.mxu3 }
 0x12d   : > { %v3366_v12 = vsel %vm7010_vm8, %v3365_v60, %v3361_v57  ;;  %vm7031_vm14 = vcmp.eq.f32.partialorder %v3377_v55, 8.507059e+37  ;;  %5378 = vpow2.f32 %v5125_v56  ;;  %v5128_v13 = vmul.f32 -1.442695, %v1252_v61  ;;  %vm3375_vm15 = vmor %vm3373_vm10, %vm3374_vm13 }
 0x12e   : > { %4332 = vst.msk [vmem:[%s6306_s14 + $0x108] sm:$0x1f] %vm4298_vm3, %v3366_v12  ;;  %v3372_v53 = vadd.f32 %v5369_v49, %v3371_v8  ;;  %v3380_v9 = vor.u32 1.1754944e-38, %v3379_v33  ;;  %v3385_v3 = vsub.f32 1.0, %v3384_v11  ;;  %5380 = vpow2.f32 %v5126_v7 }
 0x12f   : > { %v5373_v15 = vpop.eup %5372  ;;  %vm3389_vm2 = vweird.f32 %v5371_v4  ;;  %v3392_v16 = vand.u32 2147483647, %v6995_v38  ;;  %v3394_v10 = vand.u32 2147483648, %v6995_v38  ;;  %5382 = vpow2.f32 %v5127_v6 }
 0x130   : > { %v5375_v17 = vpop.eup %5374  ;;  %v3376_v19 = vsel %vm3375_vm15, %v5369_v49, %v3372_v53  ;;  %v3386_v20 = vmul.f32 %v5371_v4, %v3385_v3  ;;  %v7041_v14 = vadd.f32 1.0, %v5373_v15  ;;  %v5129_v1 = vmul.f32 -1.442695, %v1275_v2 }
 0x131   : > { %v5377_v21 = vpop.eup %5376  ;;  %v3381_v22 = vsel %vm7031_vm14, %v3380_v9, %v3376_v19  ;;  %v7045_v23 = vadd.f32 1.0, %v5375_v17  ;;  %5384 = vpow2.f32 %v5128_v13  ;;  %vm3388_vm4 = vweird.f32 %v6995_v38 }
 0x132   : > { %4333 = vst.msk [vmem:[%s6306_s14 + $0x110] sm:$0x1f] %vm4298_vm3, %v3381_v22  ;;  %v3387_v24 = vadd.f32 %v5371_v4, %v3386_v20  ;;  %5386 = vrcp.f32 %v7041_v14  ;;  %vm3390_vm5 = vmor %vm3388_vm4, %vm3389_vm2  ;;  %vm3393_vm6 = vcmp.eq.f32.partialorder %v3392_v16, 8.507059e+37  ;;  %v3395_v27 = vor.u32 1.1754944e-38, %v3394_v10 }
 0x133   : > { %v5379_v5 = vpop.eup %5378  ;;  %5388 = vrcp.f32 %v7045_v23  ;;  %v7053_v34 = vadd.f32 1.0, %v5377_v21  ;;  %v7055_v36 = vmul.f32 -1.442695, %v1298_v31  ;;  %v3407_v38 = vand.u32 2147483647, %v7041_v14 }
 0x134   : > { %v5381_v29 = vpop.eup %5380  ;;  %v3391_v32 = vsel %vm3390_vm5, %v5371_v4, %v3387_v24  ;;  %5390 = vpow2.f32 %v5129_v1  ;;  %v3409_v42 = vand.u32 2147483648, %v7041_v14  ;;  %v7059_v30 = vadd.f32 1.0, %v5379_v5 }
 0x135   : > { %v5383_v18 = vpop.eup %5382  ;;  %v3396_v37 = vsel %vm3393_vm6, %v3395_v27, %v3391_v32  ;;  %5392 = vrcp.f32 %v7053_v34  ;;  %v7064_v35 = vmul.f32 -1.442695, %v1321_v28  ;;  %v7066_v43 = vmul.f32 -1.442695, %v1344_v25 }
 0x136   : > { %4334 = vst.msk [vmem:[%s6306_s14 + $0x118] sm:$0x1f] %vm4298_vm3, %v3396_v37  ;;  %v3422_v46 = vand.u32 2147483647, %v7045_v23  ;;  %v3424_v47 = vand.u32 2147483648, %v7045_v23  ;;  %5394 = vrcp.f32 %v7059_v30  ;;  %vm3403_vm0 = vweird.f32 %v7041_v14  ;;  %v1390_v37 = vpop.f32.mrf.mxu0 }
 0x137   : > { %v5385_v45 = vpop.eup %5384  ;;  %v7071_v41 = vmul.f32 -1.442695, %v1367_v26  ;;  %vm3418_vm1 = vweird.f32 %v7045_v23  ;;  %v7075_v49 = vadd.f32 1.0, %v5381_v29  ;;  %v7077_v50 = vadd.f32 1.0, %v5383_v18 }
 0x138   : > { %v5387_v48 = vpop.eup %5386  ;;  %vm7080_vm7 = vcmp.eq.f32.partialorder %v3407_v38, 8.507059e+37  ;;  %v3410_v40 = vor.u32 1.1754944e-38, %v3409_v42  ;;  %v3437_v39 = vand.u32 2147483647, %v7053_v34  ;;  %v3439_v51 = vand.u32 2147483648, %v7053_v34 }
 0x139   : > { %v5389_v52 = vpop.eup %5388  ;;  %v3399_v54 = vmul.f32 %v5387_v48, %v7041_v14  ;;  %v3452_v55 = vand.u32 2147483647, %v7059_v30  ;;  %v3454_v33 = vand.u32 2147483648, %v7059_v30  ;;  %5396 = vrcp.f32 %v7075_v49 }
 0x13a   : > { %v5391_v58 = vpop.eup %5390  ;;  %v3414_v59 = vmul.f32 %v5389_v52, %v7045_v23  ;;  %vm7090_vm8 = vcmp.eq.f32.partialorder %v3422_v46, 8.507059e+37  ;;  %v3425_v63 = vor.u32 1.1754944e-38, %v3424_v47  ;;  %vm3433_vm9 = vweird.f32 %v7053_v34 }
 0x13b   : > { %v3400_v61 = vsub.f32 1.0, %v3399_v54  ;;  %v5393_v56 = vpop.eup %5392  ;;  %vm3404_vm10 = vweird.f32 %v5387_v48  ;;  %vm3448_vm11 = vweird.f32 %v7059_v30  ;;  %5398 = vrcp.f32 %v7077_v50 }
 0x13c   : > { %v3415_v2 = vsub.f32 1.0, %v3414_v59  ;;  %v5395_v4 = vpop.eup %5394  ;;  %vm3419_vm12 = vweird.f32 %v5389_v52  ;;  %v3429_v7 = vmul.f32 %v5393_v56, %v7053_v34  ;;  %vm7098_vm13 = vcmp.eq.f32.partialorder %v3437_v39, 8.507059e+37  ;;  %vm3405_vm2 = vmor %vm3403_vm0, %vm3404_vm10 }
 0x13d   : > { %v3401_v60 = vmul.f32 %v5387_v48, %v3400_v61  ;;  %v3440_v57 = vor.u32 1.1754944e-38, %v3439_v51  ;;  %v3444_v11 = vmul.f32 %v5395_v4, %v7059_v30  ;;  %vm7103_vm14 = vcmp.eq.f32.partialorder %v3452_v55, 8.507059e+37  ;;  %vm3420_vm5 = vmor %vm3418_vm1, %vm3419_vm12 }
 0x13e   : > { %v3416_v8 = vmul.f32 %v5389_v52, %v3415_v2  ;;  %v3455_v0 = vor.u32 1.1754944e-38, %v3454_v33  ;;  %vm3463_vm15 = vweird.f32 %v7075_v49  ;;  %v3430_v53 = vsub.f32 1.0, %v3429_v7  ;;  %v1482_v7 = vpop.f32.mrf.mxu0 }
 0x13f   : > { %v3402_v13 = vadd.f32 %v5387_v48, %v3401_v60  ;;  %v3467_v9 = vand.u32 2147483647, %v7075_v49  ;;  %v3469_v3 = vand.u32 2147483648, %v7075_v49  ;;  %v5397_v15 = vpop.eup %5396  ;;  %vm3434_vm4 = vweird.f32 %v5393_v56 }
 0x140   : > { %v3417_v16 = vadd.f32 %v5389_v52, %v3416_v8  ;;  %v3445_v10 = vsub.f32 1.0, %v3444_v11  ;;  %v7113_v17 = vadd.f32 1.0, %v5385_v45  ;;  %v3431_v20 = vmul.f32 %v5393_v56, %v3430_v53  ;;  %vm3435_vm0 = vmor %vm3433_vm9, %vm3434_vm4 }
 0x141   : > { %v3406_v19 = vsel %vm3405_vm2, %v5387_v48, %v3402_v13  ;;  %vm3449_vm6 = vweird.f32 %v5395_v4  ;;  %v3459_v1 = vmul.f32 %v5397_v15, %v7075_v49  ;;  %v5399_v21 = vpop.eup %5398  ;;  %v7121_v24 = vadd.f32 1.0, %v5391_v58 }
 0x142   : > { %v3411_v14 = vsel %vm7080_vm7, %v3410_v40, %v3406_v19  ;;  %v3421_v22 = vsel %vm3420_vm5, %v5389_v52, %v3417_v16  ;;  %v3446_v31 = vmul.f32 %v5395_v4, %v3445_v10  ;;  %v3432_v27 = vadd.f32 %v5393_v56, %v3431_v20  ;;  %vm3450_vm7 = vmor %vm3448_vm11, %vm3449_vm6  ;;  %v1413_v52 = vpop.f32.mrf.mxu1  ;;  %v1436_v40 = vpop.f32.mrf.mxu2 }
 0x143   : > { %4335 = vst.msk [vmem:[%s6306_s14 + $0x120] sm:$0x1f] %vm4298_vm3, %v3411_v14  ;;  %v3426_v5 = vsel %vm7090_vm8, %v3425_v63, %v3421_v22  ;;  %v3460_v23 = vsub.f32 1.0, %v3459_v1  ;;  %v3474_v28 = vmul.f32 %v5399_v21, %v7077_v50  ;;  %vm3478_vm1 = vweird.f32 %v7077_v50  ;;  %v1459_v63 = vpop.f32.mrf.mxu3 }
 0x144   : > { %4336 = vst.msk [vmem:[%s6306_s14 + $0x128] sm:$0x1f] %vm4298_vm3, %v3426_v5  ;;  %v3447_v25 = vadd.f32 %v5395_v4, %v3446_v31  ;;  %v3482_v29 = vand.u32 2147483647, %v7077_v50  ;;  %5400 = vrcp.f32 %v7113_v17  ;;  %v3436_v32 = vsel %vm3435_vm0, %v5393_v56, %v3432_v27 }
 0x145   : > { %v3461_v26 = vmul.f32 %v5397_v15, %v3460_v23  ;;  %vm3464_vm8 = vweird.f32 %v5397_v15  ;;  %v3475_v18 = vsub.f32 1.0, %v3474_v28  ;;  %v3441_v34 = vsel %vm7098_vm13, %v3440_v57, %v3436_v32 }
 0x146   : > { %v3451_v38 = vsel %vm3450_vm7, %v5395_v4, %v3447_v25  ;;  %v3484_v42 = vand.u32 2147483648, %v7077_v50  ;;  %5402 = vrcp.f32 %v7121_v24  ;;  %4337 = vst.msk [vmem:[%s6306_s14 + $0x130] sm:$0x1f] %vm4298_vm3, %v3441_v34  ;;  %vm3479_vm9 = vweird.f32 %v5399_v21  ;;  %vm3465_vm10 = vmor %vm3463_vm15, %vm3464_vm8 }
 0x147   : > { %v3456_v45 = vsel %vm7103_vm14, %v3455_v0, %v3451_v38  ;;  %v3462_v46 = vadd.f32 %v5397_v15, %v3461_v26  ;;  %v3476_v30 = vmul.f32 %v5399_v21, %v3475_v18  ;;  %vm3468_vm11 = vcmp.eq.f32.partialorder %v3467_v9, 8.507059e+37  ;;  %vm3480_vm13 = vmor %vm3478_vm1, %vm3479_vm9 }
 0x148   : > { %4338 = vst.msk [vmem:[%s6306_s14 + $0x138] sm:$0x1f] %vm4298_vm3, %v3456_v45  ;;  %v3470_v47 = vor.u32 1.1754944e-38, %v3469_v3  ;;  %v5134_v48 = vmul.f32 -1.442695, %v1390_v37  ;;  %vm3483_vm12 = vcmp.eq.f32.partialorder %v3482_v29, 8.507059e+37  ;;  %5404 = vpow2.f32 %v7055_v36 }
 0x149   : > { %v3466_v54 = vsel %vm3465_vm10, %v5397_v15, %v3462_v46  ;;  %v3477_v44 = vadd.f32 %v5399_v21, %v3476_v30  ;;  %v3485_v58 = vor.u32 1.1754944e-38, %v3484_v42  ;;  %v3497_v49 = vand.u32 2147483647, %v7113_v17 }
 0x14a   : > { %v5401_v39 = vpop.eup %5400  ;;  %v3471_v51 = vsel %vm3468_vm11, %v3470_v47, %v3466_v54  ;;  %5406 = vpow2.f32 %v7064_v35  ;;  %v5135_v36 = vmul.f32 -1.442695, %v1413_v52  ;;  %vm3493_vm14 = vweird.f32 %v7113_v17  ;;  %v1505_v20 = vpop.f32.mrf.mxu1 }
 0x14b   : > { %4339 = vst.msk [vmem:[%s6306_s14 + $0x140] sm:$0x1f] %vm4298_vm3, %v3471_v51  ;;  %v3481_v59 = vsel %vm3480_vm13, %v5399_v21, %v3477_v44  ;;  %v3489_v55 = vmul.f32 %v5401_v39, %v7113_v17  ;;  %5408 = vpow2.f32 %v7066_v43  ;;  %v5136_v35 = vmul.f32 -1.442695, %v1436_v40  ;;  %v1528_v1 = vpop.f32.mrf.mxu2 }
 0x14c   : > { %v5403_v33 = vpop.eup %5402  ;;  %v3486_v61 = vsel %vm3483_vm12, %v3485_v58, %v3481_v59  ;;  %5410 = vpow2.f32 %v7071_v41  ;;  %vm7165_vm15 = vcmp.eq.f32.partialorder %v3497_v49, 8.507059e+37  ;;  %v3499_v43 = vand.u32 2147483648, %v7113_v17 }
 0x14d   : > { %4340 = vst.msk [vmem:[%s6306_s14 + $0x148] sm:$0x1f] %vm4298_vm3, %v3486_v61  ;;  %v3490_v50 = vsub.f32 1.0, %v3489_v55  ;;  %v3504_v62 = vmul.f32 %v5403_v33, %v7121_v24  ;;  %v3512_v2 = vand.u32 2147483647, %v7121_v24  ;;  %5412 = vpow2.f32 %v5134_v48 }
 0x14e   : > { %v5405_v4 = vpop.eup %5404  ;;  %vm3494_vm2 = vweird.f32 %v5401_v39  ;;  %5414 = vpow2.f32 %v5135_v36  ;;  %vm3509_vm4 = vweird.f32 %v5403_v33  ;;  %v3514_v57 = vand.u32 2147483648, %v7121_v24 }
 0x14f   : > { %v3491_v41 = vmul.f32 %v5401_v39, %v3490_v50  ;;  %v3505_v60 = vsub.f32 1.0, %v3504_v62  ;;  %v7172_v8 = vadd.f32 1.0, %v5405_v4  ;;  %v5137_v11 = vmul.f32 -1.442695, %v1459_v63  ;;  %vm3495_vm5 = vmor %vm3493_vm14, %vm3494_vm2 }
 0x150   : > { %v5407_v6 = vpop.eup %5406  ;;  %5416 = vpow2.f32 %v5136_v35  ;;  %v3500_v3 = vor.u32 1.1754944e-38, %v3499_v43  ;;  %vm3508_vm6 = vweird.f32 %v7121_v24  ;;  %v5138_v15 = vmul.f32 -1.442695, %v1482_v7 }
 0x151   : > { %v5409_v12 = vpop.eup %5408  ;;  %v3492_v0 = vadd.f32 %v5401_v39, %v3491_v41  ;;  %v3506_v13 = vmul.f32 %v5403_v33, %v3505_v60  ;;  %v7174_v53 = vadd.f32 1.0, %v5407_v6  ;;  %5418 = vrcp.f32 %v7172_v8  ;;  %vm3510_vm1 = vmor %vm3508_vm6, %vm3509_vm4 }
 0x152   : > { %v5411_v9 = vpop.eup %5410  ;;  %vm7181_vm0 = vcmp.eq.f32.partialorder %v3512_v2, 8.507059e+37  ;;  %v3515_v14 = vor.u32 1.1754944e-38, %v3514_v57  ;;  %v3527_v22 = vand.u32 2147483647, %v7172_v8  ;;  %v3529_v5 = vand.u32 2147483648, %v7172_v8 }
 0x153   : > { %v3496_v16 = vsel %vm3495_vm5, %v5401_v39, %v3492_v0  ;;  %v3507_v10 = vadd.f32 %v5403_v33, %v3506_v13  ;;  %5420 = vrcp.f32 %v7174_v53  ;;  %v5413_v21 = vpop.eup %5412  ;;  %v7193_v27 = vadd.f32 1.0, %v5409_v12  ;;  %v1620_v39 = vpop.f32.mrf.mxu2 }
 0x154   : > { %v3501_v17 = vsel %vm7165_vm15, %v3500_v3, %v3496_v16  ;;  %5422 = vpow2.f32 %v5137_v11  ;;  %v5415_v31 = vpop.eup %5414  ;;  %v7195_v23 = vadd.f32 1.0, %v5411_v9  ;;  %v7199_v25 = vmul.f32 -1.442695, %v1505_v20  ;;  %v1551_v16 = vpop.f32.mrf.mxu3 }
 0x155   : > { %4341 = vst.msk [vmem:[%s6306_s14 + $0x150] sm:$0x1f] %vm4298_vm3, %v3501_v17  ;;  %v3511_v24 = vsel %vm3510_vm1, %v5403_v33, %v3507_v10  ;;  %5424 = vpow2.f32 %v5138_v15  ;;  %v7201_v29 = vmul.f32 -1.442695, %v1528_v1  ;;  %v3542_v26 = vand.u32 2147483647, %v7174_v53 }
 0x156   : > { %v3516_v28 = vsel %vm7181_vm0, %v3515_v14, %v3511_v24  ;;  %v5417_v32 = vpop.eup %5416  ;;  %5426 = vrcp.f32 %v7193_v27  ;;  %v7207_v18 = vadd.f32 1.0, %v5413_v21  ;;  %vm3523_vm7 = vweird.f32 %v7172_v8 }
 0x157   : > { %4342 = vst.msk [vmem:[%s6306_s14 + $0x158] sm:$0x1f] %vm4298_vm3, %v3516_v28  ;;  %v5419_v37 = vpop.eup %5418  ;;  %v3544_v34 = vand.u32 2147483648, %v7174_v53  ;;  %5428 = vrcp.f32 %v7195_v23  ;;  %v7212_v38 = vadd.f32 1.0, %v5415_v31  ;;  %vm7215_vm8 = vcmp.eq.f32.partialorder %v3527_v22, 8.507059e+37 }
 0x158   : > { %v3519_v45 = vmul.f32 %v5419_v37, %v7172_v8  ;;  %v3530_v30 = vor.u32 1.1754944e-38, %v3529_v5  ;;  %vm3538_vm9 = vweird.f32 %v7174_v53  ;;  %v3557_v52 = vand.u32 2147483647, %v7193_v27 }
 0x159   : > { %v5421_v42 = vpop.eup %5420  ;;  %v3559_v54 = vand.u32 2147483648, %v7193_v27  ;;  %v3574_v44 = vand.u32 2147483648, %v7195_v23  ;;  %vm7224_vm10 = vcmp.eq.f32.partialorder %v3542_v26, 8.507059e+37  ;;  %v3572_v51 = vand.u32 2147483647, %v7195_v23 }
 0x15a   : > { %v5423_v47 = vpop.eup %5422  ;;  %v3534_v48 = vmul.f32 %v5421_v42, %v7174_v53  ;;  %v3520_v40 = vsub.f32 1.0, %v3519_v45  ;;  %5430 = vrcp.f32 %v7207_v18  ;;  %v3545_v59 = vor.u32 1.1754944e-38, %v3544_v34 }
 0x15b   : > { %v7230_v58 = vpop.eup %5424  ;;  %vm3553_vm11 = vweird.f32 %v7193_v27  ;;  %5432 = vrcp.f32 %v7212_v38  ;;  %vm3524_vm12 = vweird.f32 %v5419_v37  ;;  %vm3539_vm13 = vweird.f32 %v5421_v42 }
 0x15c   : > { %v3535_v49 = vsub.f32 1.0, %v3534_v48  ;;  %v5427_v55 = vpop.eup %5426  ;;  %v3521_v36 = vmul.f32 %v5419_v37, %v3520_v40  ;;  %vm3568_vm14 = vweird.f32 %v7195_v23  ;;  %vm7236_vm15 = vcmp.eq.f32.partialorder %v3557_v52, 8.507059e+37  ;;  %vm3525_vm5 = vmor %vm3523_vm7, %vm3524_vm12 }
 0x15d   : > { %v5429_v33 = vpop.eup %5428  ;;  %v3549_v50 = vmul.f32 %v5427_v55, %v7193_v27  ;;  %v3560_v35 = vor.u32 1.1754944e-38, %v3559_v54  ;;  %v3575_v63 = vor.u32 1.1754944e-38, %v3574_v44  ;;  %vm7241_vm2 = vcmp.eq.f32.partialorder %v3572_v51, 8.507059e+37  ;;  %vm3540_vm0 = vmor %vm3538_vm9, %vm3539_vm13 }
 0x15e   : > { %v3536_v61 = vmul.f32 %v5421_v42, %v3535_v49  ;;  %v3522_v56 = vadd.f32 %v5419_v37, %v3521_v36  ;;  %v3564_v43 = vmul.f32 %v5429_v33, %v7195_v23  ;;  %vm3583_vm4 = vweird.f32 %v7207_v18 }
 0x15f   : > { %v3587_v4 = vand.u32 2147483647, %v7207_v18  ;;  %v3550_v60 = vsub.f32 1.0, %v3549_v50  ;;  %vm3554_vm6 = vweird.f32 %v5427_v55  ;;  %v3589_v7 = vand.u32 2147483648, %v7207_v18 }
 0x160   : > { %v3537_v41 = vadd.f32 %v5421_v42, %v3536_v61  ;;  %v5431_v6 = vpop.eup %5430  ;;  %v3526_v57 = vsel %vm3525_vm5, %v5419_v37, %v3522_v56  ;;  %v3565_v11 = vsub.f32 1.0, %v3564_v43  ;;  %v7253_v12 = vadd.f32 1.0, %v5417_v32 }
 0x161   : > { %v7255_v0 = vadd.f32 1.0, %v5423_v47  ;;  %v5433_v8 = vpop.eup %5432  ;;  %v3531_v13 = vsel %vm7215_vm8, %v3530_v30, %v3526_v57  ;;  %v3551_v3 = vmul.f32 %v5427_v55, %v3550_v60  ;;  %v3579_v15 = vmul.f32 %v5431_v6, %v7207_v18  ;;  %vm3555_vm8 = vmor %vm3553_vm11, %vm3554_vm6  ;;  %v1574_v30 = vpop.f32.mrf.mxu0 }
 0x162   : > { %v3541_v9 = vsel %vm3540_vm0, %v5421_v42, %v3537_v41  ;;  %4343 = vst.msk [vmem:[%s6306_s14 + $0x160] sm:$0x1f] %vm4298_vm3, %v3531_v13  ;;  %v3566_v10 = vmul.f32 %v5429_v33, %v3565_v11  ;;  %vm3569_vm1 = vweird.f32 %v5429_v33  ;;  %v3594_v19 = vmul.f32 %v5433_v8, %v7212_v38  ;;  %v1597_v18 = vpop.f32.mrf.mxu1 }
 0x163   : > { %v3546_v53 = vsel %vm7224_vm10, %v3545_v59, %v3541_v9  ;;  %v3552_v20 = vadd.f32 %v5427_v55, %v3551_v3  ;;  %v3580_v1 = vsub.f32 1.0, %v3579_v15  ;;  %vm3598_vm7 = vweird.f32 %v7212_v38  ;;  %vm3570_vm9 = vmor %vm3568_vm14, %vm3569_vm1 }
 0x164   : > { %4344 = vst.msk [vmem:[%s6306_s14 + $0x168] sm:$0x1f] %vm4298_vm3, %v3546_v53  ;;  %5434 = vrcp.f32 %v7253_v12  ;;  %v3567_v21 = vadd.f32 %v5429_v33, %v3566_v10  ;;  %v3595_v17 = vsub.f32 1.0, %v3594_v19  ;;  %v3602_v14 = vand.u32 2147483647, %v7212_v38 }
 0x165   : > { %v3604_v22 = vand.u32 2147483648, %v7212_v38  ;;  %v3556_v31 = vsel %vm3555_vm8, %v5427_v55, %v3552_v20  ;;  %v3581_v24 = vmul.f32 %v5431_v6, %v3580_v1  ;;  %vm3584_vm10 = vweird.f32 %v5431_v6  ;;  %v1712_v1 = vpop.f32.mrf.mxu2 }
 0x166   : > { %5436 = vrcp.f32 %v7255_v0  ;;  %v3561_v5 = vsel %vm7236_vm15, %v3560_v35, %v3556_v31  ;;  %v3571_v27 = vsel %vm3570_vm9, %v5429_v33, %v3567_v21  ;;  %v3596_v28 = vmul.f32 %v5433_v8, %v3595_v17  ;;  %vm3585_vm13 = vmor %vm3583_vm4, %vm3584_vm10 }
 0x167   : > { %vm3599_vm11 = vweird.f32 %v5433_v8  ;;  %4345 = vst.msk [vmem:[%s6306_s14 + $0x170] sm:$0x1f] %vm4298_vm3, %v3561_v5  ;;  %v3576_v32 = vsel %vm7241_vm2, %v3575_v63, %v3571_v27  ;;  %v3582_v26 = vadd.f32 %v5431_v6, %v3581_v24  ;;  %vm7283_vm12 = vcmp.eq.f32.partialorder %v3587_v4, 8.507059e+37 }
 0x168   : > { %v5141_v23 = vmul.f32 -1.442695, %v1551_v16  ;;  %4346 = vst.msk [vmem:[%s6306_s14 + $0x178] sm:$0x1f] %vm4298_vm3, %v3576_v32  ;;  %v3590_v34 = vor.u32 1.1754944e-38, %v3589_v7  ;;  %v3597_v42 = vadd.f32 %v5433_v8, %v3596_v28  ;;  %v7293_v46 = vadd.f32 1.0, %v7230_v58  ;;  %vm3600_vm14 = vmor %vm3598_vm7, %vm3599_vm11 }
 0x169   : > { %v3617_v45 = vand.u32 2147483647, %v7253_v12  ;;  %v3586_v48 = vsel %vm3585_vm13, %v5431_v6, %v3582_v26  ;;  %vm3603_vm15 = vcmp.eq.f32.partialorder %v3602_v14, 8.507059e+37  ;;  %v3605_v52 = vor.u32 1.1754944e-38, %v3604_v22  ;;  %v1666_v3 = vpop.f32.mrf.mxu0 }
 0x16a   : > { %v5435_v47 = vpop.eup %5434  ;;  %5438 = vpow2.f32 %v7199_v25  ;;  %v3591_v54 = vsel %vm7283_vm12, %v3590_v34, %v3586_v48  ;;  %v3601_v44 = vsel %vm3600_vm14, %v5433_v8, %v3597_v42  ;;  %vm3613_vm2 = vweird.f32 %v7253_v12  ;;  %v1643_v25 = vpop.f32.mrf.mxu3 }
 0x16b   : > { %v3609_v40 = vmul.f32 %v5435_v47, %v7253_v12  ;;  %4347 = vst.msk [vmem:[%s6306_s14 + $0x180] sm:$0x1f] %vm4298_vm3, %v3591_v54  ;;  %v3606_v38 = vsel %vm3603_vm15, %v3605_v52, %v3601_v44  ;;  %v3619_v58 = vand.u32 2147483648, %v7253_v12  ;;  %5440 = vrcp.f32 %v7293_v46  ;;  %v1689_v20 = vpop.f32.mrf.mxu1 }
 0x16c   : > { %v5437_v51 = vpop.eup %5436  ;;  %v5142_v49 = vmul.f32 -1.442695, %v1574_v30  ;;  %4348 = vst.msk [vmem:[%s6306_s14 + $0x188] sm:$0x1f] %vm4298_vm3, %v3606_v38  ;;  %vm7309_vm4 = vcmp.eq.f32.partialorder %v3617_v45, 8.507059e+37  ;;  %vm3614_vm5 = vweird.f32 %v5435_v47  ;;  %v3634_v50 = vand.u32 2147483648, %v7255_v0 }
 0x16d   : > { %v3610_v59 = vsub.f32 1.0, %v3609_v40  ;;  %v3624_v36 = vmul.f32 %v5437_v51, %v7255_v0  ;;  %v5143_v33 = vmul.f32 -1.442695, %v1597_v18  ;;  %v3632_v61 = vand.u32 2147483647, %v7255_v0  ;;  %vm3615_vm0 = vmor %vm3613_vm2, %vm3614_vm5 }
 0x16e   : > { %5442 = vpow2.f32 %v7201_v29  ;;  %v5144_v63 = vmul.f32 -1.442695, %v1620_v39  ;;  %v3620_v43 = vor.u32 1.1754944e-38, %v3619_v58  ;;  %vm3629_vm6 = vweird.f32 %v5437_v51 }
 0x16f   : > { %v3611_v62 = vmul.f32 %v5435_v47, %v3610_v59  ;;  %v3625_v35 = vsub.f32 1.0, %v3624_v36  ;;  %5444 = vpow2.f32 %v5141_v23  ;;  %v3647_v2 = vand.u32 2147483647, %v7293_v46 }
 0x170   : > { %v5439_v56 = vpop.eup %5438  ;;  %5446 = vpow2.f32 %v5142_v49  ;;  %vm3628_vm1 = vweird.f32 %v7255_v0  ;;  %vm7324_vm7 = vcmp.eq.f32.partialorder %v3632_v61, 8.507059e+37  ;;  %v3635_v6 = vor.u32 1.1754944e-38, %v3634_v50 }
 0x171   : > { %v3612_v4 = vadd.f32 %v5435_v47, %v3611_v62  ;;  %v3626_v41 = vmul.f32 %v5437_v51, %v3625_v35  ;;  %v7318_v60 = vadd.f32 1.0, %v5439_v56  ;;  %5448 = vpow2.f32 %v5143_v33  ;;  %v5441_v7 = vpop.eup %5440  ;;  %vm3630_vm8 = vmor %vm3628_vm1, %vm3629_vm6 }
 0x172   : > { %v3649_v57 = vand.u32 2147483648, %v7293_v46  ;;  %v3639_v13 = vmul.f32 %v5441_v7, %v7293_v46  ;;  %5450 = vpow2.f32 %v5144_v63  ;;  %vm3643_vm9 = vweird.f32 %v7293_v46  ;;  %v1735_v31 = vpop.f32.mrf.mxu3 }
 0x173   : > { %v3616_v11 = vsel %vm3615_vm0, %v5435_v47, %v3612_v4  ;;  %v3627_v8 = vadd.f32 %v5437_v51, %v3626_v41  ;;  %5452 = vrcp.f32 %v7318_v60  ;;  %v5145_v0 = vmul.f32 -1.442695, %v1643_v25 }
 0x174   : > { %v5443_v9 = vpop.eup %5442  ;;  %v3621_v12 = vsel %vm7309_vm4, %v3620_v43, %v3616_v11  ;;  %v3640_v53 = vsub.f32 1.0, %v3639_v13  ;;  %vm7337_vm10 = vcmp.eq.f32.partialorder %v3647_v2, 8.507059e+37  ;;  %vm3644_vm11 = vweird.f32 %v5441_v7 }
 0x175   : > { %v5445_v15 = vpop.eup %5444  ;;  %4349 = vst.msk [vmem:[%s6306_s14 + $0x190] sm:$0x1f] %vm4298_vm3, %v3621_v12  ;;  %v3631_v16 = vsel %vm3630_vm8, %v5437_v51, %v3627_v8  ;;  %v7341_v19 = vadd.f32 1.0, %v5443_v9  ;;  %v3650_v14 = vor.u32 1.1754944e-38, %v3649_v57  ;;  %v3662_v27 = vand.u32 2147483647, %v7318_v60  ;;  %vm3645_vm13 = vmor %vm3643_vm9, %vm3644_vm11 }
 0x176   : > { %v5447_v21 = vpop.eup %5446  ;;  %v3636_v17 = vsel %vm7324_vm7, %v3635_v6, %v3631_v16  ;;  %v7345_v22 = vadd.f32 1.0, %v5445_v15  ;;  %v3641_v5 = vmul.f32 %v5441_v7, %v3640_v53  ;;  %v3664_v28 = vand.u32 2147483648, %v7318_v60 }
 0x177   : > { %v5449_v24 = vpop.eup %5448  ;;  %4350 = vst.msk [vmem:[%s6306_s14 + $0x198] sm:$0x1f] %vm4298_vm3, %v3636_v17  ;;  %5454 = vrcp.f32 %v7341_v19  ;;  %v7353_v32 = vmul.f32 -1.442695, %v1666_v3  ;;  %v7355_v26 = vmul.f32 -1.442695, %v1689_v20  ;;  %vm3658_vm12 = vweird.f32 %v7318_v60 }
 0x178   : > { %5456 = vrcp.f32 %v7345_v22  ;;  %v7357_v37 = vmul.f32 -1.442695, %v1712_v1  ;;  %v5451_v23 = vpop.eup %5450  ;;  %v3642_v34 = vadd.f32 %v5441_v7, %v3641_v5  ;;  %v7360_v42 = vadd.f32 1.0, %v5447_v21 }
 0x179   : > { %v7362_v45 = vmul.f32 -1.442695, %v1735_v31  ;;  %v5453_v30 = vpop.eup %5452  ;;  %v3677_v47 = vand.u32 2147483647, %v7341_v19  ;;  %v3679_v48 = vand.u32 2147483648, %v7341_v19  ;;  %v7369_v52 = vadd.f32 1.0, %v5449_v24  ;;  %v1758_v24 = vpop.f32.mrf.mxu0 }
 0x17a   : > { %5458 = vpow2.f32 %v5145_v0  ;;  %v3646_v18 = vsel %vm3645_vm13, %v5441_v7, %v3642_v34  ;;  %v3654_v54 = vmul.f32 %v5453_v30, %v7318_v60  ;;  %vm7372_vm14 = vcmp.eq.f32.partialorder %v3662_v27, 8.507059e+37 }
 0x17b   : > { %v3665_v40 = vor.u32 1.1754944e-38, %v3664_v28  ;;  %v3692_v39 = vand.u32 2147483647, %v7345_v22  ;;  %v3651_v46 = vsel %vm7337_vm10, %v3650_v14, %v3646_v18  ;;  %vm3673_vm15 = vweird.f32 %v7341_v19 }
 0x17c   : > { %v3694_v51 = vand.u32 2147483648, %v7345_v22  ;;  %5460 = vrcp.f32 %v7360_v42  ;;  %4351 = vst.msk [vmem:[%s6306_s14 + $0x1a0] sm:$0x1f] %vm4298_vm3, %v3651_v46  ;;  %v3655_v58 = vsub.f32 1.0, %v3654_v54  ;;  %vm3688_vm2 = vweird.f32 %v7345_v22 }
 0x17d   : > { %v5455_v38 = vpop.eup %5454  ;;  %5462 = vrcp.f32 %v7369_v52  ;;  %v7386_v49 = vadd.f32 1.0, %v5451_v23  ;;  %vm3659_vm4 = vweird.f32 %v5453_v30  ;;  %vm7389_vm5 = vcmp.eq.f32.partialorder %v3677_v47, 8.507059e+37 }
 0x17e   : > { %v5457_v25 = vpop.eup %5456  ;;  %v3669_v59 = vmul.f32 %v5455_v38, %v7341_v19  ;;  %v3680_v36 = vor.u32 1.1754944e-38, %v3679_v48  ;;  %v3656_v33 = vmul.f32 %v5453_v30, %v3655_v58  ;;  %vm7394_vm6 = vcmp.eq.f32.partialorder %v3692_v39, 8.507059e+37  ;;  %vm3660_vm7 = vmor %vm3658_vm12, %vm3659_vm4  ;;  %v1781_v48 = vpop.f32.mrf.mxu1 }
 0x17f   : > { %v3684_v61 = vmul.f32 %v5457_v25, %v7345_v22  ;;  %v3707_v62 = vand.u32 2147483647, %v7360_v42  ;;  %v3695_v56 = vor.u32 1.1754944e-38, %v3694_v51  ;;  %vm3703_vm0 = vweird.f32 %v7360_v42 }
 0x180   : > { %v5459_v35 = vpop.eup %5458  ;;  %v3670_v63 = vsub.f32 1.0, %v3669_v59  ;;  %v3709_v43 = vand.u32 2147483648, %v7360_v42  ;;  %v3657_v2 = vadd.f32 %v5453_v30, %v3656_v33  ;;  %vm3674_vm1 = vweird.f32 %v5455_v38 }
 0x181   : > { %v3685_v4 = vsub.f32 1.0, %v3684_v61  ;;  %5464 = vrcp.f32 %v7386_v49  ;;  %vm3689_vm8 = vweird.f32 %v5457_v25  ;;  %vm3718_vm9 = vweird.f32 %v7369_v52  ;;  %vm3675_vm11 = vmor %vm3673_vm15, %vm3674_vm1 }
 0x182   : > { %v5461_v41 = vpop.eup %5460  ;;  %v3671_v7 = vmul.f32 %v5455_v38, %v3670_v63  ;;  %v3722_v29 = vand.u32 2147483647, %v7369_v52  ;;  %v3661_v57 = vsel %vm3660_vm7, %v5453_v30, %v3657_v2  ;;  %vm7408_vm10 = vcmp.eq.f32.partialorder %v3707_v62, 8.507059e+37  ;;  %vm3690_vm13 = vmor %vm3688_vm2, %vm3689_vm8 }
 0x183   : > { %v5463_v6 = vpop.eup %5462  ;;  %v3686_v11 = vmul.f32 %v5457_v25, %v3685_v4  ;;  %v3699_v8 = vmul.f32 %v5461_v41, %v7360_v42  ;;  %v3666_v9 = vsel %vm7372_vm14, %v3665_v40, %v3661_v57  ;;  %v3710_v12 = vor.u32 1.1754944e-38, %v3709_v43 }
 0x184   : > { %v3672_v60 = vadd.f32 %v5455_v38, %v3671_v7  ;;  %v3714_v0 = vmul.f32 %v5463_v6, %v7369_v52  ;;  %4352 = vst.msk [vmem:[%s6306_s14 + $0x1a8] sm:$0x1f] %vm4298_vm3, %v3666_v9  ;;  %vm3704_vm12 = vweird.f32 %v5461_v41  ;;  %v3724_v16 = vand.u32 2147483648, %v7369_v52 }
 0x185   : > { %v3687_v3 = vadd.f32 %v5457_v25, %v3686_v11  ;;  %v3700_v15 = vsub.f32 1.0, %v3699_v8  ;;  %v7424_v20 = vadd.f32 1.0, %v5459_v35  ;;  %5466 = vpow2.f32 %v7353_v32  ;;  %vm3705_vm2 = vmor %vm3703_vm0, %vm3704_vm12 }
 0x186   : > { %v3676_v53 = vsel %vm3675_vm11, %v5455_v38, %v3672_v60  ;;  %v3715_v10 = vsub.f32 1.0, %v3714_v0  ;;  %5468 = vpow2.f32 %v7355_v26  ;;  %vm3719_vm14 = vweird.f32 %v5463_v6 }
 0x187   : > { %v5465_v1 = vpop.eup %5464  ;;  %v3681_v19 = vsel %vm7389_vm5, %v3680_v36, %v3676_v53  ;;  %v3691_v21 = vsel %vm3690_vm13, %v5457_v25, %v3687_v3  ;;  %v3701_v17 = vmul.f32 %v5461_v41, %v3700_v15  ;;  %vm7437_vm15 = vcmp.eq.f32.partialorder %v3722_v29, 8.507059e+37  ;;  %vm3720_vm4 = vmor %vm3718_vm9, %vm3719_vm14  ;;  %v1827_v29 = vpop.f32.mrf.mxu3 }
 0x188   : > { %4353 = vst.msk [vmem:[%s6306_s14 + $0x1b0] sm:$0x1f] %vm4298_vm3, %v3681_v19  ;;  %v3696_v14 = vsel %vm7394_vm6, %v3695_v56, %v3691_v21  ;;  %v3716_v22 = vmul.f32 %v5463_v6, %v3715_v10  ;;  %v3729_v31 = vmul.f32 %v5465_v1, %v7386_v49  ;;  %v3725_v28 = vor.u32 1.1754944e-38, %v3724_v16 }
 0x189   : > { %4354 = vst.msk [vmem:[%s6306_s14 + $0x1b8] sm:$0x1f] %vm4298_vm3, %v3696_v14  ;;  %v3702_v5 = vadd.f32 %v5461_v41, %v3701_v17  ;;  %5470 = vrcp.f32 %v7424_v20  ;;  %v3737_v23 = vand.u32 2147483647, %v7386_v49  ;;  %v3739_v30 = vand.u32 2147483648, %v7386_v49 }
 0x18a   : > { %v3717_v32 = vadd.f32 %v5463_v6, %v3716_v22  ;;  %v3730_v26 = vsub.f32 1.0, %v3729_v31  ;;  %5472 = vpow2.f32 %v7357_v37  ;;  %v5150_v47 = vmul.f32 -1.442695, %v1758_v24 }
 0x18b   : > { %v3706_v34 = vsel %vm3705_vm2, %v5461_v41, %v3702_v5  ;;  %5474 = vpow2.f32 %v7362_v45  ;;  %v5467_v42 = vpop.eup %5466  ;;  %vm3734_vm5 = vweird.f32 %v5465_v1  ;;  %vm3733_vm6 = vweird.f32 %v7386_v49  ;;  %v1804_v49 = vpop.f32.mrf.mxu2 }
 0x18c   : > { %v3711_v18 = vsel %vm7408_vm10, %v3710_v12, %v3706_v34  ;;  %v3721_v54 = vsel %vm3720_vm4, %v5463_v6, %v3717_v32  ;;  %v3731_v44 = vmul.f32 %v5465_v1, %v3730_v26  ;;  %v5469_v40 = vpop.eup %5468  ;;  %v7457_v52 = vadd.f32 1.0, %v5467_v42  ;;  %vm3735_vm0 = vmor %vm3733_vm6, %vm3734_vm5 }
 0x18d   : > { %4355 = vst.msk [vmem:[%s6306_s14 + $0x1c0] sm:$0x1f] %vm4298_vm3, %v3711_v18  ;;  %v3726_v37 = vsel %vm7437_vm15, %v3725_v28, %v3721_v54  ;;  %5476 = vpow2.f32 %v5150_v47  ;;  %v7462_v39 = vadd.f32 1.0, %v5469_v40  ;;  %v5151_v46 = vmul.f32 -1.442695, %v1781_v48  ;;  %v1850_v28 = vpop.f32.mrf.mxu0 }
 0x18e   : > { %4356 = vst.msk [vmem:[%s6306_s14 + $0x1c8] sm:$0x1f] %vm4298_vm3, %v3726_v37  ;;  %v3732_v45 = vadd.f32 %v5465_v1, %v3731_v44  ;;  %vm3738_vm1 = vcmp.eq.f32.partialorder %v3737_v23, 8.507059e+37  ;;  %v3740_v38 = vor.u32 1.1754944e-38, %v3739_v30  ;;  %v3752_v58 = vand.u32 2147483647, %v7424_v20 }
 0x18f   : > { %v5471_v51 = vpop.eup %5470  ;;  %5478 = vrcp.f32 %v7457_v52  ;;  %v3754_v36 = vand.u32 2147483648, %v7424_v20  ;;  %v3769_v50 = vand.u32 2147483648, %v7457_v52  ;;  %vm3748_vm7 = vweird.f32 %v7424_v20 }
 0x190   : > { %v5473_v25 = vpop.eup %5472  ;;  %v3736_v59 = vsel %vm3735_vm0, %v5465_v1, %v3732_v45  ;;  %v3744_v55 = vmul.f32 %v5471_v51, %v7424_v20  ;;  %5480 = vrcp.f32 %v7462_v39  ;;  %v3767_v35 = vand.u32 2147483647, %v7457_v52 }
 0x191   : > { %v5475_v33 = vpop.eup %5474  ;;  %v3741_v61 = vsel %vm3738_vm1, %v3740_v38, %v3736_v59  ;;  %5482 = vpow2.f32 %v5151_v46  ;;  %vm7474_vm8 = vcmp.eq.f32.partialorder %v3752_v58, 8.507059e+37  ;;  %v7478_v43 = vadd.f32 1.0, %v5473_v25 }
 0x192   : > { %4357 = vst.msk [vmem:[%s6306_s14 + $0x1d0] sm:$0x1f] %vm4298_vm3, %v3741_v61  ;;  %v3745_v62 = vsub.f32 1.0, %v3744_v55  ;;  %v7480_v2 = vadd.f32 1.0, %v5475_v33  ;;  %v5152_v4 = vmul.f32 -1.442695, %v1804_v49  ;;  %vm3749_vm9 = vweird.f32 %v5471_v51 }
 0x193   : > { %v5477_v63 = vpop.eup %5476  ;;  %v3755_v7 = vor.u32 1.1754944e-38, %v3754_v36  ;;  %vm3763_vm10 = vweird.f32 %v7457_v52  ;;  %v3770_v57 = vor.u32 1.1754944e-38, %v3769_v50  ;;  %v3782_v11 = vand.u32 2147483647, %v7462_v39  ;;  %vm3750_vm12 = vmor %vm3748_vm7, %vm3749_vm9 }
 0x194   : > { %v3746_v41 = vmul.f32 %v5471_v51, %v3745_v62  ;;  %5484 = vrcp.f32 %v7478_v43  ;;  %v7485_v8 = vadd.f32 1.0, %v5477_v63  ;;  %vm7488_vm11 = vcmp.eq.f32.partialorder %v3767_v35, 8.507059e+37 }
 0x195   : > { %v5479_v6 = vpop.eup %5478  ;;  %v3784_v0 = vand.u32 2147483648, %v7462_v39  ;;  %5486 = vrcp.f32 %v7480_v2  ;;  %vm3778_vm13 = vweird.f32 %v7462_v39  ;;  %v5153_v15 = vmul.f32 -1.442695, %v1827_v29 }
 0x196   : > { %v5481_v13 = vpop.eup %5480  ;;  %v3747_v9 = vadd.f32 %v5471_v51, %v3746_v41  ;;  %v3759_v60 = vmul.f32 %v5479_v6, %v7457_v52  ;;  %5488 = vpow2.f32 %v5152_v4  ;;  %v3797_v1 = vand.u32 2147483647, %v7478_v43  ;;  %v1873_v52 = vpop.f32.mrf.mxu1 }
 0x197   : > { %v3774_v3 = vmul.f32 %v5481_v13, %v7462_v39  ;;  %v5483_v16 = vpop.eup %5482  ;;  %v3799_v19 = vand.u32 2147483648, %v7478_v43  ;;  %v3812_v20 = vand.u32 2147483647, %v7480_v2  ;;  %5490 = vrcp.f32 %v7485_v8 }
 0x198   : > { %v3751_v53 = vsel %vm3750_vm12, %v5471_v51, %v3747_v9  ;;  %v3760_v10 = vsub.f32 1.0, %v3759_v60  ;;  %vm3764_vm14 = vweird.f32 %v5479_v6  ;;  %vm7507_vm15 = vcmp.eq.f32.partialorder %v3782_v11, 8.507059e+37  ;;  %v1942_v11 = vpop.f32.mrf.mxu0 }
 0x199   : > { %v3756_v21 = vsel %vm7474_vm8, %v3755_v7, %v3751_v53  ;;  %v3775_v17 = vsub.f32 1.0, %v3774_v3  ;;  %v3785_v31 = vor.u32 1.1754944e-38, %v3784_v0  ;;  %vm3779_vm2 = vweird.f32 %v5481_v13  ;;  %vm3765_vm0 = vmor %vm3763_vm10, %vm3764_vm14 }
 0x19a   : > { %4358 = vst.msk [vmem:[%s6306_s14 + $0x1d8] sm:$0x1f] %vm4298_vm3, %v3756_v21  ;;  %v3761_v14 = vmul.f32 %v5479_v6, %v3760_v10  ;;  %v5485_v24 = vpop.eup %5484  ;;  %vm3793_vm4 = vweird.f32 %v7478_v43  ;;  %v7512_v27 = vadd.f32 1.0, %v5483_v16  ;;  %vm7515_vm5 = vcmp.eq.f32.partialorder %v3797_v1, 8.507059e+37  ;;  %vm3780_vm7 = vmor %vm3778_vm13, %vm3779_vm2 }
 0x19b   : > { %v3776_v5 = vmul.f32 %v5481_v13, %v3775_v17  ;;  %v5487_v32 = vpop.eup %5486  ;;  %v3789_v23 = vmul.f32 %v5485_v24, %v7478_v43  ;;  %v3800_v30 = vor.u32 1.1754944e-38, %v3799_v19  ;;  %vm3808_vm6 = vweird.f32 %v7480_v2  ;;  %v1896_v43 = vpop.f32.mrf.mxu2 }
 0x19c   : > { %v3762_v26 = vadd.f32 %v5479_v6, %v3761_v14  ;;  %v5489_v47 = vpop.eup %5488  ;;  %v3804_v42 = vmul.f32 %v5487_v32, %v7480_v2  ;;  %vm7524_vm1 = vcmp.eq.f32.partialorder %v3812_v20, 8.507059e+37  ;;  %v3814_v54 = vand.u32 2147483648, %v7480_v2 }
 0x19d   : > { %v3777_v48 = vadd.f32 %v5481_v13, %v3776_v5  ;;  %v3790_v40 = vsub.f32 1.0, %v3789_v23  ;;  %v3827_v37 = vand.u32 2147483647, %v7485_v8  ;;  %5492 = vrcp.f32 %v7512_v27  ;;  %v5491_v45 = vpop.eup %5490 }
 0x19e   : > { %v3766_v44 = vsel %vm3765_vm0, %v5479_v6, %v3762_v26  ;;  %v3805_v38 = vsub.f32 1.0, %v3804_v42  ;;  %v3829_v58 = vand.u32 2147483648, %v7485_v8  ;;  %vm3794_vm8 = vweird.f32 %v5485_v24  ;;  %v1965_v1 = vpop.f32.mrf.mxu1 }
 0x19f   : > { %v3771_v46 = vsel %vm7488_vm11, %v3770_v57, %v3766_v44  ;;  %v3781_v51 = vsel %vm3780_vm7, %v5481_v13, %v3777_v48  ;;  %v3791_v25 = vmul.f32 %v5485_v24, %v3790_v40  ;;  %v3819_v59 = vmul.f32 %v5491_v45, %v7485_v8  ;;  %vm3795_vm11 = vmor %vm3793_vm4, %vm3794_vm8  ;;  %v1919_v57 = vpop.f32.mrf.mxu3 }
 0x1a0   : > { %4359 = vst.msk [vmem:[%s6306_s14 + $0x1e0] sm:$0x1f] %vm4298_vm3, %v3771_v46  ;;  %v3786_v39 = vsel %vm7507_vm15, %v3785_v31, %v3781_v51  ;;  %v3806_v55 = vmul.f32 %v5487_v32, %v3805_v38  ;;  %vm3809_vm9 = vweird.f32 %v5487_v32  ;;  %vm3823_vm10 = vweird.f32 %v7485_v8 }
 0x1a1   : > { %4360 = vst.msk [vmem:[%s6306_s14 + $0x1e8] sm:$0x1f] %vm4298_vm3, %v3786_v39  ;;  %v7545_v36 = vadd.f32 1.0, %v5489_v47  ;;  %v3792_v49 = vadd.f32 %v5485_v24, %v3791_v25  ;;  %v3815_v33 = vor.u32 1.1754944e-38, %v3814_v54  ;;  %v3820_v61 = vsub.f32 1.0, %v3819_v59  ;;  %vm3810_vm13 = vmor %vm3808_vm6, %vm3809_vm9 }
 0x1a2   : > { %5494 = vpow2.f32 %v5153_v15  ;;  %v3807_v50 = vadd.f32 %v5487_v32, %v3806_v55  ;;  %vm7549_vm12 = vcmp.eq.f32.partialorder %v3827_v37, 8.507059e+37  ;;  %v5154_v35 = vmul.f32 -1.442695, %v1850_v28 }
 0x1a3   : > { %5496 = vrcp.f32 %v7545_v36  ;;  %v5493_v63 = vpop.eup %5492  ;;  %v3796_v56 = vsel %vm3795_vm11, %v5485_v24, %v3792_v49  ;;  %v3821_v4 = vmul.f32 %v5491_v45, %v3820_v61  ;;  %vm3824_vm14 = vweird.f32 %v5491_v45  ;;  %v1988_v48 = vpop.f32.mrf.mxu2 }
 0x1a4   : > { %v3830_v41 = vor.u32 1.1754944e-38, %v3829_v58  ;;  %v3801_v7 = vsel %vm7515_vm5, %v3800_v30, %v3796_v56  ;;  %v3811_v29 = vsel %vm3810_vm13, %v5487_v32, %v3807_v50  ;;  %v3834_v6 = vmul.f32 %v5493_v63, %v7512_v27  ;;  %vm3825_vm2 = vmor %vm3823_vm10, %vm3824_vm14 }
 0x1a5   : > { %vm3838_vm15 = vweird.f32 %v7512_v27  ;;  %4361 = vst.msk [vmem:[%s6306_s14 + $0x1f0] sm:$0x1f] %vm4298_vm3, %v3801_v7  ;;  %v3816_v2 = vsel %vm7524_vm1, %v3815_v33, %v3811_v29  ;;  %v3822_v13 = vadd.f32 %v5491_v45, %v3821_v4  ;;  %v3842_v9 = vand.u32 2147483647, %v7512_v27 }
 0x1a6   : > { %v3844_v60 = vand.u32 2147483648, %v7512_v27  ;;  %4362 = vst.msk [vmem:[%s6306_s14 + $0x1f8] sm:$0x1f] %vm4298_vm3, %v3816_v2  ;;  %v3835_v12 = vsub.f32 1.0, %v3834_v6  ;;  %vm3839_vm4 = vweird.f32 %v5493_v63  ;;  %5498 = vpow2.f32 %v5154_v35  ;;  %v2057_v55 = vpop.f32.mrf.mxu1 }
 0x1a7   : > { %v5155_v0 = vmul.f32 -1.442695, %v1873_v52  ;;  %v3826_v15 = vsel %vm3825_vm2, %v5491_v45, %v3822_v13  ;;  %v5156_v16 = vmul.f32 -1.442695, %v1896_v43  ;;  %v5157_v53 = vmul.f32 -1.442695, %v1919_v57  ;;  %vm3840_vm6 = vmor %vm3838_vm15, %vm3839_vm4  ;;  %v2011_v37 = vpop.f32.mrf.mxu3  ;;  %v2034_v52 = vpop.f32.mrf.mxu0 }
 0x1a8   : > { %v5495_v3 = vpop.eup %5494  ;;  %v5158_v10 = vmul.f32 -1.442695, %v1942_v11  ;;  %v3831_v21 = vsel %vm7549_vm12, %v3830_v41, %v3826_v15  ;;  %v3836_v17 = vmul.f32 %v5493_v63, %v3835_v12  ;;  %vm3843_vm5 = vcmp.eq.f32.partialorder %v3842_v9, 8.507059e+37 }
 0x1a9   : > { %v5497_v19 = vpop.eup %5496  ;;  %v7573_v20 = vadd.f32 1.0, %v5495_v3  ;;  %5500 = vpow2.f32 %v5155_v0  ;;  %4363 = vst.msk [vmem:[%s6306_s14 + $0x200] sm:$0x1f] %vm4298_vm3, %v3831_v21  ;;  %v3857_v22 = vand.u32 2147483647, %v7545_v36  ;;  %v3845_v31 = vor.u32 1.1754944e-38, %v3844_v60 }
 0x1aa   : > { %v3849_v8 = vmul.f32 %v5497_v19, %v7545_v36  ;;  %5502 = vpow2.f32 %v5156_v16  ;;  %v3837_v14 = vadd.f32 %v5493_v63, %v3836_v17  ;;  %v3859_v5 = vand.u32 2147483648, %v7545_v36 }
 0x1ab   : > { %5504 = vrcp.f32 %v7573_v20  ;;  %vm3854_vm0 = vweird.f32 %v5497_v19  ;;  %v5159_v26 = vmul.f32 -1.442695, %v1965_v1  ;;  %v3872_v30 = vand.u32 2147483647, %v7573_v20 }
 0x1ac   : > { %v3850_v24 = vsub.f32 1.0, %v3849_v8  ;;  %5506 = vpow2.f32 %v5157_v53  ;;  %v5499_v28 = vpop.eup %5498  ;;  %v3841_v32 = vsel %vm3840_vm6, %v5493_v63, %v3837_v14  ;;  %vm3853_vm1 = vweird.f32 %v7545_v36 }
 0x1ad   : > { %5508 = vpow2.f32 %v5158_v10  ;;  %v3846_v23 = vsel %vm3843_vm5, %v3845_v31, %v3841_v32  ;;  %v7585_v47 = vadd.f32 1.0, %v5499_v28  ;;  %vm7590_vm7 = vcmp.eq.f32.partialorder %v3857_v22, 8.507059e+37  ;;  %vm3855_vm8 = vmor %vm3853_vm1, %vm3854_vm0 }
 0x1ae   : > { %v3851_v34 = vmul.f32 %v5497_v19, %v3850_v24  ;;  %4364 = vst.msk [vmem:[%s6306_s14 + $0x208] sm:$0x1f] %vm4298_vm3, %v3846_v23  ;;  %v3860_v44 = vor.u32 1.1754944e-38, %v3859_v5  ;;  %v3874_v40 = vand.u32 2147483648, %v7573_v20  ;;  %vm3868_vm9 = vweird.f32 %v7573_v20 }
 0x1af   : > { %v5501_v27 = vpop.eup %5500  ;;  %5510 = vrcp.f32 %v7585_v47  ;;  %v5160_v38 = vmul.f32 -1.442695, %v1988_v48  ;;  %vm7603_vm10 = vcmp.eq.f32.partialorder %v3872_v30, 8.507059e+37  ;;  %v5161_v33 = vmul.f32 -1.442695, %v2011_v37  ;;  %v2126_v10 = vpop.f32.mrf.mxu0 }
 0x1b0   : > { %v5503_v18 = vpop.eup %5502  ;;  %v3852_v54 = vadd.f32 %v5497_v19, %v3851_v34  ;;  %v7598_v46 = vadd.f32 1.0, %v5501_v27  ;;  %5512 = vpow2.f32 %v5159_v26  ;;  %v5162_v61 = vmul.f32 -1.442695, %v2034_v52 }
 0x1b1   : > { %v5505_v45 = vpop.eup %5504  ;;  %v7600_v51 = vadd.f32 1.0, %v5503_v18  ;;  %v3875_v62 = vor.u32 1.1754944e-38, %v3874_v40  ;;  %v3887_v35 = vand.u32 2147483647, %v7585_v47  ;;  %v3889_v63 = vand.u32 2147483648, %v7585_v47 }
 0x1b2   : > { %v5507_v58 = vpop.eup %5506  ;;  %v3856_v39 = vsel %vm3855_vm8, %v5497_v19, %v3852_v54  ;;  %v3864_v25 = vmul.f32 %v5505_v45, %v7573_v20  ;;  %5514 = vrcp.f32 %v7598_v46  ;;  %vm3869_vm11 = vweird.f32 %v5505_v45 }
 0x1b3   : > { %v5509_v36 = vpop.eup %5508  ;;  %v3861_v49 = vsel %vm7590_vm7, %v3860_v44, %v3856_v39  ;;  %5516 = vrcp.f32 %v7600_v51  ;;  %v7615_v56 = vadd.f32 1.0, %v5507_v58  ;;  %v7617_v4 = vmul.f32 -1.442695, %v2057_v55  ;;  %vm3870_vm14 = vmor %vm3868_vm9, %vm3869_vm11 }
 0x1b4   : > { %4365 = vst.msk [vmem:[%s6306_s14 + $0x210] sm:$0x1f] %vm4298_vm3, %v3861_v49  ;;  %v3865_v50 = vsub.f32 1.0, %v3864_v25  ;;  %v3902_v7 = vand.u32 2147483647, %v7598_v46  ;;  %v3904_v29 = vand.u32 2147483648, %v7598_v46  ;;  %vm3883_vm12 = vweird.f32 %v7585_v47 }
 0x1b5   : > { %v5511_v41 = vpop.eup %5510  ;;  %v7621_v6 = vadd.f32 1.0, %v5509_v36  ;;  %v3917_v11 = vand.u32 2147483647, %v7600_v51  ;;  %5518 = vpow2.f32 %v5160_v38  ;;  %vm7626_vm13 = vcmp.eq.f32.partialorder %v3887_v35, 8.507059e+37 }
 0x1b6   : > { %v3866_v43 = vmul.f32 %v5505_v45, %v3865_v50  ;;  %v3879_v57 = vmul.f32 %v5511_v41, %v7585_v47  ;;  %v5513_v2 = vpop.eup %5512  ;;  %v3919_v60 = vand.u32 2147483648, %v7600_v51  ;;  %5520 = vrcp.f32 %v7615_v56 }
 0x1b7   : > { %v3890_v3 = vor.u32 1.1754944e-38, %v3889_v63  ;;  %vm3898_vm15 = vweird.f32 %v7598_v46  ;;  %5522 = vrcp.f32 %v7621_v6  ;;  %vm3884_vm2 = vweird.f32 %v5511_v41  ;;  %v2080_v63 = vpop.f32.mrf.mxu2 }
 0x1b8   : > { %v3867_v13 = vadd.f32 %v5505_v45, %v3866_v43  ;;  %v5515_v12 = vpop.eup %5514  ;;  %v3880_v0 = vsub.f32 1.0, %v3879_v57  ;;  %vm7638_vm4 = vcmp.eq.f32.partialorder %v3902_v7, 8.507059e+37  ;;  %v3905_v1 = vor.u32 1.1754944e-38, %v3904_v29  ;;  %vm3885_vm1 = vmor %vm3883_vm12, %vm3884_vm2 }
 0x1b9   : > { %v5517_v15 = vpop.eup %5516  ;;  %v3894_v53 = vmul.f32 %v5515_v12, %v7598_v46  ;;  %vm7645_vm5 = vcmp.eq.f32.partialorder %v3917_v11, 8.507059e+37  ;;  %vm3913_vm6 = vweird.f32 %v7600_v51  ;;  %v3920_v14 = vor.u32 1.1754944e-38, %v3919_v60 }
 0x1ba   : > { %v3871_v16 = vsel %vm3870_vm14, %v5505_v45, %v3867_v13  ;;  %v3881_v21 = vmul.f32 %v5511_v41, %v3880_v0  ;;  %v3909_v17 = vmul.f32 %v5517_v15, %v7600_v51  ;;  %v3932_v22 = vand.u32 2147483647, %v7615_v56 }
 0x1bb   : > { %v3876_v19 = vsel %vm7603_vm10, %v3875_v62, %v3871_v16  ;;  %v3895_v8 = vsub.f32 1.0, %v3894_v53  ;;  %v5519_v31 = vpop.eup %5518  ;;  %vm3928_vm0 = vweird.f32 %v7615_v56  ;;  %v7654_v28 = vadd.f32 1.0, %v5513_v2 }
 0x1bc   : > { %4366 = vst.msk [vmem:[%s6306_s14 + $0x218] sm:$0x1f] %vm4298_vm3, %v3876_v19  ;;  %v3882_v24 = vadd.f32 %v5511_v41, %v3881_v21  ;;  %v3910_v5 = vsub.f32 1.0, %v3909_v17  ;;  %5524 = vpow2.f32 %v5161_v33  ;;  %v5521_v32 = vpop.eup %5520  ;;  %vm3899_vm7 = vweird.f32 %v5515_v12 }
 0x1bd   : > { %v3896_v26 = vmul.f32 %v5515_v12, %v3895_v8  ;;  %v3934_v23 = vand.u32 2147483648, %v7615_v56  ;;  %5526 = vpow2.f32 %v5162_v61  ;;  %v5523_v34 = vpop.eup %5522  ;;  %vm3914_vm8 = vweird.f32 %v5517_v15  ;;  %vm3900_vm9 = vmor %vm3898_vm15, %vm3899_vm7 }
 0x1be   : > { %v3886_v30 = vsel %vm3885_vm1, %v5511_v41, %v3882_v24  ;;  %v3911_v48 = vmul.f32 %v5517_v15, %v3910_v5  ;;  %v3924_v27 = vmul.f32 %v5521_v32, %v7615_v56  ;;  %v3939_v54 = vmul.f32 %v5523_v34, %v7621_v6  ;;  %vm3915_vm10 = vmor %vm3913_vm6, %vm3914_vm8 }
 0x1bf   : > { %v3891_v42 = vsel %vm7626_vm13, %v3890_v3, %v3886_v30  ;;  %v3897_v18 = vadd.f32 %v5515_v12, %v3896_v26  ;;  %v7664_v44 = vadd.f32 1.0, %v5519_v31  ;;  %v3947_v37 = vand.u32 2147483647, %v7621_v6  ;;  %v2149_v31 = vpop.f32.mrf.mxu1 }
 0x1c0   : > { %4367 = vst.msk [vmem:[%s6306_s14 + $0x220] sm:$0x1f] %vm4298_vm3, %v3891_v42  ;;  %v3912_v47 = vadd.f32 %v5517_v15, %v3911_v48  ;;  %v3925_v40 = vsub.f32 1.0, %v3924_v27  ;;  %5528 = vrcp.f32 %v7654_v28  ;;  %v3940_v45 = vsub.f32 1.0, %v3939_v54 }
 0x1c1   : > { %v3901_v52 = vsel %vm3900_vm9, %v5515_v12, %v3897_v18  ;;  %vm3943_vm11 = vweird.f32 %v7621_v6  ;;  %v3949_v38 = vand.u32 2147483648, %v7621_v6  ;;  %vm3929_vm12 = vweird.f32 %v5521_v32  ;;  %v2103_v12 = vpop.f32.mrf.mxu3  ;;  %v2172_v18 = vpop.f32.mrf.mxu2 }
 0x1c2   : > { %v5525_v58 = vpop.eup %5524  ;;  %v3906_v46 = vsel %vm7638_vm4, %v3905_v1, %v3901_v52  ;;  %v3916_v39 = vsel %vm3915_vm10, %v5517_v15, %v3912_v47  ;;  %v3926_v25 = vmul.f32 %v5521_v32, %v3925_v40  ;;  %v3941_v55 = vmul.f32 %v5523_v34, %v3940_v45  ;;  %vm3930_vm2 = vmor %vm3928_vm0, %vm3929_vm12 }
 0x1c3   : > { %v5527_v59 = vpop.eup %5526  ;;  %4368 = vst.msk [vmem:[%s6306_s14 + $0x228] sm:$0x1f] %vm4298_vm3, %v3906_v46  ;;  %v3921_v51 = vsel %vm7645_vm5, %v3920_v14, %v3916_v39  ;;  %vm3944_vm13 = vweird.f32 %v5523_v34  ;;  %5530 = vrcp.f32 %v7664_v44  ;;  %vm3933_vm14 = vcmp.eq.f32.partialorder %v3932_v22, 8.507059e+37 }
 0x1c4   : > { %4369 = vst.msk [vmem:[%s6306_s14 + $0x230] sm:$0x1f] %vm4298_vm3, %v3921_v51  ;;  %v3927_v36 = vadd.f32 %v5521_v32, %v3926_v25  ;;  %v3935_v49 = vor.u32 1.1754944e-38, %v3934_v23  ;;  %vm7685_vm15 = vcmp.eq.f32.partialorder %v3947_v37, 8.507059e+37  ;;  %v3942_v61 = vadd.f32 %v5523_v34, %v3941_v55  ;;  %vm3945_vm4 = vmor %vm3943_vm11, %vm3944_vm13 }
 0x1c5   : > { %v3950_v50 = vor.u32 1.1754944e-38, %v3949_v38  ;;  %v7691_v62 = vadd.f32 1.0, %v5525_v58  ;;  %v7693_v35 = vadd.f32 1.0, %v5527_v59  ;;  %v3962_v7 = vand.u32 2147483647, %v7654_v28 }
 0x1c6   : > { %v5529_v41 = vpop.eup %5528  ;;  %v3931_v43 = vsel %vm3930_vm2, %v5521_v32, %v3927_v36  ;;  %v3964_v56 = vand.u32 2147483648, %v7654_v28  ;;  %5532 = vpow2.f32 %v7617_v4  ;;  %v3946_v57 = vsel %vm3945_vm4, %v5523_v34, %v3942_v61 }
 0x1c7   : > { %v3936_v29 = vsel %vm3933_vm14, %v3935_v49, %v3931_v43  ;;  %v3954_v11 = vmul.f32 %v5529_v41, %v7654_v28  ;;  %v3977_v2 = vand.u32 2147483647, %v7664_v44  ;;  %v3951_v13 = vsel %vm7685_vm15, %v3950_v50, %v3946_v57  ;;  %v2241_v0 = vpop.f32.mrf.mxu1 }
 0x1c8   : > { %4370 = vst.msk [vmem:[%s6306_s14 + $0x238] sm:$0x1f] %vm4298_vm3, %v3936_v29  ;;  %v3979_v6 = vand.u32 2147483648, %v7664_v44  ;;  %5534 = vrcp.f32 %v7691_v62  ;;  %v5164_v9 = vmul.f32 -1.442695, %v2080_v63  ;;  %vm3958_vm5 = vweird.f32 %v7654_v28 }
 0x1c9   : > { %v5531_v60 = vpop.eup %5530  ;;  %4371 = vst.msk [vmem:[%s6306_s14 + $0x240] sm:$0x1f] %vm4298_vm3, %v3951_v13  ;;  %v3955_v4 = vsub.f32 1.0, %v3954_v11  ;;  %5536 = vrcp.f32 %v7693_v35  ;;  %vm7713_vm6 = vcmp.eq.f32.partialorder %v3962_v7, 8.507059e+37  ;;  %v3965_v3 = vor.u32 1.1754944e-38, %v3964_v56  ;;  %v2195_v39 = vpop.f32.mrf.mxu3 }
 0x1ca   : > { %v3969_v15 = vmul.f32 %v5531_v60, %v7664_v44  ;;  %vm3959_vm0 = vweird.f32 %v5529_v41  ;;  %vm3973_vm1 = vweird.f32 %v7664_v44  ;;  %vm7719_vm7 = vcmp.eq.f32.partialorder %v3977_v2, 8.507059e+37  ;;  %v2218_v2 = vpop.f32.mrf.mxu0 }
 0x1cb   : > { %v3956_v16 = vmul.f32 %v5529_v41, %v3955_v4  ;;  %v3980_v21 = vor.u32 1.1754944e-38, %v3979_v6  ;;  %5538 = vpow2.f32 %v5164_v9  ;;  %v5165_v17 = vmul.f32 -1.442695, %v2103_v12  ;;  %vm3960_vm9 = vmor %vm3958_vm5, %vm3959_vm0 }
 0x1cc   : > { %v5533_v1 = vpop.eup %5532  ;;  %v3970_v19 = vsub.f32 1.0, %v3969_v15  ;;  %vm3988_vm8 = vweird.f32 %v7691_v62  ;;  %v3992_v8 = vand.u32 2147483647, %v7691_v62  ;;  %v3994_v14 = vand.u32 2147483648, %v7691_v62 }
 0x1cd   : > { %v3957_v20 = vadd.f32 %v5529_v41, %v3956_v16  ;;  %v7726_v22 = vadd.f32 1.0, %v5533_v1  ;;  %vm3974_vm10 = vweird.f32 %v5531_v60  ;;  %5540 = vpow2.f32 %v5165_v17 }
 0x1ce   : > { %v5535_v24 = vpop.eup %5534  ;;  %v3971_v5 = vmul.f32 %v5531_v60, %v3970_v19  ;;  %v5166_v32 = vmul.f32 -1.442695, %v2126_v10  ;;  %v4007_v30 = vand.u32 2147483647, %v7693_v35  ;;  %v5167_v42 = vmul.f32 -1.442695, %v2149_v31  ;;  %vm3975_vm11 = vmor %vm3973_vm1, %vm3974_vm10 }
 0x1cf   : > { %v5537_v26 = vpop.eup %5536  ;;  %v3961_v23 = vsel %vm3960_vm9, %v5529_v41, %v3957_v20  ;;  %v3984_v34 = vmul.f32 %v5535_v24, %v7691_v62  ;;  %5542 = vrcp.f32 %v7726_v22  ;;  %vm7741_vm12 = vcmp.eq.f32.partialorder %v3992_v8, 8.507059e+37 }
 0x1d0   : > { %v3966_v48 = vsel %vm7713_vm6, %v3965_v3, %v3961_v23  ;;  %v3972_v27 = vadd.f32 %v5531_v60, %v3971_v5  ;;  %v3999_v28 = vmul.f32 %v5537_v26, %v7693_v35  ;;  %v3995_v40 = vor.u32 1.1754944e-38, %v3994_v14 }
 0x1d1   : > { %4372 = vst.msk [vmem:[%s6306_s14 + $0x248] sm:$0x1f] %vm4298_vm3, %v3966_v48  ;;  %v3985_v54 = vsub.f32 1.0, %v3984_v34  ;;  %vm4003_vm13 = vweird.f32 %v7693_v35  ;;  %v5539_v37 = vpop.eup %5538  ;;  %v4009_v38 = vand.u32 2147483648, %v7693_v35  ;;  %5544 = vpow2.f32 %v5166_v32  ;;  %v2287_v31 = vpop.f32.mrf.mxu3 }
 0x1d2   : > { %v3976_v52 = vsel %vm3975_vm11, %v5531_v60, %v3972_v27  ;;  %v4000_v45 = vsub.f32 1.0, %v3999_v28  ;;  %vm3989_vm14 = vweird.f32 %v5535_v24  ;;  %v5168_v46 = vmul.f32 -1.442695, %v2172_v18 }
 0x1d3   : > { %v3981_v58 = vsel %vm7719_vm7, %v3980_v21, %v3976_v52  ;;  %v3986_v44 = vmul.f32 %v5535_v24, %v3985_v54  ;;  %v5541_v25 = vpop.eup %5540  ;;  %vm4004_vm15 = vweird.f32 %v5537_v26  ;;  %v7751_v51 = vadd.f32 1.0, %v5539_v37  ;;  %vm3990_vm4 = vmor %vm3988_vm8, %vm3989_vm14  ;;  %v2264_v21 = vpop.f32.mrf.mxu2 }
 0x1d4   : > { %4373 = vst.msk [vmem:[%s6306_s14 + $0x250] sm:$0x1f] %vm4298_vm3, %v3981_v58  ;;  %v4001_v59 = vmul.f32 %v5537_v26, %v4000_v45  ;;  %5546 = vpow2.f32 %v5167_v42  ;;  %vm7753_vm2 = vcmp.eq.f32.partialorder %v4007_v30, 8.507059e+37  ;;  %v4022_v33 = vand.u32 2147483647, %v7726_v22  ;;  %vm4005_vm5 = vmor %vm4003_vm13, %vm4004_vm15 }
 0x1d5   : > { %v5543_v55 = vpop.eup %5542  ;;  %v3987_v36 = vadd.f32 %v5535_v24, %v3986_v44  ;;  %v7758_v61 = vadd.f32 1.0, %v5541_v25  ;;  %v4010_v63 = vor.u32 1.1754944e-38, %v4009_v38  ;;  %5548 = vrcp.f32 %v7751_v51 }
 0x1d6   : > { %v4002_v50 = vadd.f32 %v5537_v26, %v4001_v59  ;;  %v4014_v41 = vmul.f32 %v5543_v55, %v7726_v22  ;;  %v4024_v7 = vand.u32 2147483648, %v7726_v22  ;;  %5550 = vpow2.f32 %v5168_v46 }
 0x1d7   : > { %v3991_v43 = vsel %vm3990_vm4, %v5535_v24, %v3987_v36  ;;  %v5169_v56 = vmul.f32 -1.442695, %v2195_v39  ;;  %v5545_v29 = vpop.eup %5544  ;;  %5552 = vrcp.f32 %v7758_v61  ;;  %vm4018_vm6 = vweird.f32 %v7726_v22 }
 0x1d8   : > { %v3996_v62 = vsel %vm7741_vm12, %v3995_v40, %v3991_v43  ;;  %v4006_v57 = vsel %vm4005_vm5, %v5537_v26, %v4002_v50  ;;  %v4015_v11 = vsub.f32 1.0, %v4014_v41  ;;  %vm7775_vm0 = vcmp.eq.f32.partialorder %v4022_v33, 8.507059e+37  ;;  %v2310_v43 = vpop.f32.mrf.mxu0 }
 0x1d9   : > { %4374 = vst.msk [vmem:[%s6306_s14 + $0x258] sm:$0x1f] %vm4298_vm3, %v3996_v62  ;;  %v4011_v35 = vsel %vm7753_vm2, %v4010_v63, %v4006_v57  ;;  %v4037_v6 = vand.u32 2147483647, %v7751_v51  ;;  %vm4019_vm1 = vweird.f32 %v5543_v55  ;;  %v4039_v4 = vand.u32 2147483648, %v7751_v51 }
 0x1da   : > { %v5547_v9 = vpop.eup %5546  ;;  %4375 = vst.msk [vmem:[%s6306_s14 + $0x260] sm:$0x1f] %vm4298_vm3, %v4011_v35  ;;  %v4016_v60 = vmul.f32 %v5543_v55, %v4015_v11  ;;  %v7783_v12 = vadd.f32 1.0, %v5545_v29  ;;  %v4025_v3 = vor.u32 1.1754944e-38, %v4024_v7  ;;  %5554 = vpow2.f32 %v5169_v56  ;;  %vm4020_vm7 = vmor %vm4018_vm6, %vm4019_vm1 }
 0x1db   : > { %v7785_v15 = vadd.f32 1.0, %v5547_v9  ;;  %v5170_v16 = vmul.f32 -1.442695, %v2218_v2  ;;  %v5549_v53 = vpop.eup %5548  ;;  %v4052_v1 = vand.u32 2147483647, %v7758_v61  ;;  %v4054_v19 = vand.u32 2147483648, %v7758_v61 }
 0x1dc   : > { %v4017_v10 = vadd.f32 %v5543_v55, %v4016_v60  ;;  %5556 = vrcp.f32 %v7783_v12  ;;  %v5551_v17 = vpop.eup %5550  ;;  %v4029_v20 = vmul.f32 %v5549_v53, %v7751_v51  ;;  %vm4033_vm8 = vweird.f32 %v7751_v51 }
 0x1dd   : > { %vm7795_vm9 = vcmp.eq.f32.partialorder %v4037_v6, 8.507059e+37  ;;  %v5171_v14 = vmul.f32 -1.442695, %v2241_v0  ;;  %v5553_v24 = vpop.eup %5552  ;;  %v4040_v32 = vor.u32 1.1754944e-38, %v4039_v4  ;;  %vm4048_vm10 = vweird.f32 %v7758_v61 }
 0x1de   : > { %v4021_v5 = vsel %vm4020_vm7, %v5543_v55, %v4017_v10  ;;  %5558 = vrcp.f32 %v7785_v15  ;;  %v4030_v26 = vsub.f32 1.0, %v4029_v20  ;;  %v4044_v23 = vmul.f32 %v5553_v24, %v7758_v61 }
 0x1df   : > { %v4026_v22 = vsel %vm7775_vm0, %v4025_v3, %v4021_v5  ;;  %v5172_v34 = vmul.f32 -1.442695, %v2264_v21  ;;  %vm7806_vm11 = vcmp.eq.f32.partialorder %v4052_v1, 8.507059e+37  ;;  %v4055_v48 = vor.u32 1.1754944e-38, %v4054_v19 }
 0x1e0   : > { %4376 = vst.msk [vmem:[%s6306_s14 + $0x268] sm:$0x1f] %vm4298_vm3, %v4026_v22  ;;  %5560 = vpow2.f32 %v5170_v16  ;;  %v7810_v27 = vmul.f32 -1.442695, %v2287_v31  ;;  %v5555_v28 = vpop.eup %5554  ;;  %v4031_v42 = vmul.f32 %v5549_v53, %v4030_v26  ;;  %vm4034_vm12 = vweird.f32 %v5549_v53  ;;  %v2333_v16 = vpop.f32.mrf.mxu1 }
 0x1e1   : > { %v4045_v18 = vsub.f32 1.0, %v4044_v23  ;;  %v7812_v54 = vadd.f32 1.0, %v5551_v17  ;;  %vm4049_vm13 = vweird.f32 %v5553_v24  ;;  %vm4063_vm14 = vweird.f32 %v7783_v12  ;;  %vm4035_vm15 = vmor %vm4033_vm8, %vm4034_vm12  ;;  %v2356_v26 = vpop.f32.mrf.mxu2 }
 0x1e2   : > { %v5557_v47 = vpop.eup %5556  ;;  %v4067_v40 = vand.u32 2147483647, %v7783_v12  ;;  %5562 = vpow2.f32 %v5171_v14  ;;  %v4032_v37 = vadd.f32 %v5549_v53, %v4031_v42  ;;  %v7817_v38 = vadd.f32 1.0, %v5555_v28  ;;  %vm4050_vm4 = vmor %vm4048_vm10, %vm4049_vm13 }
 0x1e3   : > { %v4046_v52 = vmul.f32 %v5553_v24, %v4045_v18  ;;  %v4059_v45 = vmul.f32 %v5557_v47, %v7783_v12  ;;  %v4069_v44 = vand.u32 2147483648, %v7783_v12  ;;  %vm4078_vm2 = vweird.f32 %v7785_v15 }
 0x1e4   : > { %v5559_v58 = vpop.eup %5558  ;;  %v4082_v46 = vand.u32 2147483647, %v7785_v15  ;;  %5564 = vrcp.f32 %v7812_v54  ;;  %v4036_v39 = vsel %vm4035_vm15, %v5549_v53, %v4032_v37  ;;  %vm4064_vm5 = vweird.f32 %v5557_v47 }
 0x1e5   : > { %v4047_v25 = vadd.f32 %v5553_v24, %v4046_v52  ;;  %v4060_v59 = vsub.f32 1.0, %v4059_v45  ;;  %v4074_v55 = vmul.f32 %v5559_v58, %v7785_v15  ;;  %v4041_v49 = vsel %vm7795_vm9, %v4040_v32, %v4036_v39  ;;  %vm4065_vm7 = vmor %vm4063_vm14, %vm4064_vm5 }
 0x1e6   : > { %v5561_v36 = vpop.eup %5560  ;;  %vm7831_vm6 = vcmp.eq.f32.partialorder %v4067_v40, 8.507059e+37  ;;  %v4084_v33 = vand.u32 2147483648, %v7785_v15  ;;  %4377 = vst.msk [vmem:[%s6306_s14 + $0x270] sm:$0x1f] %vm4298_vm3, %v4041_v49  ;;  %5566 = vrcp.f32 %v7817_v38  ;;  %v4070_v56 = vor.u32 1.1754944e-38, %v4069_v44  ;;  %v2379_v40 = vpop.f32.mrf.mxu3 }
 0x1e7   : > { %v4051_v50 = vsel %vm4050_vm4, %v5553_v24, %v4047_v25  ;;  %v4061_v63 = vmul.f32 %v5557_v47, %v4060_v59  ;;  %v4075_v41 = vsub.f32 1.0, %v4074_v55  ;;  %vm7841_vm0 = vcmp.eq.f32.partialorder %v4082_v46, 8.507059e+37 }
 0x1e8   : > { %v5563_v7 = vpop.eup %5562  ;;  %v4056_v61 = vsel %vm7806_vm11, %v4055_v48, %v4051_v50  ;;  %v4097_v62 = vand.u32 2147483647, %v7812_v54  ;;  %vm4079_vm1 = vweird.f32 %v5559_v58  ;;  %v7848_v2 = vadd.f32 1.0, %v5561_v36 }
 0x1e9   : > { %4378 = vst.msk [vmem:[%s6306_s14 + $0x278] sm:$0x1f] %vm4298_vm3, %v4056_v61  ;;  %v4062_v57 = vadd.f32 %v5557_v47, %v4061_v63  ;;  %v4076_v11 = vmul.f32 %v5559_v58, %v4075_v41  ;;  %v4085_v13 = vor.u32 1.1754944e-38, %v4084_v33  ;;  %v7853_v6 = vadd.f32 1.0, %v5563_v7  ;;  %vm4080_vm8 = vmor %vm4078_vm2, %vm4079_vm1 }
 0x1ea   : > { %v5565_v35 = vpop.eup %5564  ;;  %5568 = vpow2.f32 %v5172_v34  ;;  %v5174_v9 = vmul.f32 -1.442695, %v2310_v43  ;;  %v4099_v3 = vand.u32 2147483648, %v7812_v54  ;;  %vm4093_vm9 = vweird.f32 %v7812_v54 }
 0x1eb   : > { %v4066_v60 = vsel %vm4065_vm7, %v5557_v47, %v4062_v57  ;;  %v4077_v4 = vadd.f32 %v5559_v58, %v4076_v11  ;;  %v4089_v0 = vmul.f32 %v5565_v35, %v7812_v54  ;;  %v4112_v12 = vand.u32 2147483647, %v7817_v38  ;;  %v2402_v11 = vpop.f32.mrf.mxu0 }
 0x1ec   : > { %v4071_v53 = vsel %vm7831_vm6, %v4070_v56, %v4066_v60  ;;  %5570 = vrcp.f32 %v7848_v2  ;;  %v5567_v10 = vpop.eup %5566  ;;  %vm7866_vm10 = vcmp.eq.f32.partialorder %v4097_v62, 8.507059e+37  ;;  %v4114_v17 = vand.u32 2147483648, %v7817_v38 }
 0x1ed   : > { %4379 = vst.msk [vmem:[%s6306_s14 + $0x280] sm:$0x1f] %vm4298_vm3, %v4071_v53  ;;  %v4081_v1 = vsel %vm4080_vm8, %v5559_v58, %v4077_v4  ;;  %v4090_v19 = vsub.f32 1.0, %v4089_v0  ;;  %v4104_v20 = vmul.f32 %v5567_v10, %v7817_v38  ;;  %5572 = vrcp.f32 %v7853_v6  ;;  %v2425_v0 = vpop.f32.mrf.mxu1 }
 0x1ee   : > { %v4086_v15 = vsel %vm7841_vm0, %v4085_v13, %v4081_v1  ;;  %v5175_v8 = vmul.f32 -1.442695, %v2333_v16  ;;  %vm4094_vm11 = vweird.f32 %v5565_v35  ;;  %v4100_v31 = vor.u32 1.1754944e-38, %v4099_v3  ;;  %v2471_v54 = vpop.f32.mrf.mxu3 }
 0x1ef   : > { %4380 = vst.msk [vmem:[%s6306_s14 + $0x288] sm:$0x1f] %vm4298_vm3, %v4086_v15  ;;  %v4091_v14 = vmul.f32 %v5565_v35, %v4090_v19  ;;  %vm4108_vm12 = vweird.f32 %v7817_v38  ;;  %v4105_v5 = vsub.f32 1.0, %v4104_v20  ;;  %vm7878_vm13 = vcmp.eq.f32.partialorder %v4112_v12, 8.507059e+37  ;;  %vm4095_vm14 = vmor %vm4093_vm9, %vm4094_vm11 }
 0x1f0   : > { %v5569_v24 = vpop.eup %5568  ;;  %v4127_v22 = vand.u32 2147483647, %v7848_v2  ;;  %5574 = vpow2.f32 %v7810_v27  ;;  %v4129_v34 = vand.u32 2147483648, %v7848_v2  ;;  %vm4109_vm15 = vweird.f32 %v5567_v10 }
 0x1f1   : > { %v4092_v23 = vadd.f32 %v5565_v35, %v4091_v14  ;;  %v7885_v30 = vadd.f32 1.0, %v5569_v24  ;;  %5576 = vpow2.f32 %v5174_v9  ;;  %v4106_v28 = vmul.f32 %v5567_v10, %v4105_v5  ;;  %vm4110_vm5 = vmor %vm4108_vm12, %vm4109_vm15 }
 0x1f2   : > { %v5571_v48 = vpop.eup %5570  ;;  %v4115_v42 = vor.u32 1.1754944e-38, %v4114_v17  ;;  %5578 = vpow2.f32 %v5175_v8  ;;  %v5176_v27 = vmul.f32 -1.442695, %v2356_v26  ;;  %vm4123_vm2 = vweird.f32 %v7848_v2 }
 0x1f3   : > { %v4096_v18 = vsel %vm4095_vm14, %v5565_v35, %v4092_v23  ;;  %v4119_v47 = vmul.f32 %v5571_v48, %v7848_v2  ;;  %5580 = vrcp.f32 %v7885_v30  ;;  %v5573_v37 = vpop.eup %5572  ;;  %v4107_v45 = vadd.f32 %v5567_v10, %v4106_v28 }
 0x1f4   : > { %v4101_v52 = vsel %vm7866_vm10, %v4100_v31, %v4096_v18  ;;  %vm7894_vm4 = vcmp.eq.f32.partialorder %v4127_v22, 8.507059e+37  ;;  %v4130_v44 = vor.u32 1.1754944e-38, %v4129_v34  ;;  %v4134_v46 = vmul.f32 %v5573_v37, %v7853_v6 }
 0x1f5   : > { %4381 = vst.msk [vmem:[%s6306_s14 + $0x290] sm:$0x1f] %vm4298_vm3, %v4101_v52  ;;  %v4120_v58 = vsub.f32 1.0, %v4119_v47  ;;  %v4142_v39 = vand.u32 2147483647, %v7853_v6  ;;  %v4111_v59 = vsel %vm4110_vm5, %v5567_v10, %v4107_v45  ;;  %vm4124_vm6 = vweird.f32 %v5571_v48  ;;  %v2448_v45 = vpop.f32.mrf.mxu2 }
 0x1f6   : > { %v5575_v25 = vpop.eup %5574  ;;  %v4144_v55 = vand.u32 2147483648, %v7853_v6  ;;  %v5177_v36 = vmul.f32 -1.442695, %v2379_v40  ;;  %v4116_v51 = vsel %vm7878_vm13, %v4115_v42, %v4111_v59  ;;  %v4135_v38 = vsub.f32 1.0, %v4134_v46  ;;  %vm4125_vm7 = vmor %vm4123_vm2, %vm4124_vm6 }
 0x1f7   : > { %v5577_v49 = vpop.eup %5576  ;;  %v4121_v33 = vmul.f32 %v5571_v48, %v4120_v58  ;;  %5582 = vpow2.f32 %v5176_v27  ;;  %4382 = vst.msk [vmem:[%s6306_s14 + $0x298] sm:$0x1f] %vm4298_vm3, %v4116_v51  ;;  %v4157_v63 = vand.u32 2147483647, %v7885_v30  ;;  %v7910_v41 = vadd.f32 1.0, %v5575_v25 }
 0x1f8   : > { %v5579_v50 = vpop.eup %5578  ;;  %v7912_v43 = vadd.f32 1.0, %v5577_v49  ;;  %5584 = vpow2.f32 %v5177_v36  ;;  %v4136_v56 = vmul.f32 %v5573_v37, %v4135_v38  ;;  %vm4138_vm0 = vweird.f32 %v7853_v6 }
 0x1f9   : > { %v5581_v7 = vpop.eup %5580  ;;  %v4122_v61 = vadd.f32 %v5571_v48, %v4121_v33  ;;  %vm4139_vm1 = vweird.f32 %v5573_v37  ;;  %vm7918_vm8 = vcmp.eq.f32.partialorder %v4142_v39, 8.507059e+37  ;;  %5586 = vrcp.f32 %v7910_v41 }
 0x1fa   : > { %v4149_v62 = vmul.f32 %v5581_v7, %v7885_v30  ;;  %v7924_v57 = vadd.f32 1.0, %v5579_v50  ;;  %v4137_v13 = vadd.f32 %v5573_v37, %v4136_v56  ;;  %v4145_v6 = vor.u32 1.1754944e-38, %v4144_v55  ;;  %vm4140_vm9 = vmor %vm4138_vm0, %vm4139_vm1 }
 0x1fb   : > { %v4126_v35 = vsel %vm4125_vm7, %v5571_v48, %v4122_v61  ;;  %v4159_v9 = vand.u32 2147483648, %v7885_v30  ;;  %vm7929_vm10 = vcmp.eq.f32.partialorder %v4157_v63, 8.507059e+37  ;;  %5588 = vrcp.f32 %v7912_v43 }
 0x1fc   : > { %v4131_v2 = vsel %vm7894_vm4, %v4130_v44, %v4126_v35  ;;  %v4150_v60 = vsub.f32 1.0, %v4149_v62  ;;  %v4141_v16 = vsel %vm4140_vm9, %v5573_v37, %v4137_v13  ;;  %v4172_v53 = vand.u32 2147483647, %v7910_v41 }
 0x1fd   : > { %v5583_v3 = vpop.eup %5582  ;;  %4383 = vst.msk [vmem:[%s6306_s14 + $0x2a0] sm:$0x1f] %vm4298_vm3, %v4131_v2  ;;  %v5178_v12 = vmul.f32 -1.442695, %v2402_v11  ;;  %v4146_v1 = vsel %vm7918_vm8, %v4145_v6, %v4141_v16  ;;  %vm4154_vm11 = vweird.f32 %v5581_v7  ;;  %5590 = vrcp.f32 %v7924_v57 }
 0x1fe   : > { %v5585_v10 = vpop.eup %5584  ;;  %v4151_v19 = vmul.f32 %v5581_v7, %v4150_v60  ;;  %4384 = vst.msk [vmem:[%s6306_s14 + $0x2a8] sm:$0x1f] %vm4298_vm3, %v4146_v1  ;;  %vm4153_vm12 = vweird.f32 %v7885_v30  ;;  %v4160_v21 = vor.u32 1.1754944e-38, %v4159_v9  ;;  %v4174_v17 = vand.u32 2147483648, %v7910_v41 }
 0x1ff   : > { %v5179_v15 = vmul.f32 -1.442695, %v2425_v0  ;;  %v5587_v20 = vpop.eup %5586  ;;  %v4187_v14 = vand.u32 2147483647, %v7912_v43  ;;  %v7945_v31 = vadd.f32 1.0, %v5583_v3  ;;  %v7947_v24 = vadd.f32 1.0, %v5585_v10  ;;  %vm4155_vm13 = vmor %vm4153_vm12, %vm4154_vm11 }
 0x200   : > { %v4152_v8 = vadd.f32 %v5581_v7, %v4151_v19  ;;  %v4164_v5 = vmul.f32 %v5587_v20, %v7910_v41  ;;  %vm4168_vm14 = vweird.f32 %v7910_v41  ;;  %vm7951_vm15 = vcmp.eq.f32.partialorder %v4172_v53, 8.507059e+37 }
 0x201   : > { %vm4183_vm2 = vweird.f32 %v7912_v43  ;;  %v5589_v22 = vpop.eup %5588  ;;  %v4189_v23 = vand.u32 2147483648, %v7912_v43  ;;  %v4202_v34 = vand.u32 2147483647, %v7924_v57  ;;  %5592 = vrcp.f32 %v7945_v31 }
 0x202   : > { %v4156_v26 = vsel %vm4155_vm13, %v5581_v7, %v4152_v8  ;;  %v4165_v48 = vsub.f32 1.0, %v4164_v5  ;;  %v4175_v28 = vor.u32 1.1754944e-38, %v4174_v17  ;;  %v4179_v42 = vmul.f32 %v5589_v22, %v7912_v43 }
 0x203   : > { %v4161_v30 = vsel %vm7929_vm10, %v4160_v21, %v4156_v26  ;;  %v5591_v18 = vpop.eup %5590  ;;  %vm7964_vm4 = vcmp.eq.f32.partialorder %v4187_v14, 8.507059e+37  ;;  %vm4198_vm5 = vweird.f32 %v7924_v57  ;;  %v4204_v27 = vand.u32 2147483648, %v7924_v57 }
 0x204   : > { %4385 = vst.msk [vmem:[%s6306_s14 + $0x2b0] sm:$0x1f] %vm4298_vm3, %v4161_v30  ;;  %5594 = vrcp.f32 %v7947_v24  ;;  %v4166_v40 = vmul.f32 %v5587_v20, %v4165_v48  ;;  %vm4169_vm6 = vweird.f32 %v5587_v20  ;;  %v4180_v37 = vsub.f32 1.0, %v4179_v42 }
 0x205   : > { %v4194_v52 = vmul.f32 %v5591_v18, %v7924_v57  ;;  %vm4184_vm0 = vweird.f32 %v5589_v22  ;;  %v4190_v58 = vor.u32 1.1754944e-38, %v4189_v23  ;;  %vm7972_vm1 = vcmp.eq.f32.partialorder %v4202_v34, 8.507059e+37  ;;  %vm4170_vm7 = vmor %vm4168_vm14, %vm4169_vm6 }
 0x206   : > { %5596 = vpow2.f32 %v5178_v12  ;;  %v4167_v46 = vadd.f32 %v5587_v20, %v4166_v40  ;;  %v4181_v39 = vmul.f32 %v5589_v22, %v4180_v37  ;;  %vm4199_vm8 = vweird.f32 %v5591_v18  ;;  %vm4185_vm9 = vmor %vm4183_vm2, %vm4184_vm0 }
 0x207   : > { %v4195_v25 = vsub.f32 1.0, %v4194_v52  ;;  %5598 = vpow2.f32 %v5179_v15  ;;  %v5593_v59 = vpop.eup %5592  ;;  %v4205_v55 = vor.u32 1.1754944e-38, %v4204_v27  ;;  %v5180_v36 = vmul.f32 -1.442695, %v2448_v45  ;;  %vm4200_vm11 = vmor %vm4198_vm5, %vm4199_vm8  ;;  %v4695_v27 = vld [vmem:[%s6306_s14 + $0x118] sm:$0xff] (%p5700_p3) }
 0x208   : > { %v5181_v49 = vmul.f32 -1.442695, %v2471_v54  ;;  %v4171_v51 = vsel %vm4170_vm7, %v5587_v20, %v4167_v46  ;;  %v4182_v33 = vadd.f32 %v5589_v22, %v4181_v39  ;;  %v4209_v50 = vmul.f32 %v5593_v59, %v7945_v31  ;;  %4696 = vst [vmem:[%s8040_s30 + $0x818] sm:$0xff] (%p5700_p3), %v4695_v27  ;;  %v4705_v54 = vld [vmem:[%s6306_s14 + $0x140] sm:$0xff] (%p5700_p3) }
 0x209   : > { %v4196_v38 = vmul.f32 %v5591_v18, %v4195_v25  ;;  %v4176_v7 = vsel %vm7951_vm15, %v4175_v28, %v4171_v51  ;;  %vm4213_vm10 = vweird.f32 %v7945_v31  ;;  %v4217_v41 = vand.u32 2147483647, %v7945_v31  ;;  %4706 = vst [vmem:[%s8040_s30 + $0xa00] sm:$0xff] (%p5700_p3), %v4705_v54 }
 0x20a   : > { %v5595_v63 = vpop.eup %5594  ;;  %5600 = vpow2.f32 %v5180_v36  ;;  %4386 = vst.msk [vmem:[%s6306_s14 + $0x2b8] sm:$0x1f] %vm4298_vm3, %v4176_v7  ;;  %v4186_v61 = vsel %vm4185_vm9, %v5589_v22, %v4182_v33  ;;  %v4210_v29 = vsub.f32 1.0, %v4209_v50  ;;  %vm4214_vm12 = vweird.f32 %v5593_v59 }
 0x20b   : > { %v4197_v56 = vadd.f32 %v5591_v18, %v4196_v38  ;;  %v4224_v62 = vmul.f32 %v5595_v63, %v7947_v24  ;;  %v4191_v35 = vsel %vm7964_vm4, %v4190_v58, %v4186_v61  ;;  %v4219_v43 = vand.u32 2147483648, %v7945_v31  ;;  %vm4215_vm14 = vmor %vm4213_vm10, %vm4214_vm12 }
 0x20c   : > { %v5597_v11 = vpop.eup %5596  ;;  %5602 = vpow2.f32 %v5181_v49  ;;  %4387 = vst.msk [vmem:[%s6306_s14 + $0x2c0] sm:$0x1f] %vm4298_vm3, %v4191_v35  ;;  %v4211_v9 = vmul.f32 %v5593_v59, %v4210_v29  ;;  %v4232_v0 = vand.u32 2147483647, %v7947_v24  ;;  %v4234_v3 = vand.u32 2147483648, %v7947_v24 }
 0x20d   : > { %v5599_v13 = vpop.eup %5598  ;;  %v4201_v6 = vsel %vm4200_vm11, %v5591_v18, %v4197_v56  ;;  %v4225_v2 = vsub.f32 1.0, %v4224_v62  ;;  %v2854_v60 = vadd.f32 1.0, %v5597_v11  ;;  %vm4229_vm13 = vweird.f32 %v5595_v63 }
 0x20e   : > { %v4206_v4 = vsel %vm7972_vm1, %v4205_v55, %v4201_v6  ;;  %v2855_v57 = vadd.f32 1.0, %v5599_v13  ;;  %v4212_v16 = vadd.f32 %v5593_v59, %v4211_v9  ;;  %v4220_v10 = vor.u32 1.1754944e-38, %v4219_v43  ;;  %v4625_v13 = vld [vmem:[%s6306_s14] sm:$0xff] (%p5700_p3)  ;;  %v4627_v6 = vld [vmem:[%s6306_s14 + $0x8] sm:$0xff] (%p5700_p3)  ;;  %v4629_v9 = vld [vmem:[%s6306_s14 + $0x10] sm:$0xff] (%p5700_p3) }
 0x20f   : > { %4388 = vst.msk [vmem:[%s6306_s14 + $0x2c8] sm:$0x1f] %vm4298_vm3, %v4206_v4  ;;  %v4226_v53 = vmul.f32 %v5595_v63, %v4225_v2  ;;  %5604 = vrcp.f32 %v2854_v60  ;;  %vm4218_vm15 = vcmp.eq.f32.partialorder %v4217_v41, 8.507059e+37  ;;  %vm4228_vm2 = vweird.f32 %v7947_v24  ;;  %v4631_v2 = vld [vmem:[%s6306_s14 + $0x18] sm:$0xff] (%p5700_p3)  ;;  %v4635_v4 = vld [vmem:[%s6306_s14 + $0x28] sm:$0xff] (%p5700_p3) }
 0x210   : > { %v5601_v12 = vpop.eup %5600  ;;  %5606 = vrcp.f32 %v2855_v57  ;;  %v4216_v1 = vsel %vm4215_vm14, %v5593_v59, %v4212_v16  ;;  %vm4230_vm4 = vmor %vm4228_vm2, %vm4229_vm13  ;;  %v4235_v15 = vor.u32 1.1754944e-38, %v4234_v3  ;;  %vm4233_vm5 = vcmp.eq.f32.partialorder %v4232_v0, 8.507059e+37  ;;  %4626 = vst [vmem:[%s8040_s30] sm:$0xff] (%p5700_p3), %v4625_v13  ;;  %v4637_v0 = vld [vmem:[%s6306_s14 + $0x30] sm:$0xff] (%p5700_p3)  ;;  %v4639_v3 = vld [vmem:[%s6306_s14 + $0x38] sm:$0xff] (%p5700_p3) }
 0x211   : > { %v4227_v19 = vadd.f32 %v5595_v63, %v4226_v53  ;;  %v4221_v17 = vsel %vm4218_vm15, %v4220_v10, %v4216_v1  ;;  %v2856_v20 = vadd.f32 1.0, %v5601_v12  ;;  %v4247_v26 = vand.u32 2147483647, %v2854_v60  ;;  %4628 = vst [vmem:[%s8040_s30 + $0x8] sm:$0xff] (%p5700_p3), %v4627_v6  ;;  %v4643_v16 = vld [vmem:[%s6306_s14 + $0x48] sm:$0xff] (%p5700_p3)  ;;  %v4645_v53 = vld [vmem:[%s6306_s14 + $0x50] sm:$0xff] (%p5700_p3) }
 0x212   : > { %v5603_v21 = vpop.eup %5602  ;;  %4389 = vst.msk [vmem:[%s6306_s14 + $0x2d0] sm:$0x1f] %vm4298_vm3, %v4221_v17  ;;  %v4249_v34 = vand.u32 2147483648, %v2854_v60  ;;  %v4262_v30 = vand.u32 2147483647, %v2855_v57  ;;  %v4264_v28 = vand.u32 2147483648, %v2855_v57  ;;  %vm4243_vm6 = vweird.f32 %v2854_v60 }
 0x213   : > { %v4231_v8 = vsel %vm4230_vm4, %v5595_v63, %v4227_v19  ;;  %v2857_v14 = vadd.f32 1.0, %v5603_v21  ;;  %5608 = vrcp.f32 %v2856_v20  ;;  %vm4258_vm1 = vweird.f32 %v2855_v57  ;;  %4630 = vst [vmem:[%s8040_s30 + $0x10] sm:$0xff] (%p5700_p3), %v4629_v9  ;;  %v4647_v12 = vld [vmem:[%s6306_s14 + $0x58] sm:$0xff] (%p5700_p3)  ;;  %v4649_v10 = vld [vmem:[%s6306_s14 + $0x60] sm:$0xff] (%p5700_p3)  ;;  %v4651_v1 = vld [vmem:[%s6306_s14 + $0x68] sm:$0xff] (%p5700_p3) }
 0x214   : > { %v4236_v31 = vsel %vm4233_vm5, %v4235_v15, %v4231_v8  ;;  %vm8011_vm7 = vcmp.eq.f32.partialorder %v4247_v26, 8.507059e+37  ;;  %v4250_v45 = vor.u32 1.1754944e-38, %v4249_v34  ;;  %vm8015_vm9 = vcmp.eq.f32.partialorder %v4262_v30, 8.507059e+37  ;;  %4632 = vst [vmem:[%s8040_s30 + $0x18] sm:$0xff] (%p5700_p3), %v4631_v2  ;;  %v4653_v19 = vld [vmem:[%s6306_s14 + $0x70] sm:$0xff] (%p5700_p3)  ;;  %v4655_v21 = vld [vmem:[%s6306_s14 + $0x78] sm:$0xff] (%p5700_p3) }
 0x215   : > { %v5605_v5 = vpop.eup %5604  ;;  %4390 = vst.msk [vmem:[%s6306_s14 + $0x2d8] sm:$0x1f] %vm4298_vm3, %v4236_v31  ;;  %5610 = vrcp.f32 %v2857_v14  ;;  %v4265_v46 = vor.u32 1.1754944e-38, %v4264_v28  ;;  %v4277_v25 = vand.u32 2147483647, %v2856_v20  ;;  %v4279_v55 = vand.u32 2147483648, %v2856_v20 }
 0x216   : > { %v5607_v32 = vpop.eup %5606  ;;  %v4239_v22 = vmul.f32 %v5605_v5, %v2854_v60  ;;  %vm4244_vm0 = vweird.f32 %v5605_v5  ;;  %v4294_v49 = vand.u32 2147483648, %v2857_v14  ;;  %v4292_v7 = vand.u32 2147483647, %v2857_v14  ;;  %v4633_v60 = vld [vmem:[%s6306_s14 + $0x20] sm:$0xff] (%p5700_p3)  ;;  %4636 = vst [vmem:[%s8040_s30 + $0x108] sm:$0xff] (%p5700_p3), %v4635_v4  ;;  %v4659_v15 = vld [vmem:[%s6306_s14 + $0x88] sm:$0xff] (%p5700_p3) }
 0x217   : > { %v4254_v24 = vmul.f32 %v5607_v32, %v2855_v57  ;;  %vm4259_vm8 = vweird.f32 %v5607_v32  ;;  %vm4245_vm10 = vmor %vm4243_vm6, %vm4244_vm0  ;;  %vm4273_vm14 = vweird.f32 %v2856_v20  ;;  %v4280_v61 = vor.u32 1.1754944e-38, %v4279_v55  ;;  %4634 = vst [vmem:[%s8040_s30 + $0x100] sm:$0xff] (%p5700_p3), %v4633_v60  ;;  %v4641_v57 = vld [vmem:[%s6306_s14 + $0x40] sm:$0xff] (%p5700_p3)  ;;  %v4663_v8 = vld [vmem:[%s6306_s14 + $0x98] sm:$0xff] (%p5700_p3) }
 0x218   : > { %v4240_v23 = vsub.f32 1.0, %v4239_v22  ;;  %vm4260_vm11 = vmor %vm4258_vm1, %vm4259_vm8  ;;  %vm4288_vm2 = vweird.f32 %v2857_v14  ;;  %vm4278_vm4 = vcmp.eq.f32.partialorder %v4277_v25, 8.507059e+37  ;;  %v4295_v62 = vor.u32 1.1754944e-38, %v4294_v49  ;;  %4638 = vst [vmem:[%s8040_s30 + $0x110] sm:$0xff] (%p5700_p3), %v4637_v0  ;;  %v4657_v17 = vld [vmem:[%s6306_s14 + $0x80] sm:$0xff] (%p5700_p3)  ;;  %v4667_v31 = vld [vmem:[%s6306_s14 + $0xa8] sm:$0xff] (%p5700_p3) }
 0x219   : > { %v4255_v48 = vsub.f32 1.0, %v4254_v24  ;;  %v5609_v42 = vpop.eup %5608  ;;  %vm4293_vm6 = vcmp.eq.f32.partialorder %v4292_v7, 8.507059e+37  ;;  %4640 = vst [vmem:[%s8040_s30 + $0x118] sm:$0xff] (%p5700_p3), %v4639_v3  ;;  %v4673_v22 = vld [vmem:[%s6306_s14 + $0xc0] sm:$0xff] (%p5700_p3)  ;;  %v4675_v26 = vld [vmem:[%s6306_s14 + $0xc8] sm:$0xff] (%p5700_p3)  ;;  %v4677_v24 = vld [vmem:[%s6306_s14 + $0xd0] sm:$0xff] (%p5700_p3) }
 0x21a   : > { %v4241_v18 = vmul.f32 %v5605_v5, %v4240_v23  ;;  %v4269_v37 = vmul.f32 %v5609_v42, %v2856_v20  ;;  %vm4274_vm12 = vweird.f32 %v5609_v42  ;;  %4642 = vst [vmem:[%s8040_s30 + $0x200] sm:$0xff] (%p5700_p3), %v4641_v57  ;;  %v4661_v20 = vld [vmem:[%s6306_s14 + $0x90] sm:$0xff] (%p5700_p3)  ;;  %v4679_v23 = vld [vmem:[%s6306_s14 + $0xd8] sm:$0xff] (%p5700_p3)  ;;  %v4681_v34 = vld [vmem:[%s6306_s14 + $0xe0] sm:$0xff] (%p5700_p3) }
 0x21b   : > { %v5611_v47 = vpop.eup %5610  ;;  %v4256_v40 = vmul.f32 %v5607_v32, %v4255_v48  ;;  %vm4275_vm15 = vmor %vm4273_vm14, %vm4274_vm12  ;;  %4644 = vst [vmem:[%s8040_s30 + $0x208] sm:$0xff] (%p5700_p3), %v4643_v16  ;;  %v4683_v30 = vld [vmem:[%s6306_s14 + $0xe8] sm:$0xff] (%p5700_p3)  ;;  %v4685_v48 = vld [vmem:[%s6306_s14 + $0xf0] sm:$0xff] (%p5700_p3) }
 0x21c   : > { %v4242_v52 = vadd.f32 %v5605_v5, %v4241_v18  ;;  %v4284_v58 = vmul.f32 %v5611_v47, %v2857_v14  ;;  %v4270_v39 = vsub.f32 1.0, %v4269_v37  ;;  %vm4289_vm13 = vweird.f32 %v5611_v47  ;;  %4646 = vst [vmem:[%s8040_s30 + $0x210] sm:$0xff] (%p5700_p3), %v4645_v53  ;;  %v4665_v14 = vld [vmem:[%s6306_s14 + $0xa0] sm:$0xff] (%p5700_p3)  ;;  %v4687_v28 = vld [vmem:[%s6306_s14 + $0xf8] sm:$0xff] (%p5700_p3)  ;;  %v4691_v18 = vld [vmem:[%s6306_s14 + $0x108] sm:$0xff] (%p5700_p3) }
 0x21d   : > { %v4257_v44 = vadd.f32 %v5607_v32, %v4256_v40  ;;  %vm4290_vm5 = vmor %vm4288_vm2, %vm4289_vm13  ;;  %4648 = vst [vmem:[%s8040_s30 + $0x218] sm:$0xff] (%p5700_p3), %v4647_v12  ;;  %v4697_v40 = vld [vmem:[%s6306_s14 + $0x120] sm:$0xff] (%p5700_p3)  ;;  %v4699_v37 = vld [vmem:[%s6306_s14 + $0x128] sm:$0xff] (%p5700_p3) }
 0x21e   : > { %v4246_v59 = vsel %vm4245_vm10, %v5605_v5, %v4242_v52  ;;  %v4285_v36 = vsub.f32 1.0, %v4284_v58  ;;  %v4271_v38 = vmul.f32 %v5609_v42, %v4270_v39  ;;  %4650 = vst [vmem:[%s8040_s30 + $0x300] sm:$0xff] (%p5700_p3), %v4649_v10  ;;  %v4669_v5 = vld [vmem:[%s6306_s14 + $0xb0] sm:$0xff] (%p5700_p3)  ;;  %v4707_v58 = vld [vmem:[%s6306_s14 + $0x148] sm:$0xff] (%p5700_p3)  ;;  %v4713_v39 = vld [vmem:[%s6306_s14 + $0x160] sm:$0xff] (%p5700_p3) }
 0x21f   : > { %v4251_v51 = vsel %vm8011_vm7, %v4250_v45, %v4246_v59  ;;  %v4261_v33 = vsel %vm4260_vm11, %v5607_v32, %v4257_v44  ;;  %4652 = vst [vmem:[%s8040_s30 + $0x308] sm:$0xff] (%p5700_p3), %v4651_v1  ;;  %v4671_v32 = vld [vmem:[%s6306_s14 + $0xb8] sm:$0xff] (%p5700_p3)  ;;  %v4701_v52 = vld [vmem:[%s6306_s14 + $0x130] sm:$0xff] (%p5700_p3)  ;;  %v4715_v25 = vld [vmem:[%s6306_s14 + $0x168] sm:$0xff] (%p5700_p3) }
 0x220   : > { %4391 = vst.msk [vmem:[%s6306_s14 + $0x2e0] sm:$0x1f] %vm4298_vm3, %v4251_v51  ;;  %v4266_v50 = vsel %vm8015_vm9, %v4265_v46, %v4261_v33  ;;  %v4286_v63 = vmul.f32 %v5611_v47, %v4285_v36  ;;  %v4272_v41 = vadd.f32 %v5609_v42, %v4271_v38  ;;  %v4703_v45 = vld [vmem:[%s6306_s14 + $0x138] sm:$0xff] (%p5700_p3)  ;;  %v4709_v44 = vld [vmem:[%s6306_s14 + $0x150] sm:$0xff] (%p5700_p3)  ;;  %v4721_v36 = vld [vmem:[%s6306_s14 + $0x180] sm:$0xff] (%p5700_p3) }
 0x221   : > { %4392 = vst.msk [vmem:[%s6306_s14 + $0x2e8] sm:$0x1f] %vm4298_vm3, %v4266_v50  ;;  %v4711_v46 = vld [vmem:[%s6306_s14 + $0x158] sm:$0xff] (%p5700_p3)  ;;  %v4717_v59 = vld [vmem:[%s6306_s14 + $0x170] sm:$0xff] (%p5700_p3)  ;;  %v4723_v49 = vld [vmem:[%s6306_s14 + $0x188] sm:$0xff] (%p5700_p3) }
 0x222   : > { %v4287_v56 = vadd.f32 %v5611_v47, %v4286_v63  ;;  %v4276_v29 = vsel %vm4275_vm15, %v5609_v42, %v4272_v41  ;;  %4401 = sbr.rel (!%p5700_p3) target bundleno = 628 (0x274), region = 32  ;;  %4654 = vst [vmem:[%s8040_s30 + $0x310] sm:$0xff] (%p5700_p3), %v4653_v19  ;;  %v4689_v42 = vld [vmem:[%s6306_s14 + $0x100] sm:$0xff] (%p5700_p3)  ;;  %v4719_v55 = vld [vmem:[%s6306_s14 + $0x178] sm:$0xff] (%p5700_p3)  ;;  %v4725_v51 = vld [vmem:[%s6306_s14 + $0x190] sm:$0xff] (%p5700_p3) }
 0x223   : > { %v4281_v11 = vsel %vm4278_vm4, %v4280_v61, %v4276_v29  ;;  %4656 = vst [vmem:[%s8040_s30 + $0x318] sm:$0xff] (%p5700_p3), %v4655_v21  ;;  %v4727_v33 = vld [vmem:[%s6306_s14 + $0x198] sm:$0xff] (%p5700_p3)  ;;  %v4729_v38 = vld [vmem:[%s6306_s14 + $0x1a0] sm:$0xff] (%p5700_p3)  ;;  %v4731_v50 = vld [vmem:[%s6306_s14 + $0x1a8] sm:$0xff] (%p5700_p3) }
 0x224   : > { %v4291_v35 = vsel %vm4290_vm5, %v5611_v47, %v4287_v56  ;;  %4393 = vst.msk [vmem:[%s6306_s14 + $0x2f0] sm:$0x1f] %vm4298_vm3, %v4281_v11  ;;  %v4693_v47 = vld [vmem:[%s6306_s14 + $0x110] sm:$0xff] (%p5700_p3)  ;;  %v4735_v7 = vld [vmem:[%s6306_s14 + $0x1b8] sm:$0xff] (%p5700_p3)  ;;  %v4737_v41 = vld [vmem:[%s6306_s14 + $0x1c0] sm:$0xff] (%p5700_p3) }
 0x225   : > { %v4296_v43 = vsel %vm4293_vm6, %v4295_v62, %v4291_v35  ;;  %4658 = vst [vmem:[%s8040_s30 + $0x400] sm:$0xff] (%p5700_p3), %v4657_v17  ;;  %v4733_v63 = vld [vmem:[%s6306_s14 + $0x1b0] sm:$0xff] (%p5700_p3)  ;;  %v4739_v61 = vld [vmem:[%s6306_s14 + $0x1c8] sm:$0xff] (%p5700_p3)  ;;  %v4743_v29 = vld [vmem:[%s6306_s14 + $0x1d8] sm:$0xff] (%p5700_p3) }
 0x226   : > { %4394 = vst.msk [vmem:[%s6306_s14 + $0x2f8] sm:$0x1f] %vm4298_vm3, %v4296_v43  ;;  %v4741_v56 = vld [vmem:[%s6306_s14 + $0x1d0] sm:$0xff] (%p5700_p3)  ;;  %v4745_v62 = vld [vmem:[%s6306_s14 + $0x1e0] sm:$0xff] (%p5700_p3)  ;;  %v4747_v11 = vld [vmem:[%s6306_s14 + $0x1e8] sm:$0xff] (%p5700_p3) }
 0x227   : > { %4660 = vst [vmem:[%s8040_s30 + $0x408] sm:$0xff] %v4659_v15  ;;  %v4749_v35 = vld [vmem:[%s6306_s14 + $0x1f0] sm:$0xff]  ;;  %v4751_v43 = vld [vmem:[%s6306_s14 + $0x1f8] sm:$0xff]  ;;  %v4753_v13 = vld [vmem:[%s6306_s14 + $0x200] sm:$0xff] }
 0x228   : > { %4662 = vst [vmem:[%s8040_s30 + $0x410] sm:$0xff] %v4661_v20  ;;  %v4755_v6 = vld [vmem:[%s6306_s14 + $0x208] sm:$0xff]  ;;  %v4757_v9 = vld [vmem:[%s6306_s14 + $0x210] sm:$0xff]  ;;  %v4759_v2 = vld [vmem:[%s6306_s14 + $0x218] sm:$0xff] }
 0x229   : > { %4664 = vst [vmem:[%s8040_s30 + $0x418] sm:$0xff] %v4663_v8  ;;  %v4761_v60 = vld [vmem:[%s6306_s14 + $0x220] sm:$0xff]  ;;  %v4763_v4 = vld [vmem:[%s6306_s14 + $0x228] sm:$0xff]  ;;  %v4765_v0 = vld [vmem:[%s6306_s14 + $0x230] sm:$0xff] }
 0x22a   : > { %4666 = vst [vmem:[%s8040_s30 + $0x500] sm:$0xff] %v4665_v14  ;;  %v4767_v3 = vld [vmem:[%s6306_s14 + $0x238] sm:$0xff]  ;;  %v4769_v57 = vld [vmem:[%s6306_s14 + $0x240] sm:$0xff]  ;;  %v4771_v16 = vld [vmem:[%s6306_s14 + $0x248] sm:$0xff] }
 0x22b   : > { %4668 = vst [vmem:[%s8040_s30 + $0x508] sm:$0xff] %v4667_v31  ;;  %v4773_v53 = vld [vmem:[%s6306_s14 + $0x250] sm:$0xff]  ;;  %v4775_v12 = vld [vmem:[%s6306_s14 + $0x258] sm:$0xff]  ;;  %v4777_v10 = vld [vmem:[%s6306_s14 + $0x260] sm:$0xff] }
 0x22c   : > { %4670 = vst [vmem:[%s8040_s30 + $0x510] sm:$0xff] %v4669_v5  ;;  %v4779_v1 = vld [vmem:[%s6306_s14 + $0x268] sm:$0xff]  ;;  %v4781_v19 = vld [vmem:[%s6306_s14 + $0x270] sm:$0xff]  ;;  %v4783_v21 = vld [vmem:[%s6306_s14 + $0x278] sm:$0xff] }
 0x22d   : > { %4672 = vst [vmem:[%s8040_s30 + $0x518] sm:$0xff] %v4671_v32  ;;  %v4785_v17 = vld [vmem:[%s6306_s14 + $0x280] sm:$0xff]  ;;  %v4787_v15 = vld [vmem:[%s6306_s14 + $0x288] sm:$0xff]  ;;  %v4789_v20 = vld [vmem:[%s6306_s14 + $0x290] sm:$0xff] }
 0x22e   : > { %4674 = vst [vmem:[%s8040_s30 + $0x600] sm:$0xff] %v4673_v22  ;;  %v4791_v8 = vld [vmem:[%s6306_s14 + $0x298] sm:$0xff]  ;;  %v4793_v14 = vld [vmem:[%s6306_s14 + $0x2a0] sm:$0xff]  ;;  %v4795_v31 = vld [vmem:[%s6306_s14 + $0x2a8] sm:$0xff] }
 0x22f   : > { %4676 = vst [vmem:[%s8040_s30 + $0x608] sm:$0xff] %v4675_v26  ;;  %v4797_v5 = vld [vmem:[%s6306_s14 + $0x2b0] sm:$0xff]  ;;  %v4799_v32 = vld [vmem:[%s6306_s14 + $0x2b8] sm:$0xff]  ;;  %v4801_v22 = vld [vmem:[%s6306_s14 + $0x2c0] sm:$0xff] }
 0x230   : > { %4678 = vst [vmem:[%s8040_s30 + $0x610] sm:$0xff] %v4677_v24  ;;  %v4803_v26 = vld [vmem:[%s6306_s14 + $0x2c8] sm:$0xff]  ;;  %v4805_v24 = vld [vmem:[%s6306_s14 + $0x2d0] sm:$0xff] }
 0x231   : > { %4680 = vst [vmem:[%s8040_s30 + $0x618] sm:$0xff] %v4679_v23  ;;  %v4807_v23 = vld [vmem:[%s6306_s14 + $0x2d8] sm:$0xff] }
 0x232   : > { %4682 = vst [vmem:[%s8040_s30 + $0x700] sm:$0xff] %v4681_v34  ;;  %v4809_v34 = vld [vmem:[%s6306_s14 + $0x2e0] sm:$0xff] }
 0x233   : > { %4684 = vst [vmem:[%s8040_s30 + $0x708] sm:$0xff] %v4683_v30  ;;  %v4811_v30 = vld [vmem:[%s6306_s14 + $0x2e8] sm:$0xff] }
 0x234   : > { %4686 = vst [vmem:[%s8040_s30 + $0x710] sm:$0xff] %v4685_v48  ;;  %v4813_v48 = vld [vmem:[%s6306_s14 + $0x2f0] sm:$0xff] }
 0x235   : > { %4688 = vst [vmem:[%s8040_s30 + $0x718] sm:$0xff] %v4687_v28  ;;  %v4815_v28 = vld [vmem:[%s6306_s14 + $0x2f8] sm:$0xff] }
 0x236   : > { %4690 = vst [vmem:[%s8040_s30 + $0x800] sm:$0xff] %v4689_v42 }
 0x237   : > { %4692 = vst [vmem:[%s8040_s30 + $0x808] sm:$0xff] %v4691_v18 }
 0x238   : > { %4694 = vst [vmem:[%s8040_s30 + $0x810] sm:$0xff] %v4693_v47 }
 0x239   : > { %4698 = vst [vmem:[%s8040_s30 + $0x900] sm:$0xff] %v4697_v40 }
 0x23a   : > { %4700 = vst [vmem:[%s8040_s30 + $0x908] sm:$0xff] %v4699_v37 }
 0x23b   : > { %4702 = vst [vmem:[%s8040_s30 + $0x910] sm:$0xff] %v4701_v52 }
 0x23c   : > { %4704 = vst [vmem:[%s8040_s30 + $0x918] sm:$0xff] %v4703_v45 }
 0x23d   : > { %4708 = vst [vmem:[%s8040_s30 + $0xa08] sm:$0xff] %v4707_v58 }
 0x23e   : > { %4710 = vst [vmem:[%s8040_s30 + $0xa10] sm:$0xff] %v4709_v44 }
 0x23f   : > { %4712 = vst [vmem:[%s8040_s30 + $0xa18] sm:$0xff] %v4711_v46 }
 0x240   : > { %4714 = vst [vmem:[%s8040_s30 + $0xb00] sm:$0xff] %v4713_v39 }
 0x241   : > { %4716 = vst [vmem:[%s8040_s30 + $0xb08] sm:$0xff] %v4715_v25 }
 0x242   : > { %4718 = vst [vmem:[%s8040_s30 + $0xb10] sm:$0xff] %v4717_v59 }
 0x243   : > { %4720 = vst [vmem:[%s8040_s30 + $0xb18] sm:$0xff] %v4719_v55 }
 0x244   : > { %4722 = vst [vmem:[%s8040_s30 + $0xc00] sm:$0xff] %v4721_v36 }
 0x245   : > { %4724 = vst [vmem:[%s8040_s30 + $0xc08] sm:$0xff] %v4723_v49 }
 0x246   : > { %4726 = vst [vmem:[%s8040_s30 + $0xc10] sm:$0xff] %v4725_v51 }
 0x247   : > { %4728 = vst [vmem:[%s8040_s30 + $0xc18] sm:$0xff] %v4727_v33 }
 0x248   : > { %4730 = vst [vmem:[%s8040_s30 + $0xd00] sm:$0xff] %v4729_v38 }
 0x249   : > { %4732 = vst [vmem:[%s8040_s30 + $0xd08] sm:$0xff] %v4731_v50 }
 0x24a   : > { %4734 = vst [vmem:[%s8040_s30 + $0xd10] sm:$0xff] %v4733_v63 }
 0x24b   : > { %4736 = vst [vmem:[%s8040_s30 + $0xd18] sm:$0xff] %v4735_v7 }
 0x24c   : > { %4738 = vst [vmem:[%s8040_s30 + $0xe00] sm:$0xff] %v4737_v41 }
 0x24d   : > { %4740 = vst [vmem:[%s8040_s30 + $0xe08] sm:$0xff] %v4739_v61 }
 0x24e   : > { %4742 = vst [vmem:[%s8040_s30 + $0xe10] sm:$0xff] %v4741_v56 }
 0x24f   : > { %4744 = vst [vmem:[%s8040_s30 + $0xe18] sm:$0xff] %v4743_v29 }
 0x250   : > { %4746 = vst [vmem:[%s8040_s30 + $0xf00] sm:$0xff] %v4745_v62 }
 0x251   : > { %4748 = vst [vmem:[%s8040_s30 + $0xf08] sm:$0xff] %v4747_v11 }
 0x252   : > { %4750 = vst [vmem:[%s8040_s30 + $0xf10] sm:$0xff] %v4749_v35 }
 0x253   : > { %4752 = vst [vmem:[%s8040_s30 + $0xf18] sm:$0xff] %v4751_v43 }
 0x254   : > { %4754 = vst [vmem:[%s8040_s30 + $0x1000] sm:$0xff] %v4753_v13 }
 0x255   : > { %4756 = vst [vmem:[%s8040_s30 + $0x1008] sm:$0xff] %v4755_v6 }
 0x256   : > { %4758 = vst [vmem:[%s8040_s30 + $0x1010] sm:$0xff] %v4757_v9 }
 0x257   : > { %4760 = vst [vmem:[%s8040_s30 + $0x1018] sm:$0xff] %v4759_v2 }
 0x258   : > { %4762 = vst [vmem:[%s8040_s30 + $0x1100] sm:$0xff] %v4761_v60 }
 0x259   : > { %4764 = vst [vmem:[%s8040_s30 + $0x1108] sm:$0xff] %v4763_v4 }
 0x25a   : > { %4766 = vst [vmem:[%s8040_s30 + $0x1110] sm:$0xff] %v4765_v0 }
 0x25b   : > { %4768 = vst [vmem:[%s8040_s30 + $0x1118] sm:$0xff] %v4767_v3 }
 0x25c   : > { %4770 = vst [vmem:[%s8040_s30 + $0x1200] sm:$0xff] %v4769_v57 }
 0x25d   : > { %4772 = vst [vmem:[%s8040_s30 + $0x1208] sm:$0xff] %v4771_v16 }
 0x25e   : > { %4774 = vst [vmem:[%s8040_s30 + $0x1210] sm:$0xff] %v4773_v53 }
 0x25f   : > { %4776 = vst [vmem:[%s8040_s30 + $0x1218] sm:$0xff] %v4775_v12 }
 0x260   : > { %4778 = vst [vmem:[%s8040_s30 + $0x1300] sm:$0xff] %v4777_v10 }
 0x261   : > { %4780 = vst [vmem:[%s8040_s30 + $0x1308] sm:$0xff] %v4779_v1 }
 0x262   : > { %4782 = vst [vmem:[%s8040_s30 + $0x1310] sm:$0xff] %v4781_v19 }
 0x263   : > { %4784 = vst [vmem:[%s8040_s30 + $0x1318] sm:$0xff] %v4783_v21 }
 0x264   : > { %4786 = vst [vmem:[%s8040_s30 + $0x1400] sm:$0xff] %v4785_v17 }
 0x265   : > { %4788 = vst [vmem:[%s8040_s30 + $0x1408] sm:$0xff] %v4787_v15 }
 0x266   : > { %4790 = vst [vmem:[%s8040_s30 + $0x1410] sm:$0xff] %v4789_v20 }
 0x267   : > { %4792 = vst [vmem:[%s8040_s30 + $0x1418] sm:$0xff] %v4791_v8 }
 0x268   : > { %4794 = vst [vmem:[%s8040_s30 + $0x1500] sm:$0xff] %v4793_v14 }
 0x269   : > { %4796 = vst [vmem:[%s8040_s30 + $0x1508] sm:$0xff] %v4795_v31 }
 0x26a   : > { %4798 = vst [vmem:[%s8040_s30 + $0x1510] sm:$0xff] %v4797_v5 }
 0x26b   : > { %4800 = vst [vmem:[%s8040_s30 + $0x1518] sm:$0xff] %v4799_v32 }
 0x26c   : > { %4802 = vst [vmem:[%s8040_s30 + $0x1600] sm:$0xff] %v4801_v22 }
 0x26d   : > { %4804 = vst [vmem:[%s8040_s30 + $0x1608] sm:$0xff] %v4803_v26 }
 0x26e   : > { %4806 = vst [vmem:[%s8040_s30 + $0x1610] sm:$0xff] %v4805_v24 }
 0x26f   : > { %4808 = vst [vmem:[%s8040_s30 + $0x1618] sm:$0xff] %v4807_v23 }
 0x270   : > { %4810 = vst [vmem:[%s8040_s30 + $0x1700] sm:$0xff] %v4809_v34 }
 0x271   : > { %4812 = vst [vmem:[%s8040_s30 + $0x1708] sm:$0xff] %v4811_v30 }
 0x272   : > { %4814 = vst [vmem:[%s8040_s30 + $0x1710] sm:$0xff] %v4813_v48 }
 0x273   : > { %4816 = vst [vmem:[%s8040_s30 + $0x1718] sm:$0xff] %v4815_v28 }
 0x274 PF: > { %s12_s13 = sadd.s32 1, %s5651_s13   ;;  %s8429_s9 = smov %s5639_s10 }
 0x275   : > { %p9_p9 = scmp.ge.s32.totalorder %s12_s13, 10   ;;  %s8430_s10 = smov %s5709_s19 }
 0x276   : > { %s8431_s11 = smov %s5647_s12  ;;  %s8432_s12 = smov %s8434_s15 }
 0x277   :  { %11 = sbr.rel (!%p9_p9) target bundleno = 3 (0x3), region = 96 }

</bundles_post_ra>
